<compile_context>
chip_gen: v5e
topology: v5e:2x2
jax: 0.10.0
libtpu: 0.0.40
codegen_flags: <defaults>
</compile_context>

<pallas_src>
import jax
import jax.numpy as jnp
from jax.experimental import pallas as pl
from jax.experimental.pallas import tpu as pltpu

EPS = 1e-5  # nn.BatchNorm2d default eps


# --------------------------------------------------------------------------
# in-kernel helpers
# --------------------------------------------------------------------------
def _conv3x3(src_f32, w_ref, H, W, Cp):
    """3x3 / stride-1 conv of a zero-padded (H+2, W+2, Cp) f32 array as a single
    bf16 im2col matmul with f32 accumulation."""
    taps = []
    for ky in range(3):                         # unrolled at trace time
        for kx in range(3):
            taps.append(src_f32[ky:ky + H, kx:kx + W, :]
                        .reshape(H * W, Cp).astype(jnp.bfloat16))
    patch = jnp.concatenate(taps, axis=-1)                       # (H*W, 9*Cp)
    return jnp.dot(patch, w_ref[...], preferred_element_type=jnp.float32)


def _stats(acc):
    """Per-channel (sum, sum-of-squares) partials in one pass, f32."""
    return jnp.concatenate(
        [jnp.sum(acc, axis=0, keepdims=True),
         jnp.sum(acc * acc, axis=0, keepdims=True)], axis=0)     # (2, Cp)


# --------------------------------------------------------------------------
# kernels (grid = (N,), one image per grid step)
# --------------------------------------------------------------------------
def _conv1_kernel(xp_ref, w_ref, out_ref, stats_ref):
    _, Hp, Wp, Cp = xp_ref.shape
    H, W = Hp - 2, Wp - 2
    acc = _conv3x3(xp_ref[0].astype(jnp.float32), w_ref, H, W, Cp)   # (H*W, Cp)
    out_ref[0] = acc.reshape(H, W, Cp)
    stats_ref[0] = _stats(acc)


def _bn_relu_conv2_kernel(a_ref, aff_ref, w_ref, out_ref, stats_ref, mid_ref):
    _, H, W, Cp = a_ref.shape
    Hp, Wp = H + 2, W + 2

    # Zero only the 1-wide halo of the staging buffer; the interior is fully
    # overwritten every grid step.
    mid_ref[0:1, :, :] = jnp.zeros((1, Wp, Cp), mid_ref.dtype)
    mid_ref[Hp - 1:Hp, :, :] = jnp.zeros((1, Wp, Cp), mid_ref.dtype)
    mid_ref[:, 0:1, :] = jnp.zeros((Hp, 1, Cp), mid_ref.dtype)
    mid_ref[:, Wp - 1:Wp, :] = jnp.zeros((Hp, 1, Cp), mid_ref.dtype)

    # BN1 (precomputed per-channel scale/shift) + ReLU, staged into the padded
    # VMEM scratch that feeds the second conv.
    a = a_ref[0].reshape(H * W, Cp)                                  # f32 conv1
    y = jnp.maximum(a * aff_ref[0:1, :] + aff_ref[1:2, :], 0.0)
    mid_ref[1:1 + H, 1:1 + W, :] = y.reshape(H, W, Cp)

    acc = _conv3x3(mid_ref[...], w_ref, H, W, Cp)
    out_ref[0] = acc.reshape(H, W, Cp)
    stats_ref[0] = _stats(acc)


def _bn_add_relu_kernel(a_ref, xp_ref, aff_ref, o_ref):
    _, H, W, Cp = a_ref.shape
    a = a_ref[0].reshape(H * W, Cp)                                  # f32 conv2
    res = xp_ref[0].astype(jnp.float32)[1:1 + H, 1:1 + W, :].reshape(H * W, Cp)
    z = a * aff_ref[0:1, :] + aff_ref[1:2, :] + res                  # BN2 + id
    o_ref[0] = jnp.maximum(z, 0.0).reshape(H, W, Cp)


# --------------------------------------------------------------------------
# wrapper
# --------------------------------------------------------------------------
@jax.jit
def residual_block(x_nchw, w1_oihw, w2_oihw, g1, b1, g2, b2):
    """ResidualBlock(in_ch, out_ch, stride=1, shortcut=None) forward pass."""
    N, Cin, H, W = x_nchw.shape
    Cout = w1_oihw.shape[0]
    assert Cin == Cout, "identity shortcut needs in_channels == out_channels"
    C = Cin
    Cp = ((C + 127) // 128) * 128                 # lane-dense channel dim
    Hp, Wp = H + 2, W + 2
    cnt = N * H * W

    # NCHW -> NHWC, zero-pad channels to Cp and spatial halo, cast to bf16.
    x = jnp.transpose(x_nchw, (0, 2, 3, 1)).astype(jnp.float32)
    xp = jnp.pad(x, ((0, 0), (1, 1), (1, 1), (0, Cp - C))).astype(jnp.bfloat16)

    def prep_w(w):                                # OIHW -> (9*Cp, Cp), bf16
        w = jnp.transpose(w, (2, 3, 1, 0)).astype(jnp.float32)   # (ky,kx,ci,co)
        w = jnp.pad(w, ((0, 0), (0, 0), (0, Cp - C), (0, Cp - C)))
        return w.reshape(9 * Cp, Cp).astype(jnp.bfloat16)

    w1p, w2p = prep_w(w1_oihw), prep_w(w2_oihw)
    padc = lambda v: jnp.pad(v.astype(jnp.float32), (0, Cp - C))
    g1p, b1p, g2p, b2p = padc(g1), padc(b1), padc(g2), padc(b2)

    def affine(stats, g, b):   # fold biased batch stats into scale/shift (f32)
        mean = jnp.sum(stats[:, 0, :], axis=0) / cnt
        var = jnp.maximum(jnp.sum(stats[:, 1, :], axis=0) / cnt - mean * mean, 0.0)
        scale = g * jax.lax.rsqrt(var + EPS)
        return jnp.stack([scale, b - mean * scale], axis=0)          # (2, Cp)

    params = pltpu.CompilerParams(dimension_semantics=("parallel",))
    img_in = pl.BlockSpec((1, Hp, Wp, Cp), lambda i: (i, 0, 0, 0))
    img_out = pl.BlockSpec((1, H, W, Cp), lambda i: (i, 0, 0, 0))
    st_out = pl.BlockSpec((1, 2, Cp), lambda i: (i, 0, 0))
    w_spec = pl.BlockSpec((9 * Cp, Cp), lambda i: (0, 0))
    aff_spec = pl.BlockSpec((2, Cp), lambda i: (0, 0))
    conv_shapes = [jax.ShapeDtypeStruct((N, H, W, Cp), jnp.float32),
                   jax.ShapeDtypeStruct((N, 2, Cp), jnp.float32)]

    # ---- pass 1: conv1 + batch-stat partials -----------------------------
    conv1, stats1 = pl.pallas_call(
        _conv1_kernel, grid=(N,),
        in_specs=[img_in, w_spec], out_specs=[img_out, st_out],
        out_shape=conv_shapes, compiler_params=params,
    )(xp, w1p)
    aff1 = affine(stats1, g1p, b1p)

    # ---- pass 2: BN1 + ReLU + conv2 + batch-stat partials -----------------
    conv2, stats2 = pl.pallas_call(
        _bn_relu_conv2_kernel, grid=(N,),
        in_specs=[img_out, aff_spec, w_spec], out_specs=[img_out, st_out],
        out_shape=conv_shapes,
        scratch_shapes=[pltpu.VMEM((Hp, Wp, Cp), jnp.float32)],
        compiler_params=params,
    )(conv1, aff1, w2p)
    aff2 = affine(stats2, g2p, b2p)

    # ---- pass 3: BN2 + identity residual + final ReLU ---------------------
    out = pl.pallas_call(
        _bn_add_relu_kernel, grid=(N,),
        in_specs=[img_out, img_in, aff_spec], out_specs=img_out,
        out_shape=jax.ShapeDtypeStruct((N, H, W, Cp), jnp.float32),
        compiler_params=params,
    )(conv2, xp, aff2)

    # TODO(synk): BatchNorm running_mean/var buffer updates and the optional
    # downsampling shortcut (stride!=1 / right!=None) are not emitted here.
    return jnp.transpose(out[:, :, :, :C], (0, 3, 1, 2))             # NCHW


# --------------------------------------------------------------------------
# reference & test
# --------------------------------------------------------------------------
def _reference(x, w1, w2, g1, b1, g2, b2):
    """Pure-JAX reference of the PyTorch forward (training-mode BN).
    Conv operands are cast to bf16 with f32 accumulation to mirror the kernel's
    mixed-precision MXU matmuls; BN / residual math stays in f32."""
    def conv(a, w):
        return jax.lax.conv_general_dilated(
            a.astype(jnp.bfloat16), w.astype(jnp.bfloat16),
            window_strides=(1, 1), padding=((1, 1), (1, 1)),
            dimension_numbers=('NCHW', 'OIHW', 'NCHW'),
            preferred_element_type=jnp.float32)

    def bn(a, g, b):
        m = jnp.mean(a, axis=(0, 2, 3), keepdims=True)
        v = jnp.mean((a - m) ** 2, axis=(0, 2, 3), keepdims=True)
        return (a - m) * jax.lax.rsqrt(v + EPS) * g.reshape(1, -1, 1, 1) \
            + b.reshape(1, -1, 1, 1)

    out = jnp.maximum(bn(conv(x, w1), g1, b1), 0.0)
    out = bn(conv(out, w2), g2, b2)
    return jnp.maximum(out + x, 0.0)


if __name__ == "__main__":
    N, C, H, W = 2, 4, 16, 16
    key = jax.random.PRNGKey(0)
    kx_, kw1, kw2, kg1, kb1, kg2, kb2 = jax.random.split(key, 7)

    x = jax.random.normal(kx_, (N, C, H, W), jnp.float32)
    fan_in = C * 9
    w1 = jax.random.uniform(kw1, (C, C, 3, 3), jnp.float32, -1.0, 1.0) / jnp.sqrt(fan_in)
    w2 = jax.random.uniform(kw2, (C, C, 3, 3), jnp.float32, -1.0, 1.0) / jnp.sqrt(fan_in)
    g1 = 1.0 + 0.1 * jax.random.normal(kg1, (C,), jnp.float32)
    b1 = 0.1 * jax.random.normal(kb1, (C,), jnp.float32)
    g2 = 1.0 + 0.1 * jax.random.normal(kg2, (C,), jnp.float32)
    b2 = 0.1 * jax.random.normal(kb2, (C,), jnp.float32)

    out = jax.block_until_ready(residual_block(x, w1, w2, g1, b1, g2, b2))
    ref = jax.block_until_ready(_reference(x, w1, w2, g1, b1, g2, b2))

    assert out.shape == (N, C, H, W) and out.dtype == jnp.float32
    max_err = float(jnp.max(jnp.abs(out - ref)))
    assert jnp.allclose(out, ref, atol=5e-2, rtol=5e-2), f"max abs err = {max_err}"
    print("KERNEL_OK")
</pallas_src>

<mosaic_0001>
module attributes {stable_mosaic.version = 11 : i64} {
  func.func @_conv1_kernel(%arg0: i32, %arg1: memref<1x18x18x128xbf16, #tpu.memory_space<vmem>>, %arg2: memref<1152x128xbf16, #tpu.memory_space<vmem>>, %arg3: memref<1x16x16x128xf32, #tpu.memory_space<vmem>>, %arg4: memref<1x2x128xf32, #tpu.memory_space<vmem>>) attributes {dimension_semantics = [#tpu.dimension_semantics<parallel>], iteration_bounds = array<i64: 2>, scalar_prefetch = 0 : i64, scratch_operands = 0 : i64, tpu.core_type = #tpu.core_type<tc>, window_params = [{transform_indices = @transform_0, window_bounds = array<i64: 1, 18, 18, 128>}, {pipeline_mode = #tpu.pipeline_mode<synchronous>, transform_indices = @transform_1, window_bounds = array<i64: 1152, 128>}, {transform_indices = @transform_2, window_bounds = array<i64: 1, 16, 16, 128>}, {transform_indices = @transform_3, window_bounds = array<i64: 1, 2, 128>}]} {
    %c0 = arith.constant 0 : index
    %c0_0 = arith.constant 0 : index
    %c0_1 = arith.constant 0 : index
    %c0_2 = arith.constant 0 : index
    %0 = vector.load %arg1[%c0, %c0_0, %c0_1, %c0_2] : memref<1x18x18x128xbf16, #tpu.memory_space<vmem>>, vector<1x18x18x128xbf16>
    %1 = vector.shape_cast %0 : vector<1x18x18x128xbf16> to vector<18x18x128xbf16>
    %2 = arith.extf %1 : vector<18x18x128xbf16> to vector<18x18x128xf32>
    %3 = vector.extract_strided_slice %2 {offsets = [0, 0, 0], sizes = [16, 16, 128], strides = [1, 1, 1]} : vector<18x18x128xf32> to vector<16x16x128xf32>
    %4 = vector.shape_cast %3 : vector<16x16x128xf32> to vector<256x128xf32>
    %5 = arith.truncf %4 : vector<256x128xf32> to vector<256x128xbf16>
    %6 = vector.extract_strided_slice %2 {offsets = [0, 1, 0], sizes = [16, 16, 128], strides = [1, 1, 1]} : vector<18x18x128xf32> to vector<16x16x128xf32>
    %7 = vector.shape_cast %6 : vector<16x16x128xf32> to vector<256x128xf32>
    %8 = arith.truncf %7 : vector<256x128xf32> to vector<256x128xbf16>
    %9 = vector.extract_strided_slice %2 {offsets = [0, 2, 0], sizes = [16, 16, 128], strides = [1, 1, 1]} : vector<18x18x128xf32> to vector<16x16x128xf32>
    %10 = vector.shape_cast %9 : vector<16x16x128xf32> to vector<256x128xf32>
    %11 = arith.truncf %10 : vector<256x128xf32> to vector<256x128xbf16>
    %12 = vector.extract_strided_slice %2 {offsets = [1, 0, 0], sizes = [16, 16, 128], strides = [1, 1, 1]} : vector<18x18x128xf32> to vector<16x16x128xf32>
    %13 = vector.shape_cast %12 : vector<16x16x128xf32> to vector<256x128xf32>
    %14 = arith.truncf %13 : vector<256x128xf32> to vector<256x128xbf16>
    %15 = vector.extract_strided_slice %2 {offsets = [1, 1, 0], sizes = [16, 16, 128], strides = [1, 1, 1]} : vector<18x18x128xf32> to vector<16x16x128xf32>
    %16 = vector.shape_cast %15 : vector<16x16x128xf32> to vector<256x128xf32>
    %17 = arith.truncf %16 : vector<256x128xf32> to vector<256x128xbf16>
    %18 = vector.extract_strided_slice %2 {offsets = [1, 2, 0], sizes = [16, 16, 128], strides = [1, 1, 1]} : vector<18x18x128xf32> to vector<16x16x128xf32>
    %19 = vector.shape_cast %18 : vector<16x16x128xf32> to vector<256x128xf32>
    %20 = arith.truncf %19 : vector<256x128xf32> to vector<256x128xbf16>
    %21 = vector.extract_strided_slice %2 {offsets = [2, 0, 0], sizes = [16, 16, 128], strides = [1, 1, 1]} : vector<18x18x128xf32> to vector<16x16x128xf32>
    %22 = vector.shape_cast %21 : vector<16x16x128xf32> to vector<256x128xf32>
    %23 = arith.truncf %22 : vector<256x128xf32> to vector<256x128xbf16>
    %24 = vector.extract_strided_slice %2 {offsets = [2, 1, 0], sizes = [16, 16, 128], strides = [1, 1, 1]} : vector<18x18x128xf32> to vector<16x16x128xf32>
    %25 = vector.shape_cast %24 : vector<16x16x128xf32> to vector<256x128xf32>
    %26 = arith.truncf %25 : vector<256x128xf32> to vector<256x128xbf16>
    %27 = vector.extract_strided_slice %2 {offsets = [2, 2, 0], sizes = [16, 16, 128], strides = [1, 1, 1]} : vector<18x18x128xf32> to vector<16x16x128xf32>
    %28 = vector.shape_cast %27 : vector<16x16x128xf32> to vector<256x128xf32>
    %29 = arith.truncf %28 : vector<256x128xf32> to vector<256x128xbf16>
    %30 = tpu.concatenate %5, %8, %11, %14, %17, %20, %23, %26, %29 in 1 : vector<256x128xbf16>, vector<256x128xbf16>, vector<256x128xbf16>, vector<256x128xbf16>, vector<256x128xbf16>, vector<256x128xbf16>, vector<256x128xbf16>, vector<256x128xbf16>, vector<256x128xbf16> -> vector<256x1152xbf16>
    %c0_3 = arith.constant 0 : index
    %c0_4 = arith.constant 0 : index
    %31 = vector.load %arg2[%c0_3, %c0_4] : memref<1152x128xbf16, #tpu.memory_space<vmem>>, vector<1152x128xbf16>
    %cst = arith.constant dense<0.000000e+00> : vector<256x128xf32>
    %32 = tpu.matmul %30, %31, %cst {dimension_numbers = #tpu.dot_dimension_numbers<[1], [0], [0], [1], [0, 0, 1, 1], [], []>} : vector<256x1152xbf16>, vector<1152x128xbf16>, vector<256x128xf32> -> vector<256x128xf32>
    %33 = vector.shape_cast %32 : vector<256x128xf32> to vector<16x16x128xf32>
    %c0_5 = arith.constant 0 : index
    %c0_6 = arith.constant 0 : index
    %c0_7 = arith.constant 0 : index
    %c0_8 = arith.constant 0 : index
    %34 = vector.load %arg3[%c0_5, %c0_6, %c0_7, %c0_8] : memref<1x16x16x128xf32, #tpu.memory_space<vmem>>, vector<1x16x16x128xf32>
    %35 = vector.shape_cast %34 : vector<1x16x16x128xf32> to vector<16x16x128xf32>
    %36 = vector.shape_cast %33 : vector<16x16x128xf32> to vector<1x16x16x128xf32>
    tpu.vector_store %arg3[%c0_5, %c0_6, %c0_7, %c0_8], %36 {strides = array<i32>} : memref<1x16x16x128xf32, #tpu.memory_space<vmem>>, vector<1x16x16x128xf32>,
    %cst_9 = arith.constant dense<0.000000e+00> : vector<128xf32>
    %37 = vector.multi_reduction <add>, %32, %cst_9 [0] : vector<256x128xf32> to vector<128xf32>
    %38 = vector.shape_cast %37 : vector<128xf32> to vector<1x128xf32>
    %39 = arith.mulf %32, %32 : vector<256x128xf32>
    %cst_10 = arith.constant dense<0.000000e+00> : vector<128xf32>
    %40 = vector.multi_reduction <add>, %39, %cst_10 [0] : vector<256x128xf32> to vector<128xf32>
    %41 = vector.shape_cast %40 : vector<128xf32> to vector<1x128xf32>
    %42 = tpu.concatenate %38, %41 in 0 : vector<1x128xf32>, vector<1x128xf32> -> vector<2x128xf32>
    %c0_11 = arith.constant 0 : index
    %c0_12 = arith.constant 0 : index
    %c0_13 = arith.constant 0 : index
    %43 = vector.load %arg4[%c0_11, %c0_12, %c0_13] : memref<1x2x128xf32, #tpu.memory_space<vmem>>, vector<1x2x128xf32>
    %44 = vector.shape_cast %43 : vector<1x2x128xf32> to vector<2x128xf32>
    %45 = vector.shape_cast %42 : vector<2x128xf32> to vector<1x2x128xf32>
    tpu.vector_store %arg4[%c0_11, %c0_12, %c0_13], %45 {strides = array<i32>} : memref<1x2x128xf32, #tpu.memory_space<vmem>>, vector<1x2x128xf32>,
    return
  }
  func.func @transform_0(%arg0: i32) -> (i32, i32, i32, i32) {
    %c0_i32 = arith.constant 0 : i32
    %c0_i32_0 = arith.constant 0 : i32
    %c0_i32_1 = arith.constant 0 : i32
    %c0_i32_2 = arith.constant 0 : i32
    return %arg0, %c0_i32, %c0_i32_0, %c0_i32_1 : i32, i32, i32, i32
  }
  func.func @transform_1(%arg0: i32) -> (i32, i32) {
    %c0_i32 = arith.constant 0 : i32
    %c0_i32_0 = arith.constant 0 : i32
    %c0_i32_1 = arith.constant 0 : i32
    return %c0_i32, %c0_i32_0 : i32, i32
  }
  func.func @transform_2(%arg0: i32) -> (i32, i32, i32, i32) {
    %c0_i32 = arith.constant 0 : i32
    %c0_i32_0 = arith.constant 0 : i32
    %c0_i32_1 = arith.constant 0 : i32
    %c0_i32_2 = arith.constant 0 : i32
    return %arg0, %c0_i32, %c0_i32_0, %c0_i32_1 : i32, i32, i32, i32
  }
  func.func @transform_3(%arg0: i32) -> (i32, i32, i32) {
    %c0_i32 = arith.constant 0 : i32
    %c0_i32_0 = arith.constant 0 : i32
    %c0_i32_1 = arith.constant 0 : i32
    return %arg0, %c0_i32, %c0_i32_0 : i32, i32, i32
  }
}

module attributes {stable_mosaic.version = 11 : i64} {
  func.func @_bn_add_relu_kernel(%arg0: i32, %arg1: memref<1x16x16x128xf32, #tpu.memory_space<vmem>>, %arg2: memref<1x18x18x128xbf16, #tpu.memory_space<vmem>>, %arg3: memref<2x128xf32, #tpu.memory_space<vmem>>, %arg4: memref<1x16x16x128xf32, #tpu.memory_space<vmem>>) attributes {dimension_semantics = [#tpu.dimension_semantics<parallel>], iteration_bounds = array<i64: 2>, scalar_prefetch = 0 : i64, scratch_operands = 0 : i64, tpu.core_type = #tpu.core_type<tc>, window_params = [{transform_indices = @transform_0, window_bounds = array<i64: 1, 16, 16, 128>}, {transform_indices = @transform_1, window_bounds = array<i64: 1, 18, 18, 128>}, {pipeline_mode = #tpu.pipeline_mode<synchronous>, transform_indices = @transform_2, window_bounds = array<i64: 2, 128>}, {transform_indices = @transform_3, window_bounds = array<i64: 1, 16, 16, 128>}]} {
    %c0 = arith.constant 0 : index
    %c0_0 = arith.constant 0 : index
    %c0_1 = arith.constant 0 : index
    %c0_2 = arith.constant 0 : index
    %0 = vector.load %arg1[%c0, %c0_0, %c0_1, %c0_2] : memref<1x16x16x128xf32, #tpu.memory_space<vmem>>, vector<1x16x16x128xf32>
    %1 = vector.shape_cast %0 : vector<1x16x16x128xf32> to vector<16x16x128xf32>
    %2 = vector.shape_cast %1 : vector<16x16x128xf32> to vector<256x128xf32>
    %c0_3 = arith.constant 0 : index
    %c0_4 = arith.constant 0 : index
    %c0_5 = arith.constant 0 : index
    %c0_6 = arith.constant 0 : index
    %3 = vector.load %arg2[%c0_3, %c0_4, %c0_5, %c0_6] : memref<1x18x18x128xbf16, #tpu.memory_space<vmem>>, vector<1x18x18x128xbf16>
    %4 = vector.shape_cast %3 : vector<1x18x18x128xbf16> to vector<18x18x128xbf16>
    %5 = arith.extf %4 : vector<18x18x128xbf16> to vector<18x18x128xf32>
    %6 = vector.extract_strided_slice %5 {offsets = [1, 1, 0], sizes = [16, 16, 128], strides = [1, 1, 1]} : vector<18x18x128xf32> to vector<16x16x128xf32>
    %7 = vector.shape_cast %6 : vector<16x16x128xf32> to vector<256x128xf32>
    %c0_7 = arith.constant 0 : index
    %c0_8 = arith.constant 0 : index
    %8 = vector.load %arg3[%c0_7, %c0_8] : memref<2x128xf32, #tpu.memory_space<vmem>>, vector<1x128xf32>
    %9 = vector.broadcast %8 : vector<1x128xf32> to vector<256x128xf32>
    %10 = arith.mulf %2, %9 : vector<256x128xf32>
    %c1 = arith.constant 1 : index
    %c0_9 = arith.constant 0 : index
    %11 = vector.load %arg3[%c1, %c0_9] : memref<2x128xf32, #tpu.memory_space<vmem>>, vector<1x128xf32>
    %12 = vector.broadcast %11 : vector<1x128xf32> to vector<256x128xf32>
    %13 = arith.addf %10, %12 : vector<256x128xf32>
    %14 = arith.addf %13, %7 : vector<256x128xf32>
    %cst = arith.constant 0.000000e+00 : f32
    %15 = vector.broadcast %cst : f32 to vector<256x128xf32>
    %16 = arith.maximumf %14, %15 : vector<256x128xf32>
    %17 = vector.shape_cast %16 : vector<256x128xf32> to vector<16x16x128xf32>
    %c0_10 = arith.constant 0 : index
    %c0_11 = arith.constant 0 : index
    %c0_12 = arith.constant 0 : index
    %c0_13 = arith.constant 0 : index
    %18 = vector.load %arg4[%c0_10, %c0_11, %c0_12, %c0_13] : memref<1x16x16x128xf32, #tpu.memory_space<vmem>>, vector<1x16x16x128xf32>
    %19 = vector.shape_cast %18 : vector<1x16x16x128xf32> to vector<16x16x128xf32>
    %20 = vector.shape_cast %17 : vector<16x16x128xf32> to vector<1x16x16x128xf32>
    tpu.vector_store %arg4[%c0_10, %c0_11, %c0_12, %c0_13], %20 {strides = array<i32>} : memref<1x16x16x128xf32, #tpu.memory_space<vmem>>, vector<1x16x16x128xf32>,
    return
  }
  func.func @transform_0(%arg0: i32) -> (i32, i32, i32, i32) {
    %c0_i32 = arith.constant 0 : i32
    %c0_i32_0 = arith.constant 0 : i32
    %c0_i32_1 = arith.constant 0 : i32
    %c0_i32_2 = arith.constant 0 : i32
    return %arg0, %c0_i32, %c0_i32_0, %c0_i32_1 : i32, i32, i32, i32
  }
  func.func @transform_1(%arg0: i32) -> (i32, i32, i32, i32) {
    %c0_i32 = arith.constant 0 : i32
    %c0_i32_0 = arith.constant 0 : i32
    %c0_i32_1 = arith.constant 0 : i32
    %c0_i32_2 = arith.constant 0 : i32
    return %arg0, %c0_i32, %c0_i32_0, %c0_i32_1 : i32, i32, i32, i32
  }
  func.func @transform_2(%arg0: i32) -> (i32, i32) {
    %c0_i32 = arith.constant 0 : i32
    %c0_i32_0 = arith.constant 0 : i32
    %c0_i32_1 = arith.constant 0 : i32
    return %c0_i32, %c0_i32_0 : i32, i32
  }
  func.func @transform_3(%arg0: i32) -> (i32, i32, i32, i32) {
    %c0_i32 = arith.constant 0 : i32
    %c0_i32_0 = arith.constant 0 : i32
    %c0_i32_1 = arith.constant 0 : i32
    %c0_i32_2 = arith.constant 0 : i32
    return %arg0, %c0_i32, %c0_i32_0, %c0_i32_1 : i32, i32, i32, i32
  }
}

module attributes {stable_mosaic.version = 11 : i64} {
  func.func @_bn_relu_conv2_kernel(%arg0: i32, %arg1: memref<1x16x16x128xf32, #tpu.memory_space<vmem>>, %arg2: memref<2x128xf32, #tpu.memory_space<vmem>>, %arg3: memref<1152x128xbf16, #tpu.memory_space<vmem>>, %arg4: memref<1x16x16x128xf32, #tpu.memory_space<vmem>>, %arg5: memref<1x2x128xf32, #tpu.memory_space<vmem>>, %arg6: memref<18x18x128xf32, #tpu.memory_space<vmem>>) attributes {dimension_semantics = [#tpu.dimension_semantics<parallel>], iteration_bounds = array<i64: 2>, scalar_prefetch = 0 : i64, scratch_operands = 1 : i64, tpu.core_type = #tpu.core_type<tc>, window_params = [{transform_indices = @transform_0, window_bounds = array<i64: 1, 16, 16, 128>}, {pipeline_mode = #tpu.pipeline_mode<synchronous>, transform_indices = @transform_1, window_bounds = array<i64: 2, 128>}, {pipeline_mode = #tpu.pipeline_mode<synchronous>, transform_indices = @transform_2, window_bounds = array<i64: 1152, 128>}, {transform_indices = @transform_3, window_bounds = array<i64: 1, 16, 16, 128>}, {transform_indices = @transform_4, window_bounds = array<i64: 1, 2, 128>}]} {
    %cst = arith.constant 0.000000e+00 : f32
    %0 = vector.broadcast %cst : f32 to vector<1x18x128xf32>
    %c0 = arith.constant 0 : index
    %c0_0 = arith.constant 0 : index
    %c0_1 = arith.constant 0 : index
    %1 = vector.load %arg6[%c0, %c0_0, %c0_1] : memref<18x18x128xf32, #tpu.memory_space<vmem>>, vector<1x18x128xf32>
    tpu.vector_store %arg6[%c0, %c0_0, %c0_1], %0 {strides = array<i32>} : memref<18x18x128xf32, #tpu.memory_space<vmem>>, vector<1x18x128xf32>,
    %cst_2 = arith.constant 0.000000e+00 : f32
    %2 = vector.broadcast %cst_2 : f32 to vector<1x18x128xf32>
    %c17 = arith.constant 17 : index
    %c0_3 = arith.constant 0 : index
    %c0_4 = arith.constant 0 : index
    %3 = vector.load %arg6[%c17, %c0_3, %c0_4] : memref<18x18x128xf32, #tpu.memory_space<vmem>>, vector<1x18x128xf32>
    tpu.vector_store %arg6[%c17, %c0_3, %c0_4], %2 {strides = array<i32>} : memref<18x18x128xf32, #tpu.memory_space<vmem>>, vector<1x18x128xf32>,
    %cst_5 = arith.constant 0.000000e+00 : f32
    %4 = vector.broadcast %cst_5 : f32 to vector<18x1x128xf32>
    %c0_6 = arith.constant 0 : index
    %c0_7 = arith.constant 0 : index
    %c0_8 = arith.constant 0 : index
    %5 = vector.load %arg6[%c0_6, %c0_7, %c0_8] : memref<18x18x128xf32, #tpu.memory_space<vmem>>, vector<18x1x128xf32>
    tpu.vector_store %arg6[%c0_6, %c0_7, %c0_8], %4 {strides = array<i32>} : memref<18x18x128xf32, #tpu.memory_space<vmem>>, vector<18x1x128xf32>,
    %cst_9 = arith.constant 0.000000e+00 : f32
    %6 = vector.broadcast %cst_9 : f32 to vector<18x1x128xf32>
    %c0_10 = arith.constant 0 : index
    %c17_11 = arith.constant 17 : index
    %c0_12 = arith.constant 0 : index
    %7 = vector.load %arg6[%c0_10, %c17_11, %c0_12] : memref<18x18x128xf32, #tpu.memory_space<vmem>>, vector<18x1x128xf32>
    tpu.vector_store %arg6[%c0_10, %c17_11, %c0_12], %6 {strides = array<i32>} : memref<18x18x128xf32, #tpu.memory_space<vmem>>, vector<18x1x128xf32>,
    %c0_13 = arith.constant 0 : index
    %c0_14 = arith.constant 0 : index
    %c0_15 = arith.constant 0 : index
    %c0_16 = arith.constant 0 : index
    %8 = vector.load %arg1[%c0_13, %c0_14, %c0_15, %c0_16] : memref<1x16x16x128xf32, #tpu.memory_space<vmem>>, vector<1x16x16x128xf32>
    %9 = vector.shape_cast %8 : vector<1x16x16x128xf32> to vector<16x16x128xf32>
    %10 = vector.shape_cast %9 : vector<16x16x128xf32> to vector<256x128xf32>
    %c0_17 = arith.constant 0 : index
    %c0_18 = arith.constant 0 : index
    %11 = vector.load %arg2[%c0_17, %c0_18] : memref<2x128xf32, #tpu.memory_space<vmem>>, vector<1x128xf32>
    %12 = vector.broadcast %11 : vector<1x128xf32> to vector<256x128xf32>
    %13 = arith.mulf %10, %12 : vector<256x128xf32>
    %c1 = arith.constant 1 : index
    %c0_19 = arith.constant 0 : index
    %14 = vector.load %arg2[%c1, %c0_19] : memref<2x128xf32, #tpu.memory_space<vmem>>, vector<1x128xf32>
    %15 = vector.broadcast %14 : vector<1x128xf32> to vector<256x128xf32>
    %16 = arith.addf %13, %15 : vector<256x128xf32>
    %cst_20 = arith.constant 0.000000e+00 : f32
    %17 = vector.broadcast %cst_20 : f32 to vector<256x128xf32>
    %18 = arith.maximumf %16, %17 : vector<256x128xf32>
    %19 = vector.shape_cast %18 : vector<256x128xf32> to vector<16x16x128xf32>
    %c1_21 = arith.constant 1 : index
    %c1_22 = arith.constant 1 : index
    %c0_23 = arith.constant 0 : index
    %20 = vector.load %arg6[%c1_21, %c1_22, %c0_23] : memref<18x18x128xf32, #tpu.memory_space<vmem>>, vector<16x16x128xf32>
    tpu.vector_store %arg6[%c1_21, %c1_22, %c0_23], %19 {strides = array<i32>} : memref<18x18x128xf32, #tpu.memory_space<vmem>>, vector<16x16x128xf32>,
    %c0_24 = arith.constant 0 : index
    %c0_25 = arith.constant 0 : index
    %c0_26 = arith.constant 0 : index
    %21 = vector.load %arg6[%c0_24, %c0_25, %c0_26] : memref<18x18x128xf32, #tpu.memory_space<vmem>>, vector<18x18x128xf32>
    %22 = vector.extract_strided_slice %21 {offsets = [0, 0, 0], sizes = [16, 16, 128], strides = [1, 1, 1]} : vector<18x18x128xf32> to vector<16x16x128xf32>
    %23 = vector.shape_cast %22 : vector<16x16x128xf32> to vector<256x128xf32>
    %24 = arith.truncf %23 : vector<256x128xf32> to vector<256x128xbf16>
    %25 = vector.extract_strided_slice %21 {offsets = [0, 1, 0], sizes = [16, 16, 128], strides = [1, 1, 1]} : vector<18x18x128xf32> to vector<16x16x128xf32>
    %26 = vector.shape_cast %25 : vector<16x16x128xf32> to vector<256x128xf32>
    %27 = arith.truncf %26 : vector<256x128xf32> to vector<256x128xbf16>
    %28 = vector.extract_strided_slice %21 {offsets = [0, 2, 0], sizes = [16, 16, 128], strides = [1, 1, 1]} : vector<18x18x128xf32> to vector<16x16x128xf32>
    %29 = vector.shape_cast %28 : vector<16x16x128xf32> to vector<256x128xf32>
    %30 = arith.truncf %29 : vector<256x128xf32> to vector<256x128xbf16>
    %31 = vector.extract_strided_slice %21 {offsets = [1, 0, 0], sizes = [16, 16, 128], strides = [1, 1, 1]} : vector<18x18x128xf32> to vector<16x16x128xf32>
    %32 = vector.shape_cast %31 : vector<16x16x128xf32> to vector<256x128xf32>
    %33 = arith.truncf %32 : vector<256x128xf32> to vector<256x128xbf16>
    %34 = vector.extract_strided_slice %21 {offsets = [1, 1, 0], sizes = [16, 16, 128], strides = [1, 1, 1]} : vector<18x18x128xf32> to vector<16x16x128xf32>
    %35 = vector.shape_cast %34 : vector<16x16x128xf32> to vector<256x128xf32>
    %36 = arith.truncf %35 : vector<256x128xf32> to vector<256x128xbf16>
    %37 = vector.extract_strided_slice %21 {offsets = [1, 2, 0], sizes = [16, 16, 128], strides = [1, 1, 1]} : vector<18x18x128xf32> to vector<16x16x128xf32>
    %38 = vector.shape_cast %37 : vector<16x16x128xf32> to vector<256x128xf32>
    %39 = arith.truncf %38 : vector<256x128xf32> to vector<256x128xbf16>
    %40 = vector.extract_strided_slice %21 {offsets = [2, 0, 0], sizes = [16, 16, 128], strides = [1, 1, 1]} : vector<18x18x128xf32> to vector<16x16x128xf32>
    %41 = vector.shape_cast %40 : vector<16x16x128xf32> to vector<256x128xf32>
    %42 = arith.truncf %41 : vector<256x128xf32> to vector<256x128xbf16>
    %43 = vector.extract_strided_slice %21 {offsets = [2, 1, 0], sizes = [16, 16, 128], strides = [1, 1, 1]} : vector<18x18x128xf32> to vector<16x16x128xf32>
    %44 = vector.shape_cast %43 : vector<16x16x128xf32> to vector<256x128xf32>
    %45 = arith.truncf %44 : vector<256x128xf32> to vector<256x128xbf16>
    %46 = vector.extract_strided_slice %21 {offsets = [2, 2, 0], sizes = [16, 16, 128], strides = [1, 1, 1]} : vector<18x18x128xf32> to vector<16x16x128xf32>
    %47 = vector.shape_cast %46 : vector<16x16x128xf32> to vector<256x128xf32>
    %48 = arith.truncf %47 : vector<256x128xf32> to vector<256x128xbf16>
    %49 = tpu.concatenate %24, %27, %30, %33, %36, %39, %42, %45, %48 in 1 : vector<256x128xbf16>, vector<256x128xbf16>, vector<256x128xbf16>, vector<256x128xbf16>, vector<256x128xbf16>, vector<256x128xbf16>, vector<256x128xbf16>, vector<256x128xbf16>, vector<256x128xbf16> -> vector<256x1152xbf16>
    %c0_27 = arith.constant 0 : index
    %c0_28 = arith.constant 0 : index
    %50 = vector.load %arg3[%c0_27, %c0_28] : memref<1152x128xbf16, #tpu.memory_space<vmem>>, vector<1152x128xbf16>
    %cst_29 = arith.constant dense<0.000000e+00> : vector<256x128xf32>
    %51 = tpu.matmul %49, %50, %cst_29 {dimension_numbers = #tpu.dot_dimension_numbers<[1], [0], [0], [1], [0, 0, 1, 1], [], []>} : vector<256x1152xbf16>, vector<1152x128xbf16>, vector<256x128xf32> -> vector<256x128xf32>
    %52 = vector.shape_cast %51 : vector<256x128xf32> to vector<16x16x128xf32>
    %c0_30 = arith.constant 0 : index
    %c0_31 = arith.constant 0 : index
    %c0_32 = arith.constant 0 : index
    %c0_33 = arith.constant 0 : index
    %53 = vector.load %arg4[%c0_30, %c0_31, %c0_32, %c0_33] : memref<1x16x16x128xf32, #tpu.memory_space<vmem>>, vector<1x16x16x128xf32>
    %54 = vector.shape_cast %53 : vector<1x16x16x128xf32> to vector<16x16x128xf32>
    %55 = vector.shape_cast %52 : vector<16x16x128xf32> to vector<1x16x16x128xf32>
    tpu.vector_store %arg4[%c0_30, %c0_31, %c0_32, %c0_33], %55 {strides = array<i32>} : memref<1x16x16x128xf32, #tpu.memory_space<vmem>>, vector<1x16x16x128xf32>,
    %cst_34 = arith.constant dense<0.000000e+00> : vector<128xf32>
    %56 = vector.multi_reduction <add>, %51, %cst_34 [0] : vector<256x128xf32> to vector<128xf32>
    %57 = vector.shape_cast %56 : vector<128xf32> to vector<1x128xf32>
    %58 = arith.mulf %51, %51 : vector<256x128xf32>
    %cst_35 = arith.constant dense<0.000000e+00> : vector<128xf32>
    %59 = vector.multi_reduction <add>, %58, %cst_35 [0] : vector<256x128xf32> to vector<128xf32>
    %60 = vector.shape_cast %59 : vector<128xf32> to vector<1x128xf32>
    %61 = tpu.concatenate %57, %60 in 0 : vector<1x128xf32>, vector<1x128xf32> -> vector<2x128xf32>
    %c0_36 = arith.constant 0 : index
    %c0_37 = arith.constant 0 : index
    %c0_38 = arith.constant 0 : index
    %62 = vector.load %arg5[%c0_36, %c0_37, %c0_38] : memref<1x2x128xf32, #tpu.memory_space<vmem>>, vector<1x2x128xf32>
    %63 = vector.shape_cast %62 : vector<1x2x128xf32> to vector<2x128xf32>
    %64 = vector.shape_cast %61 : vector<2x128xf32> to vector<1x2x128xf32>
    tpu.vector_store %arg5[%c0_36, %c0_37, %c0_38], %64 {strides = array<i32>} : memref<1x2x128xf32, #tpu.memory_space<vmem>>, vector<1x2x128xf32>,
    return
  }
  func.func @transform_0(%arg0: i32) -> (i32, i32, i32, i32) {
    %c0_i32 = arith.constant 0 : i32
    %c0_i32_0 = arith.constant 0 : i32
    %c0_i32_1 = arith.constant 0 : i32
    %c0_i32_2 = arith.constant 0 : i32
    return %arg0, %c0_i32, %c0_i32_0, %c0_i32_1 : i32, i32, i32, i32
  }
  func.func @transform_1(%arg0: i32) -> (i32, i32) {
    %c0_i32 = arith.constant 0 : i32
    %c0_i32_0 = arith.constant 0 : i32
    %c0_i32_1 = arith.constant 0 : i32
    return %c0_i32, %c0_i32_0 : i32, i32
  }
  func.func @transform_2(%arg0: i32) -> (i32, i32) {
    %c0_i32 = arith.constant 0 : i32
    %c0_i32_0 = arith.constant 0 : i32
    %c0_i32_1 = arith.constant 0 : i32
    return %c0_i32, %c0_i32_0 : i32, i32
  }
  func.func @transform_3(%arg0: i32) -> (i32, i32, i32, i32) {
    %c0_i32 = arith.constant 0 : i32
    %c0_i32_0 = arith.constant 0 : i32
    %c0_i32_1 = arith.constant 0 : i32
    %c0_i32_2 = arith.constant 0 : i32
    return %arg0, %c0_i32, %c0_i32_0, %c0_i32_1 : i32, i32, i32, i32
  }
  func.func @transform_4(%arg0: i32) -> (i32, i32, i32) {
    %c0_i32 = arith.constant 0 : i32
    %c0_i32_0 = arith.constant 0 : i32
    %c0_i32_1 = arith.constant 0 : i32
    return %arg0, %c0_i32, %c0_i32_0 : i32, i32, i32
  }
}

</mosaic_0001>

<bundles_post_ra>
// kernel: residual_block.5
= control target key start
LH: loop header
LB: loop body
LE: loop exit
PB: predicated region body
PF: predicated region fallthrough
CT: control target
= control target key end

     0   :  { %s804_s12 = smov 0   ;;  %s1040_s0 = inlined_call_operand.vmem [shape: f32[2,16,16,128], index: 0, kind: input, shape index: {}]   ;;  %s1041_s1 = inlined_call_operand.vmem [shape: bf16[2,18,18,128], index: 1, kind: input, shape index: {}]   ;;  %s1042_s2 = inlined_call_operand.vmem [shape: f32[2,128], index: 2, kind: input, shape index: {}]   ;;  %s1043_s3 = inlined_call_operand.vmem [shape: f32[2,16,16,128], index: 3, kind: output, shape index: {}]  }
   0x1 LB: > { %s711_s13 = sadd.s32 4294967295, %s782_s12   ;;  %p715_p0 = scmp.ge.s32.totalorder %s782_s12, 1  ;;  %s782_s12 = sphi %s804_s12, %s13_s12  }
   0x2   : > { %p147_p1 = scmp.lt.s32.totalorder %s782_s12, 3 }
   0x4   : > { %p148_p2 = pnand %p715_p0, %p147_p1 }
   0x5   : > { %p176_p3 = scmp.lt.s32.totalorder (!%p148_p2), %s711_s13, 1 }
   0x6   : > { %151 = sbr.rel (%p148_p2) target bundleno = 85 (0x55), region = 32 }
   0xb   : > { %s1045_s13 = smov (!%p176_p3, %s711_s13), 1  ;;  %v817_v0 = vld [vmem:[%s1042_s2] ss:$0 sm:$0xff]  ;;  %v831_v1 = vld [vmem:[%s1042_s2 + $0x1] ss:$0 sm:$0xff]  ;;  %vm367_vm0 = vcmask 1046528  }
   0xc   : > { %s723_s16 = sshll.u32 %s1045_s13, 8  ;;  %s765_s17 = smul.u32 216, %s1045_s13 }
   0xd   : > { %s826_s20 = scalar_lea.vmem %s1040_s0, %s723_s16  ;;  %s865_s28 = scalar_lea.vmem %s1043_s3, %s723_s16 }
   0xe   : > { %s836_s25 = scalar_lea.vmem %s1041_s1, %s765_s17  ;;  %v191_v2 = vld [vmem:[%s826_s20] sm:$0xff]  ;;  %v192_v3 = vld [vmem:[%s826_s20 + $0x8] sm:$0xff]  ;;  %v193_v4 = vld [vmem:[%s826_s20 + $0x10] sm:$0xff] }
   0xf   : > { %v223_v5 = vld [vmem:[%s836_s25 + $0xc] sm:$0xff]   ;;  %v482_v6 = vmul.f32 %v817_v0, %v191_v2  ;;  %v225_v7 = vld [vmem:[%s836_s25 + $0x14] sm:$0x1]  ;;  %v483_v8 = vmul.f32 %v817_v0, %v192_v3  ;;  %v757_v9 = vld [vmem:[%s836_s25 + $0x18] sm:$0xff]   ;;  %v484_v10 = vmul.f32 %v817_v0, %v193_v4 }
  0x10   : > { %v271_v11 = vunpack.c.l.bf16 %v223_v5  ;;  %v272_v12 = vunpack.c.h.bf16 %v223_v5  ;;  %v273_v13 = vunpack.c.l.bf16 %v225_v7  ;;  %v727_v14 = vunpack.c.l.bf16 %v757_v9  ;;  %v194_v15 = vld [vmem:[%s826_s20 + $0x18] sm:$0xff]  ;;  %v228_v16 = vld [vmem:[%s836_s25 + $0x20] sm:$0x1]  ;;  %v229_v22 = vld [vmem:[%s836_s25 + $0x24] sm:$0xff]  }
  0x11   : > { %v516_v17 = vadd.f32 %v831_v1, %v482_v6  ;;  %v517_v18 = vadd.f32 %v831_v1, %v483_v8  ;;  %v728_v19 = vunpack.c.h.bf16 %v757_v9  ;;  %v518_v20 = vadd.f32 %v831_v1, %v484_v10  ;;  %v195_v21 = vld [vmem:[%s826_s20 + $0x20] sm:$0xff]  ;;  %v231_v39 = vld [vmem:[%s836_s25 + $0x2c] sm:$0x1]  ;;  %v758_v45 = vld [vmem:[%s836_s25 + $0x30] sm:$0xff]  }
  0x12   : > { %v368_v23 = vrot.slane %v271_v11, 1  ;;  %v369_v24 = vrot.slane %v272_v12, 1  ;;  %v371_v25 = vrot.slane %v273_v13, 1  ;;  %v373_v26 = vrot.slane %v727_v14, 1  ;;  %v196_v44 = vld [vmem:[%s826_s20 + $0x28] sm:$0xff]  ;;  %v197_v50 = vld [vmem:[%s826_s20 + $0x30] sm:$0xff] }
  0x13   : > { %v374_v27 = vrot.slane %v728_v19, 1  ;;  %v276_v28 = vunpack.c.l.bf16 %v228_v16  ;;  %v485_v29 = vmul.f32 %v817_v0, %v194_v15  ;;  %v277_v30 = vunpack.c.l.bf16 %v229_v22  ;;  %v234_v51 = vld [vmem:[%s836_s25 + $0x38] sm:$0x1]  ;;  %v235_v3 = vld [vmem:[%s836_s25 + $0x3c] sm:$0xff]   ;;  %v237_v13 = vld [vmem:[%s836_s25 + $0x44] sm:$0x1] }
  0x14   : > { %v370_v31 = vsel %vm367_vm0, %v368_v23, %v369_v24  ;;  %v372_v32 = vsel %vm367_vm0, %v369_v24, %v371_v25  ;;  %v278_v33 = vunpack.c.h.bf16 %v229_v22  ;;  %v486_v34 = vmul.f32 %v817_v0, %v195_v21  ;;  %v198_v60 = vld [vmem:[%s826_s20 + $0x38] sm:$0xff]  ;;  %v199_v8 = vld [vmem:[%s826_s20 + $0x40] sm:$0xff]  ;;  %v759_v23 = vld [vmem:[%s836_s25 + $0x48] sm:$0xff]  }
  0x15   : > { %v548_v35 = vadd.f32 %v516_v17, %v370_v31  ;;  %v549_v36 = vadd.f32 %v517_v18, %v372_v32  ;;  %v375_v37 = vsel %vm367_vm0, %v373_v26, %v374_v27  ;;  %v376_v38 = vrot.slane %v276_v28, 1  ;;  %v200_v18 = vld [vmem:[%s826_s20 + $0x48] sm:$0xff]  ;;  %v201_v28 = vld [vmem:[%s826_s20 + $0x50] sm:$0xff] }
  0x16   : > { %v550_v40 = vadd.f32 %v518_v20, %v375_v37  ;;  %v519_v41 = vadd.f32 %v831_v1, %v485_v29  ;;  %v378_v42 = vrot.slane %v277_v30, 1  ;;  %v379_v43 = vrot.slane %v278_v33, 1  ;;  %v240_v33 = vld [vmem:[%s836_s25 + $0x50] sm:$0x1] }
  0x17   : > { %v580_v46 = vmax.f32 %v548_v35, 0.0  ;;  %v581_v47 = vmax.f32 %v549_v36, 0.0  ;;  %v377_v48 = vsel %vm367_vm0, %v374_v27, %v376_v38  ;;  %v520_v49 = vadd.f32 %v831_v1, %v486_v34  ;;  %v202_v38 = vld [vmem:[%s826_s20 + $0x58] sm:$0xff] }
  0x18   : > { %v582_v52 = vmax.f32 %v550_v40, 0.0  ;;  %v551_v53 = vadd.f32 %v519_v41, %v377_v48  ;;  %v380_v54 = vsel %vm367_vm0, %v378_v42, %v379_v43  ;;  %v279_v55 = vunpack.c.l.bf16 %v231_v39  ;;  %v203_v48 = vld [vmem:[%s826_s20 + $0x60] sm:$0xff] }
  0x19   : > { %612 = vst [vmem:[%s865_s28] sm:$0xff] %v580_v46  ;;  %v552_v56 = vadd.f32 %v520_v49, %v380_v54  ;;  %v487_v57 = vmul.f32 %v817_v0, %v196_v44  ;;  %v731_v58 = vunpack.c.l.bf16 %v758_v45  ;;  %v732_v59 = vunpack.c.h.bf16 %v758_v45 }
  0x1a   : > { %613 = vst [vmem:[%s865_s28 + $0x8] sm:$0xff] %v581_v47  ;;  %v583_v61 = vmax.f32 %v551_v53, 0.0  ;;  %v381_v62 = vrot.slane %v279_v55, 1  ;;  %v488_v63 = vmul.f32 %v817_v0, %v197_v50  ;;  %v282_v2 = vunpack.c.l.bf16 %v234_v51  ;;  %v243_v53 = vld [vmem:[%s836_s25 + $0x5c] sm:$0x1] }
  0x1b   : > { %614 = vst [vmem:[%s865_s28 + $0x10] sm:$0xff] %v582_v52  ;;  %v584_v4 = vmax.f32 %v552_v56, 0.0  ;;  %v521_v5 = vadd.f32 %v831_v1, %v487_v57  ;;  %v383_v6 = vrot.slane %v731_v58, 1  ;;  %v384_v7 = vrot.slane %v732_v59, 1  ;;  %v204_v58 = vld [vmem:[%s826_s20 + $0x68] sm:$0xff] }
  0x1c   : > { %615 = vst [vmem:[%s865_s28 + $0x18] sm:$0xff] %v583_v61  ;;  %v382_v9 = vsel %vm367_vm0, %v379_v43, %v381_v62  ;;  %v522_v10 = vadd.f32 %v831_v1, %v488_v63  ;;  %v386_v11 = vrot.slane %v282_v2, 1  ;;  %v489_v12 = vmul.f32 %v817_v0, %v198_v60  ;;  %v241_v43 = vld [vmem:[%s836_s25 + $0x54] sm:$0xff]   ;;  %v760_v63 = vld [vmem:[%s836_s25 + $0x60] sm:$0xff]  }
  0x1d   : > { %616 = vst [vmem:[%s865_s28 + $0x20] sm:$0xff] %v584_v4  ;;  %v553_v14 = vadd.f32 %v521_v5, %v382_v9  ;;  %v385_v15 = vsel %vm367_vm0, %v383_v6, %v384_v7  ;;  %v283_v16 = vunpack.c.l.bf16 %v235_v3  ;;  %v284_v17 = vunpack.c.h.bf16 %v235_v3  ;;  %v205_v6 = vld [vmem:[%s826_s20 + $0x70] sm:$0xff] }
  0x1e   : > { %v554_v19 = vadd.f32 %v522_v10, %v385_v15  ;;  %v387_v20 = vsel %vm367_vm0, %v384_v7, %v386_v11  ;;  %v523_v21 = vadd.f32 %v831_v1, %v489_v12  ;;  %v490_v22 = vmul.f32 %v817_v0, %v199_v8  ;;  %v246_v11 = vld [vmem:[%s836_s25 + $0x68] sm:$0x1] }
  0x1f   : > { %v585_v24 = vmax.f32 %v553_v14, 0.0  ;;  %v388_v25 = vrot.slane %v283_v16, 1  ;;  %v389_v26 = vrot.slane %v284_v17, 1  ;;  %v285_v27 = vunpack.c.l.bf16 %v237_v13  ;;  %v206_v16 = vld [vmem:[%s826_s20 + $0x78] sm:$0xff] }
  0x20   : > { %v586_v29 = vmax.f32 %v554_v19, 0.0  ;;  %v555_v30 = vadd.f32 %v523_v21, %v387_v20  ;;  %v524_v31 = vadd.f32 %v831_v1, %v490_v22  ;;  %v491_v32 = vmul.f32 %v817_v0, %v200_v18  ;;  %v247_v21 = vld [vmem:[%s836_s25 + $0x6c] sm:$0xff]  }
  0x21   : > { %617 = vst [vmem:[%s865_s28 + $0x28] sm:$0xff] %v585_v24  ;;  %v390_v34 = vsel %vm367_vm0, %v388_v25, %v389_v26  ;;  %v391_v35 = vrot.slane %v285_v27, 1  ;;  %v735_v36 = vunpack.c.l.bf16 %v759_v23  ;;  %v736_v37 = vunpack.c.h.bf16 %v759_v23 }
  0x22   : > { %618 = vst [vmem:[%s865_s28 + $0x30] sm:$0xff] %v586_v29  ;;  %v587_v39 = vmax.f32 %v555_v30, 0.0  ;;  %v556_v40 = vadd.f32 %v524_v31, %v390_v34  ;;  %v525_v41 = vadd.f32 %v831_v1, %v491_v32  ;;  %v492_v42 = vmul.f32 %v817_v0, %v201_v28  ;;  %v249_v31 = vld [vmem:[%s836_s25 + $0x74] sm:$0x1] }
  0x23   : > { %v392_v44 = vsel %vm367_vm0, %v389_v26, %v391_v35  ;;  %v393_v45 = vrot.slane %v735_v36, 1  ;;  %v394_v46 = vrot.slane %v736_v37, 1  ;;  %v288_v47 = vunpack.c.l.bf16 %v240_v33  ;;  %v207_v26 = vld [vmem:[%s826_s20 + $0x80] sm:$0xff]  ;;  %v208_v36 = vld [vmem:[%s826_s20 + $0x88] sm:$0xff] }
  0x24   : > { %619 = vst [vmem:[%s865_s28 + $0x38] sm:$0xff] %v587_v39  ;;  %v588_v49 = vmax.f32 %v556_v40, 0.0  ;;  %v557_v50 = vadd.f32 %v525_v41, %v392_v44  ;;  %v526_v51 = vadd.f32 %v831_v1, %v492_v42  ;;  %v493_v52 = vmul.f32 %v817_v0, %v202_v38  ;;  %v761_v41 = vld [vmem:[%s836_s25 + $0x78] sm:$0xff]  }
  0x25   : > { %v395_v54 = vsel %vm367_vm0, %v393_v45, %v394_v46  ;;  %v396_v55 = vrot.slane %v288_v47, 1  ;;  %v289_v56 = vunpack.c.l.bf16 %v241_v43  ;;  %v290_v57 = vunpack.c.h.bf16 %v241_v43 }
  0x26   : > { %620 = vst [vmem:[%s865_s28 + $0x40] sm:$0xff] %v588_v49  ;;  %v589_v59 = vmax.f32 %v557_v50, 0.0  ;;  %v558_v60 = vadd.f32 %v526_v51, %v395_v54  ;;  %v527_v61 = vadd.f32 %v831_v1, %v493_v52  ;;  %v494_v62 = vmul.f32 %v817_v0, %v203_v48  ;;  %v252_v51 = vld [vmem:[%s836_s25 + $0x80] sm:$0x1] }
  0x27   : > { %v397_v2 = vsel %vm367_vm0, %v394_v46, %v396_v55  ;;  %v398_v3 = vrot.slane %v289_v56, 1  ;;  %v399_v4 = vrot.slane %v290_v57, 1  ;;  %v291_v5 = vunpack.c.l.bf16 %v243_v53  ;;  %v209_v46 = vld [vmem:[%s826_s20 + $0x90] sm:$0xff]  ;;  %v210_v56 = vld [vmem:[%s826_s20 + $0x98] sm:$0xff] }
  0x28   : > { %621 = vst [vmem:[%s865_s28 + $0x48] sm:$0xff] %v589_v59  ;;  %v590_v7 = vmax.f32 %v558_v60, 0.0  ;;  %v559_v8 = vadd.f32 %v527_v61, %v397_v2  ;;  %v528_v9 = vadd.f32 %v831_v1, %v494_v62  ;;  %v495_v10 = vmul.f32 %v817_v0, %v204_v58  ;;  %v253_v61 = vld [vmem:[%s836_s25 + $0x84] sm:$0xff]  }
  0x29   : > { %v400_v12 = vsel %vm367_vm0, %v398_v3, %v399_v4  ;;  %v401_v13 = vrot.slane %v291_v5, 1  ;;  %v739_v14 = vunpack.c.l.bf16 %v760_v63  ;;  %v740_v15 = vunpack.c.h.bf16 %v760_v63 }
  0x2a   : > { %622 = vst [vmem:[%s865_s28 + $0x50] sm:$0xff] %v590_v7  ;;  %v591_v17 = vmax.f32 %v559_v8, 0.0  ;;  %v560_v18 = vadd.f32 %v528_v9, %v400_v12  ;;  %v529_v19 = vadd.f32 %v831_v1, %v495_v10  ;;  %v496_v20 = vmul.f32 %v817_v0, %v205_v6  ;;  %v255_v9 = vld [vmem:[%s836_s25 + $0x8c] sm:$0x1] }
  0x2b   : > { %v402_v22 = vsel %vm367_vm0, %v399_v4, %v401_v13  ;;  %v403_v23 = vrot.slane %v739_v14, 1  ;;  %v404_v24 = vrot.slane %v740_v15, 1  ;;  %v294_v25 = vunpack.c.l.bf16 %v246_v11  ;;  %v211_v4 = vld [vmem:[%s826_s20 + $0xa0] sm:$0xff]  ;;  %v212_v14 = vld [vmem:[%s826_s20 + $0xa8] sm:$0xff] }
  0x2c   : > { %623 = vst [vmem:[%s865_s28 + $0x58] sm:$0xff] %v591_v17  ;;  %v592_v27 = vmax.f32 %v560_v18, 0.0  ;;  %v561_v28 = vadd.f32 %v529_v19, %v402_v22  ;;  %v530_v29 = vadd.f32 %v831_v1, %v496_v20  ;;  %v497_v30 = vmul.f32 %v817_v0, %v206_v16  ;;  %v762_v19 = vld [vmem:[%s836_s25 + $0x90] sm:$0xff]  }
  0x2d   : > { %v405_v32 = vsel %vm367_vm0, %v403_v23, %v404_v24  ;;  %v406_v33 = vrot.slane %v294_v25, 1  ;;  %v295_v34 = vunpack.c.l.bf16 %v247_v21  ;;  %v296_v35 = vunpack.c.h.bf16 %v247_v21 }
  0x2e   : > { %624 = vst [vmem:[%s865_s28 + $0x60] sm:$0xff] %v592_v27  ;;  %v593_v37 = vmax.f32 %v561_v28, 0.0  ;;  %v562_v38 = vadd.f32 %v530_v29, %v405_v32  ;;  %v531_v39 = vadd.f32 %v831_v1, %v497_v30  ;;  %v498_v40 = vmul.f32 %v817_v0, %v207_v26  ;;  %v258_v29 = vld [vmem:[%s836_s25 + $0x98] sm:$0x1] }
  0x2f   : > { %v407_v42 = vsel %vm367_vm0, %v404_v24, %v406_v33  ;;  %v408_v43 = vrot.slane %v295_v34, 1  ;;  %v409_v44 = vrot.slane %v296_v35, 1  ;;  %v297_v45 = vunpack.c.l.bf16 %v249_v31  ;;  %v213_v24 = vld [vmem:[%s826_s20 + $0xb0] sm:$0xff]  ;;  %v214_v34 = vld [vmem:[%s826_s20 + $0xb8] sm:$0xff] }
  0x30   : > { %625 = vst [vmem:[%s865_s28 + $0x68] sm:$0xff] %v593_v37  ;;  %v594_v47 = vmax.f32 %v562_v38, 0.0  ;;  %v563_v48 = vadd.f32 %v531_v39, %v407_v42  ;;  %v532_v49 = vadd.f32 %v831_v1, %v498_v40  ;;  %v499_v50 = vmul.f32 %v817_v0, %v208_v36  ;;  %v259_v39 = vld [vmem:[%s836_s25 + $0x9c] sm:$0xff]  }
  0x31   : > { %v410_v52 = vsel %vm367_vm0, %v408_v43, %v409_v44  ;;  %v411_v53 = vrot.slane %v297_v45, 1  ;;  %v743_v54 = vunpack.c.l.bf16 %v761_v41  ;;  %v744_v55 = vunpack.c.h.bf16 %v761_v41 }
  0x32   : > { %626 = vst [vmem:[%s865_s28 + $0x70] sm:$0xff] %v594_v47  ;;  %v595_v57 = vmax.f32 %v563_v48, 0.0  ;;  %v564_v58 = vadd.f32 %v532_v49, %v410_v52  ;;  %v533_v59 = vadd.f32 %v831_v1, %v499_v50  ;;  %v500_v60 = vmul.f32 %v817_v0, %v209_v46  ;;  %v261_v49 = vld [vmem:[%s836_s25 + $0xa4] sm:$0x1] }
  0x33   : > { %v412_v62 = vsel %vm367_vm0, %v409_v44, %v411_v53  ;;  %v413_v63 = vrot.slane %v743_v54, 1  ;;  %v414_v2 = vrot.slane %v744_v55, 1  ;;  %v300_v3 = vunpack.c.l.bf16 %v252_v51  ;;  %v215_v44 = vld [vmem:[%s826_s20 + $0xc0] sm:$0xff]  ;;  %v216_v54 = vld [vmem:[%s826_s20 + $0xc8] sm:$0xff] }
  0x34   : > { %627 = vst [vmem:[%s865_s28 + $0x78] sm:$0xff] %v595_v57  ;;  %v596_v5 = vmax.f32 %v564_v58, 0.0  ;;  %v565_v6 = vadd.f32 %v533_v59, %v412_v62  ;;  %v534_v7 = vadd.f32 %v831_v1, %v500_v60  ;;  %v501_v8 = vmul.f32 %v817_v0, %v210_v56  ;;  %v763_v59 = vld [vmem:[%s836_s25 + $0xa8] sm:$0xff]  }
  0x35   : > { %v415_v10 = vsel %vm367_vm0, %v413_v63, %v414_v2  ;;  %v416_v11 = vrot.slane %v300_v3, 1  ;;  %v301_v12 = vunpack.c.l.bf16 %v253_v61  ;;  %v302_v13 = vunpack.c.h.bf16 %v253_v61 }
  0x36   : > { %628 = vst [vmem:[%s865_s28 + $0x80] sm:$0xff] %v596_v5  ;;  %v597_v15 = vmax.f32 %v565_v6, 0.0  ;;  %v566_v16 = vadd.f32 %v534_v7, %v415_v10  ;;  %v535_v17 = vadd.f32 %v831_v1, %v501_v8  ;;  %v502_v18 = vmul.f32 %v817_v0, %v211_v4  ;;  %v264_v7 = vld [vmem:[%s836_s25 + $0xb0] sm:$0x1] }
  0x37   : > { %v417_v20 = vsel %vm367_vm0, %v414_v2, %v416_v11  ;;  %v418_v21 = vrot.slane %v301_v12, 1  ;;  %v419_v22 = vrot.slane %v302_v13, 1  ;;  %v303_v23 = vunpack.c.l.bf16 %v255_v9  ;;  %v217_v2 = vld [vmem:[%s826_s20 + $0xd0] sm:$0xff]  ;;  %v218_v12 = vld [vmem:[%s826_s20 + $0xd8] sm:$0xff] }
  0x38   : > { %629 = vst [vmem:[%s865_s28 + $0x88] sm:$0xff] %v597_v15  ;;  %v598_v25 = vmax.f32 %v566_v16, 0.0  ;;  %v567_v26 = vadd.f32 %v535_v17, %v417_v20  ;;  %v536_v27 = vadd.f32 %v831_v1, %v502_v18  ;;  %v503_v28 = vmul.f32 %v817_v0, %v212_v14  ;;  %v265_v17 = vld [vmem:[%s836_s25 + $0xb4] sm:$0xff]  }
  0x39   : > { %v420_v30 = vsel %vm367_vm0, %v418_v21, %v419_v22  ;;  %v421_v31 = vrot.slane %v303_v23, 1  ;;  %v747_v32 = vunpack.c.l.bf16 %v762_v19  ;;  %v748_v33 = vunpack.c.h.bf16 %v762_v19 }
  0x3a   : > { %630 = vst [vmem:[%s865_s28 + $0x90] sm:$0xff] %v598_v25  ;;  %v599_v35 = vmax.f32 %v567_v26, 0.0  ;;  %v568_v36 = vadd.f32 %v536_v27, %v420_v30  ;;  %v537_v37 = vadd.f32 %v831_v1, %v503_v28  ;;  %v504_v38 = vmul.f32 %v817_v0, %v213_v24  ;;  %v267_v27 = vld [vmem:[%s836_s25 + $0xbc] sm:$0x1] }
  0x3b   : > { %v422_v40 = vsel %vm367_vm0, %v419_v22, %v421_v31  ;;  %v423_v41 = vrot.slane %v747_v32, 1  ;;  %v424_v42 = vrot.slane %v748_v33, 1  ;;  %v306_v43 = vunpack.c.l.bf16 %v258_v29  ;;  %v219_v22 = vld [vmem:[%s826_s20 + $0xe0] sm:$0xff]  ;;  %v220_v32 = vld [vmem:[%s826_s20 + $0xe8] sm:$0xff] }
  0x3c   : > { %631 = vst [vmem:[%s865_s28 + $0x98] sm:$0xff] %v599_v35  ;;  %v600_v45 = vmax.f32 %v568_v36, 0.0  ;;  %v569_v46 = vadd.f32 %v537_v37, %v422_v40  ;;  %v538_v47 = vadd.f32 %v831_v1, %v504_v38  ;;  %v505_v48 = vmul.f32 %v817_v0, %v214_v34  ;;  %v764_v37 = vld [vmem:[%s836_s25 + $0xc0] sm:$0xff]  }
  0x3d   : > { %v425_v50 = vsel %vm367_vm0, %v423_v41, %v424_v42  ;;  %v426_v51 = vrot.slane %v306_v43, 1  ;;  %v307_v52 = vunpack.c.l.bf16 %v259_v39  ;;  %v308_v53 = vunpack.c.h.bf16 %v259_v39 }
  0x3e   : > { %632 = vst [vmem:[%s865_s28 + $0xa0] sm:$0xff] %v600_v45  ;;  %v601_v55 = vmax.f32 %v569_v46, 0.0  ;;  %v570_v56 = vadd.f32 %v538_v47, %v425_v50  ;;  %v539_v57 = vadd.f32 %v831_v1, %v505_v48  ;;  %v506_v58 = vmul.f32 %v817_v0, %v215_v44  ;;  %v270_v47 = vld [vmem:[%s836_s25 + $0xc8] sm:$0x1] }
  0x3f   : > { %v427_v60 = vsel %vm367_vm0, %v424_v42, %v426_v51  ;;  %v428_v61 = vrot.slane %v307_v52, 1  ;;  %v429_v62 = vrot.slane %v308_v53, 1  ;;  %v309_v63 = vunpack.c.l.bf16 %v261_v49  ;;  %v221_v42 = vld [vmem:[%s826_s20 + $0xf0] sm:$0xff]  ;;  %v222_v52 = vld [vmem:[%s826_s20 + $0xf8] sm:$0xff] }
  0x40   : > { %633 = vst [vmem:[%s865_s28 + $0xa8] sm:$0xff] %v601_v55  ;;  %v602_v3 = vmax.f32 %v570_v56, 0.0  ;;  %v571_v4 = vadd.f32 %v539_v57, %v427_v60  ;;  %v540_v5 = vadd.f32 %v831_v1, %v506_v58  ;;  %v507_v6 = vmul.f32 %v817_v0, %v216_v54 }
  0x41   : > { %v430_v8 = vsel %vm367_vm0, %v428_v61, %v429_v62  ;;  %v431_v9 = vrot.slane %v309_v63, 1  ;;  %v751_v10 = vunpack.c.l.bf16 %v763_v59  ;;  %v752_v11 = vunpack.c.h.bf16 %v763_v59 }
  0x42   : > { %634 = vst [vmem:[%s865_s28 + $0xb0] sm:$0xff] %v602_v3  ;;  %v603_v13 = vmax.f32 %v571_v4, 0.0  ;;  %v572_v14 = vadd.f32 %v540_v5, %v430_v8  ;;  %v541_v15 = vadd.f32 %v831_v1, %v507_v6  ;;  %v508_v16 = vmul.f32 %v817_v0, %v217_v2 }
  0x43   : > { %v432_v18 = vsel %vm367_vm0, %v429_v62, %v431_v9  ;;  %v433_v19 = vrot.slane %v751_v10, 1  ;;  %v434_v20 = vrot.slane %v752_v11, 1  ;;  %v312_v21 = vunpack.c.l.bf16 %v264_v7 }
  0x44   : > { %635 = vst [vmem:[%s865_s28 + $0xb8] sm:$0xff] %v603_v13  ;;  %v604_v23 = vmax.f32 %v572_v14, 0.0  ;;  %v573_v24 = vadd.f32 %v541_v15, %v432_v18  ;;  %v542_v25 = vadd.f32 %v831_v1, %v508_v16  ;;  %v509_v26 = vmul.f32 %v817_v0, %v218_v12 }
  0x45   : > { %v435_v28 = vsel %vm367_vm0, %v433_v19, %v434_v20  ;;  %v436_v29 = vrot.slane %v312_v21, 1  ;;  %v313_v30 = vunpack.c.l.bf16 %v265_v17  ;;  %v314_v31 = vunpack.c.h.bf16 %v265_v17 }
  0x46   : > { %636 = vst [vmem:[%s865_s28 + $0xc0] sm:$0xff] %v604_v23  ;;  %v605_v33 = vmax.f32 %v573_v24, 0.0  ;;  %v574_v34 = vadd.f32 %v542_v25, %v435_v28  ;;  %v543_v35 = vadd.f32 %v831_v1, %v509_v26  ;;  %v510_v36 = vmul.f32 %v817_v0, %v219_v22 }
  0x47   : > { %v437_v38 = vsel %vm367_vm0, %v434_v20, %v436_v29  ;;  %v438_v39 = vrot.slane %v313_v30, 1  ;;  %v439_v40 = vrot.slane %v314_v31, 1  ;;  %v315_v41 = vunpack.c.l.bf16 %v267_v27 }
  0x48   : > { %637 = vst [vmem:[%s865_s28 + $0xc8] sm:$0xff] %v605_v33  ;;  %v606_v43 = vmax.f32 %v574_v34, 0.0  ;;  %v575_v44 = vadd.f32 %v543_v35, %v437_v38  ;;  %v544_v45 = vadd.f32 %v831_v1, %v510_v36  ;;  %v511_v46 = vmul.f32 %v817_v0, %v220_v32 }
  0x49   : > { %v440_v48 = vsel %vm367_vm0, %v438_v39, %v439_v40  ;;  %v441_v49 = vrot.slane %v315_v41, 1  ;;  %v755_v50 = vunpack.c.l.bf16 %v764_v37  ;;  %v756_v51 = vunpack.c.h.bf16 %v764_v37 }
  0x4a   : > { %638 = vst [vmem:[%s865_s28 + $0xd0] sm:$0xff] %v606_v43  ;;  %v607_v53 = vmax.f32 %v575_v44, 0.0  ;;  %v576_v54 = vadd.f32 %v544_v45, %v440_v48  ;;  %v545_v55 = vadd.f32 %v831_v1, %v511_v46  ;;  %v512_v56 = vmul.f32 %v817_v0, %v221_v42 }
  0x4b   : > { %v442_v57 = vsel %vm367_vm0, %v439_v40, %v441_v49  ;;  %v443_v58 = vrot.slane %v755_v50, 1  ;;  %v444_v59 = vrot.slane %v756_v51, 1  ;;  %v318_v60 = vunpack.c.l.bf16 %v270_v47 }
  0x4c   : > { %639 = vst [vmem:[%s865_s28 + $0xd8] sm:$0xff] %v607_v53  ;;  %v608_v61 = vmax.f32 %v576_v54, 0.0  ;;  %v577_v62 = vadd.f32 %v545_v55, %v442_v57  ;;  %v546_v63 = vadd.f32 %v831_v1, %v512_v56  ;;  %v513_v2 = vmul.f32 %v817_v0, %v222_v52 }
  0x4d   : > { %v445_v3 = vsel %vm367_vm0, %v443_v58, %v444_v59  ;;  %v446_v4 = vrot.slane %v318_v60, 1 }
  0x4e   : > { %640 = vst [vmem:[%s865_s28 + $0xe0] sm:$0xff] %v608_v61  ;;  %v609_v5 = vmax.f32 %v577_v62, 0.0  ;;  %v578_v6 = vadd.f32 %v546_v63, %v445_v3  ;;  %v547_v7 = vadd.f32 %v831_v1, %v513_v2 }
  0x4f   : > { %v447_v8 = vsel %vm367_vm0, %v444_v59, %v446_v4 }
  0x50   : > { %641 = vst [vmem:[%s865_s28 + $0xe8] sm:$0xff] %v609_v5  ;;  %v610_v9 = vmax.f32 %v578_v6, 0.0  ;;  %v579_v10 = vadd.f32 %v547_v7, %v447_v8 }
  0x52   : > { %642 = vst [vmem:[%s865_s28 + $0xf0] sm:$0xff] %v610_v9  ;;  %v611_v11 = vmax.f32 %v579_v10, 0.0 }
  0x54   : > { %643 = vst [vmem:[%s865_s28 + $0xf8] sm:$0xff] %v611_v11 }
  0x55 PF: > { %s13_s12 = sadd.s32 1, %s782_s12  }
  0x56   : > { %p10_p4 = scmp.ge.s32.totalorder %s13_s12, 4  }
  0x58   :  { %12 = sbr.rel (!%p10_p4) target bundleno = 1 (0x1), region = 65 }

// kernel: residual_block.3
= control target key start
LH: loop header
LB: loop body
LE: loop exit
PB: predicated region body
PF: predicated region fallthrough
CT: control target
= control target key end

     0   :  { %s3111_s12 = smov 0   ;;  %s4134_s0 = inlined_call_operand.vmem [shape: bf16[2,18,18,128], index: 0, kind: input, shape index: {}]   ;;  %s4135_s1 = inlined_call_operand.vmem [shape: bf16[1152,128], index: 1, kind: input, shape index: {}]   ;;  %s4136_s2 = inlined_call_operand.vmem [shape: f32[2,16,16,128], index: 2, kind: output, shape index: {0}]   ;;  %s4137_s3 = inlined_call_operand.vmem [shape: f32[2,2,128], index: 3, kind: output, shape index: {1}]  }
   0x1 LB: > { %s2634_s13 = sadd.s32 4294967295, %s3089_s12   ;;  %p2638_p0 = scmp.ge.s32.totalorder %s3089_s12, 1  ;;  %s3089_s12 = sphi %s3111_s12, %s14_s12  }
   0x2   : > { %p140_p1 = scmp.lt.s32.totalorder %s3089_s12, 3 }
   0x4   : > { %p141_p2 = pnand %p2638_p0, %p140_p1 }
   0x6   : > { %144 = sbr.rel (%p141_p2) target bundleno = 767 (0x2ff), region = 28 }
   0xb   : > { %v2941_v0 = vld [vmem:[%s4135_s1 + $0x38] sm:$0xff]  ;;  %p168_p3 = scmp.lt.s32.totalorder %s2634_s13, 1  ;;  %v2940_v1 = vld [vmem:[%s4135_s1 + $0x30] sm:$0xff]  ;;  %v2939_v2 = vld [vmem:[%s4135_s1 + $0x28] sm:$0xff]  ;;  %vm370_vm0 = vcmask 1046528   ;;  %vm515_vm1 = vcmask 1045504  }
   0xc   : > { %3050 = vmatpush.bf16.msra.mxu1 %v2941_v0  ;;  %3051 = vmatpush.bf16.msra.mxu2 %v2941_v0  ;;  %v2938_v3 = vld [vmem:[%s4135_s1 + $0x20] sm:$0xff]  ;;  %v2937_v5 = vld [vmem:[%s4135_s1 + $0x18] sm:$0xff]  ;;  %v2936_v14 = vld [vmem:[%s4135_s1 + $0x10] sm:$0xff]  ;;  %vm2545_vm2 = vcmask 1040384  }
   0xd   : > { %s4272_s13 = smov (!%p168_p3, %s2634_s13), 1  ;;  %3052 = vmatpush.bf16.msra.mxu3 %v2941_v0  ;;  %1606 = vmatpush.bf16.msra.mxu0 %v2941_v0  ;;  %v2935_v23 = vld [vmem:[%s4135_s1 + $0x8] sm:$0xff]  ;;  %v2934_v31 = vld [vmem:[%s4135_s1] sm:$0xff]  ;;  %v2957_v36 = vld [vmem:[%s4135_s1 + $0xb8] sm:$0xff] }
   0xe   : > { %s3074_s20 = smul.u32 216, %s4272_s13  ;;  %v2965_v37 = vld [vmem:[%s4135_s1 + $0xf8] sm:$0xff]  ;;  %v2956_v48 = vld [vmem:[%s4135_s1 + $0xb0] sm:$0xff]  ;;  %v2955_v60 = vld [vmem:[%s4135_s1 + $0xa8] sm:$0xff]  ;;  %s2933_s17 = sshll.u32 %s4272_s13, 8 }
   0xf   : > { %v2949_v42 = vld [vmem:[%s4135_s1 + $0x78] sm:$0xff]  ;;  %v2964_v49 = vld [vmem:[%s4135_s1 + $0xf0] sm:$0xff]  ;;  %v2963_v61 = vld [vmem:[%s4135_s1 + $0xe8] sm:$0xff] }
  0x10   : > { %3053 = vmatpush.bf16.msra.mxu1 %v2940_v1  ;;  %3054 = vmatpush.bf16.msra.mxu2 %v2940_v1  ;;  %s3137_s25 = scalar_lea.vmem %s4134_s0, %s3074_s20  ;;  %v2973_v45 = vld [vmem:[%s4135_s1 + $0x138] sm:$0xff]  ;;  %v2948_v58 = vld [vmem:[%s4135_s1 + $0x70] sm:$0xff]  ;;  %s4027_s20 = scalar_lea.vmem %s4136_s2, %s2933_s17 }
  0x11   : > { %3055 = vmatpush.bf16.msra.mxu3 %v2940_v1  ;;  %1607 = vmatpush.bf16.msra.mxu0 %v2940_v1  ;;  %v3043_v4 = vld [vmem:[%s3137_s25 + $0x30] sm:$0xff]   ;;  %v3045_v6 = vld [vmem:[%s3137_s25 + $0x60] sm:$0xff]  }
  0x12   : > { %v3047_v7 = vld [vmem:[%s3137_s25 + $0x90] sm:$0xff]   ;;  %v3007_v8 = vld [vmem:[%s3137_s25] sm:$0xff]   ;;  %v3146_v9 = vunpack.c.l.bf16 %v3043_v4  ;;  %v3148_v10 = vunpack.c.h.bf16 %v3043_v4  ;;  %v3150_v11 = vunpack.c.l.bf16 %v3045_v6  ;;  %v3152_v12 = vunpack.c.h.bf16 %v3045_v6  ;;  %v2947_v6 = vld [vmem:[%s4135_s1 + $0x68] sm:$0xff] }
  0x13   : > { %v3154_v13 = vunpack.c.l.bf16 %v3047_v7  ;;  %v3159_v15 = vunpack.c.h.bf16 %v3047_v7  ;;  %v3161_v16 = vunpack.c.l.bf16 %v3007_v8  ;;  %v3163_v17 = vunpack.c.h.bf16 %v3007_v8  ;;  %v197_v43 = vld [vmem:[%s3137_s25 + $0x3c] sm:$0xff]   ;;  %v209_v44 = vld [vmem:[%s3137_s25 + $0x6c] sm:$0xff]  }
  0x14   : > { %3056 = vmatpush.bf16.msra.mxu1 %v2939_v2  ;;  %3057 = vmatpush.bf16.msra.mxu2 %v2939_v2  ;;  %v298_v18 = vpack.c.bf16 %v3146_v9, %v3146_v9  ;;  %v299_v19 = vpack.c.bf16 %v3148_v10, %v3148_v10  ;;  %v306_v20 = vpack.c.bf16 %v3150_v11, %v3150_v11  ;;  %v221_v46 = vld [vmem:[%s3137_s25 + $0x9c] sm:$0xff]   ;;  %v185_v47 = vld [vmem:[%s3137_s25 + $0xc] sm:$0xff]   ;;  %v3217_v50 = vunpack.c.l.bf16 %v197_v43 }
  0x15   : > { %3058 = vmatpush.bf16.msra.mxu3 %v2939_v2  ;;  %1608 = vmatpush.bf16.msra.mxu0 %v2939_v2  ;;  %v307_v21 = vpack.c.bf16 %v3152_v12, %v3152_v12  ;;  %v314_v22 = vpack.c.bf16 %v3154_v13, %v3154_v13  ;;  %v315_v24 = vpack.c.bf16 %v3159_v15, %v3159_v15  ;;  %v3219_v51 = vunpack.c.h.bf16 %v197_v43  ;;  %v2972_v59 = vld [vmem:[%s4135_s1 + $0x130] sm:$0xff]  ;;  %v2971_v7 = vld [vmem:[%s4135_s1 + $0x128] sm:$0xff]  ;;  %v2954_v8 = vld [vmem:[%s4135_s1 + $0xa0] sm:$0xff] }
  0x16   : > { %v290_v25 = vpack.c.bf16 %v3161_v16, %v3161_v16  ;;  %v291_v26 = vpack.c.bf16 %v3163_v17, %v3163_v17  ;;  %v746_v27 = vunpack.c.l.b16 %v298_v18  ;;  %v747_v28 = vunpack.c.l.b16 %v299_v19  ;;  %v2952_v43 = vld [vmem:[%s4135_s1 + $0x90] sm:$0xff] }
  0x17   : > { %v754_v29 = vunpack.c.l.b16 %v306_v20  ;;  %v755_v30 = vunpack.c.l.b16 %v307_v21  ;;  %v762_v32 = vunpack.c.l.b16 %v314_v22  ;;  %v763_v33 = vunpack.c.l.b16 %v315_v24 }
  0x18   : > { %3059 = vmatpush.bf16.msra.mxu1 %v2938_v3  ;;  %3060 = vmatpush.bf16.msra.mxu2 %v2938_v3  ;;  %v738_v34 = vunpack.c.l.b16 %v290_v25  ;;  %v739_v35 = vunpack.c.l.b16 %v291_v26  ;;  %v3193_v38 = vpack.c.b16 %v747_v28, %v746_v27  ;;  %v3221_v52 = vunpack.c.l.bf16 %v209_v44  ;;  %v2946_v26 = vld [vmem:[%s4135_s1 + $0x60] sm:$0xff]  ;;  %v2953_v28 = vld [vmem:[%s4135_s1 + $0x98] sm:$0xff] }
  0x19   : > { %3061 = vmatpush.bf16.msra.mxu3 %v2938_v3  ;;  %1609 = vmatpush.bf16.msra.mxu0 %v2938_v3  ;;  %v3195_v39 = vpack.c.b16 %v755_v30, %v754_v29  ;;  %v3197_v40 = vpack.c.b16 %v763_v33, %v762_v32  ;;  %v3223_v53 = vunpack.c.h.bf16 %v209_v44  ;;  %v3226_v54 = vunpack.c.l.bf16 %v221_v46  ;;  %v2970_v27 = vld [vmem:[%s4135_s1 + $0x120] sm:$0xff]  ;;  %v2961_v29 = vld [vmem:[%s4135_s1 + $0xd8] sm:$0xff]  ;;  %v2960_v44 = vld [vmem:[%s4135_s1 + $0xd0] sm:$0xff] }
  0x1a   : > { %v770_v41 = vpack.c.b16 %v739_v35, %v738_v34  ;;  %v3228_v55 = vunpack.c.h.bf16 %v221_v46  ;;  %v3230_v56 = vunpack.c.l.bf16 %v185_v47  ;;  %v3232_v57 = vunpack.c.h.bf16 %v185_v47  ;;  %v3044_v34 = vld [vmem:[%s3137_s25 + $0x48] sm:$0xff]   ;;  %v3046_v35 = vld [vmem:[%s3137_s25 + $0x78] sm:$0xff]  }
  0x1b   : > { %4178 = vst [vmem:[#allocation2_spill] sm:$0xff] %v3195_v39  ;;  %v300_v62 = vpack.c.bf16 %v3217_v50, %v3217_v50  ;;  %v301_v63 = vpack.c.bf16 %v3219_v51, %v3219_v51  ;;  %v308_v0 = vpack.c.bf16 %v3221_v52, %v3221_v52  ;;  %v309_v1 = vpack.c.bf16 %v3223_v53, %v3223_v53 }
  0x1c   : > { %3062 = vmatpush.bf16.msra.mxu1 %v2937_v5  ;;  %3063 = vmatpush.bf16.msra.mxu2 %v2937_v5  ;;  %4179 = vst [vmem:[#allocation3_spill] sm:$0xff] %v3197_v40  ;;  %v316_v2 = vpack.c.bf16 %v3226_v54, %v3226_v54  ;;  %v317_v3 = vpack.c.bf16 %v3228_v55, %v3228_v55  ;;  %v3314_v46 = vunpack.c.h.bf16 %v3044_v34  ;;  %v3316_v47 = vunpack.c.l.bf16 %v3046_v35 }
  0x1d   : > { %3064 = vmatpush.bf16.msra.mxu3 %v2937_v5  ;;  %1610 = vmatpush.bf16.msra.mxu0 %v2937_v5  ;;  %v292_v4 = vpack.c.bf16 %v3230_v56, %v3230_v56  ;;  %v293_v5 = vpack.c.bf16 %v3232_v57, %v3232_v57  ;;  %v748_v18 = vunpack.c.l.b16 %v300_v62  ;;  %v749_v19 = vunpack.c.l.b16 %v301_v63  ;;  %v2968_v62 = vld [vmem:[%s4135_s1 + $0x110] sm:$0xff]  ;;  %v2951_v63 = vld [vmem:[%s4135_s1 + $0x88] sm:$0xff] }
  0x1e   : > { %v756_v20 = vunpack.c.l.b16 %v308_v0  ;;  %v757_v21 = vunpack.c.l.b16 %v309_v1  ;;  %v764_v22 = vunpack.c.l.b16 %v316_v2  ;;  %v2959_v0 = vld [vmem:[%s4135_s1 + $0xc8] sm:$0xff]  ;;  %v303_v2 = vpack.c.bf16 %v3314_v46, %v3314_v46 }
  0x1f   : > { %v740_v24 = vunpack.c.l.b16 %v292_v4  ;;  %v741_v25 = vunpack.c.l.b16 %v293_v5  ;;  %v3286_v30 = vpack.c.b16 %v749_v19, %v748_v18  ;;  %v2967_v18 = vld [vmem:[%s4135_s1 + $0x108] sm:$0xff]  ;;  %v2950_v19 = vld [vmem:[%s4135_s1 + $0x80] sm:$0xff] }
  0x20   : > { %3065 = vmatpush.bf16.msra.mxu1 %v2936_v14  ;;  %3066 = vmatpush.bf16.msra.mxu2 %v2936_v14 }
  0x21   : > { %3067 = vmatpush.bf16.msra.mxu3 %v2936_v14  ;;  %1611 = vmatpush.bf16.msra.mxu0 %v2936_v14  ;;  %v2962_v14 = vld [vmem:[%s4135_s1 + $0xe0] sm:$0xff]  ;;  %4180 = vst [vmem:[#allocation4_spill] sm:$0xff] %v3286_v30  ;;  %v3292_v33 = vpack.c.b16 %v741_v25, %v740_v24 }
  0x24   : > { %3068 = vmatpush.bf16.msra.mxu1 %v2935_v23  ;;  %3069 = vmatpush.bf16.msra.mxu2 %v2935_v23 }
  0x25   : > { %3070 = vmatpush.bf16.msra.mxu3 %v2935_v23  ;;  %1612 = vmatpush.bf16.msra.mxu0 %v2935_v23  ;;  %v765_v23 = vunpack.c.l.b16 %v317_v3  ;;  %v310_v3 = vpack.c.bf16 %v3316_v47, %v3316_v47 }
  0x27   : > { %v3290_v32 = vpack.c.b16 %v765_v23, %v764_v22  ;;  %v751_v22 = vunpack.c.l.b16 %v303_v2  ;;  %v758_v23 = vunpack.c.l.b16 %v310_v3 }
  0x28   : > { %3071 = vmatpush.bf16.msra.mxu1 %v2934_v31  ;;  %3072 = vmatpush.bf16.msra.mxu2 %v2934_v31 }
  0x29   : > { %3073 = vmatpush.bf16.msra.mxu3 %v2934_v31  ;;  %1613 = vmatpush.bf16.msra.mxu0 %v2934_v31  ;;  %v3288_v31 = vpack.c.b16 %v757_v21, %v756_v20  ;;  %4182 = vst [vmem:[#allocation6_spill] sm:$0xff] %v3290_v32  ;;  %v2958_v20 = vld [vmem:[%s4135_s1 + $0xc0] sm:$0xff] }
  0x2b   : > { %1634 = vmatmul.bf16.vlgmr.msra.gmra.mxu1 %v3193_v38  ;;  %1654 = vmatmul.bf16.vlgmr.msra.gmra.mxu2 %v3195_v39  ;;  %4181 = vst [vmem:[#allocation5_spill] sm:$0xff] %v3288_v31 }
  0x2c   : > { %1784 = vmatpush.bf16.msrb.mxu2 %v2957_v36  ;;  %1674 = vmatmul.bf16.vlgmr.msra.gmra.mxu3 %v3197_v40  ;;  %v3048_v36 = vld [vmem:[%s3137_s25 + $0xa8] sm:$0xff]  }
  0x2d   : > { %1873 = vmatpush.bf16.msrb.mxu3 %v2965_v37  ;;  %1614 = vmatmul.bf16.vlgmr.msra.gmra.mxu0 %v770_v41  ;;  %v3042_v37 = vld [vmem:[%s3137_s25 + $0x18] sm:$0xff]  }
  0x2e   : > { %1695 = vmatpush.bf16.msrb.mxu1 %v2949_v42  ;;  %1962 = vmatpush.bf16.msrb.mxu0 %v2973_v45  ;;  %v2945_v41 = vld [vmem:[%s4135_s1 + $0x58] sm:$0xff]  ;;  %v3312_v45 = vunpack.c.l.bf16 %v3044_v34  ;;  %v2966_v34 = vld [vmem:[%s4135_s1 + $0x100] sm:$0xff] }
  0x2f   : > { %v2969_v42 = vld [vmem:[%s4135_s1 + $0x118] sm:$0xff] }
  0x30   : > { %1785 = vmatpush.bf16.msrb.mxu2 %v2956_v48  ;;  %v3318_v48 = vunpack.c.h.bf16 %v3046_v35  ;;  %v302_v1 = vpack.c.bf16 %v3312_v45, %v3312_v45  ;;  %v203_v35 = vld [vmem:[%s3137_s25 + $0x54] sm:$0xff]  }
  0x31   : > { %1874 = vmatpush.bf16.msrb.mxu3 %v2964_v49  ;;  %v3322_v49 = vunpack.c.l.bf16 %v3048_v36 }
  0x32   : > { %1696 = vmatpush.bf16.msrb.mxu1 %v2948_v58  ;;  %1963 = vmatpush.bf16.msrb.mxu0 %v2972_v59  ;;  %v3324_v58 = vunpack.c.h.bf16 %v3048_v36  ;;  %v3326_v59 = vunpack.c.l.bf16 %v3042_v37  ;;  %v311_v4 = vpack.c.bf16 %v3318_v48, %v3318_v48  ;;  %v750_v21 = vunpack.c.l.b16 %v302_v1  ;;  %v215_v36 = vld [vmem:[%s3137_s25 + $0x84] sm:$0xff]  }
  0x33   : > { %4183 = vst [vmem:[#allocation7_spill] sm:$0xff] %v3322_v49  ;;  %v318_v5 = vpack.c.bf16 %v3322_v49, %v3322_v49  ;;  %v3394_v1 = vunpack.c.h.bf16 %v215_v36 }
  0x34   : > { %1786 = vmatpush.bf16.msrb.mxu2 %v2955_v60  ;;  %4184 = vst [vmem:[#allocation8_spill] sm:$0xff] %v3324_v58  ;;  %v3328_v60 = vunpack.c.h.bf16 %v3042_v37  ;;  %v759_v24 = vunpack.c.l.b16 %v311_v4  ;;  %v3378_v37 = vpack.c.b16 %v751_v22, %v750_v21 }
  0x35   : > { %1875 = vmatpush.bf16.msrb.mxu3 %v2963_v61  ;;  %v2944_v61 = vld [vmem:[%s4135_s1 + $0x50] sm:$0xff]  ;;  %v766_v25 = vunpack.c.l.b16 %v318_v5  ;;  %v313_v21 = vpack.c.bf16 %v3394_v1, %v3394_v1 }
  0x36   : > { %1697 = vmatpush.bf16.msrb.mxu1 %v2947_v6  ;;  %1964 = vmatpush.bf16.msrb.mxu0 %v2971_v7  ;;  %v319_v6 = vpack.c.bf16 %v3324_v58, %v3324_v58  ;;  %v294_v7 = vpack.c.bf16 %v3326_v59, %v3326_v59  ;;  %4185 = vst [vmem:[#allocation9_spill] sm:$0xff] %v3378_v37 }
  0x38   : > { %1787 = vmatpush.bf16.msrb.mxu2 %v2954_v8  ;;  %v295_v8 = vpack.c.bf16 %v3328_v60, %v3328_v60 }
  0x39   : > { %1876 = vmatpush.bf16.msrb.mxu3 %v2962_v14  ;;  %v2943_v14 = vld [vmem:[%s4135_s1 + $0x48] sm:$0xff] }
  0x3a   : > { %1698 = vmatpush.bf16.msrb.mxu1 %v2946_v26  ;;  %1965 = vmatpush.bf16.msrb.mxu0 %v2970_v27  ;;  %v767_v26 = vunpack.c.l.b16 %v319_v6  ;;  %v742_v27 = vunpack.c.l.b16 %v294_v7  ;;  %v2989_v6 = vld [vmem:[%s4135_s1 + $0x1b8] sm:$0xff] }
  0x3b   : > { %1639 = vmatmul.bf16.gmra.mxu1 %v3286_v30  ;;  %1659 = vmatmul.bf16.gmra.mxu2 %v3288_v31  ;;  %v2997_v7 = vld [vmem:[%s4135_s1 + $0x1f8] sm:$0xff] }
  0x3c   : > { %1788 = vmatpush.bf16.msrb.mxu2 %v2953_v28  ;;  %1679 = vmatmul.bf16.gmra.mxu3 %v3290_v32  ;;  %v743_v28 = vunpack.c.l.b16 %v295_v8  ;;  %v2981_v8 = vld [vmem:[%s4135_s1 + $0x178] sm:$0xff] }
  0x3d   : > { %1877 = vmatpush.bf16.msrb.mxu3 %v2961_v29  ;;  %1619 = vmatmul.bf16.gmra.mxu0 %v3292_v33  ;;  %v2942_v29 = vld [vmem:[%s4135_s1 + $0x40] sm:$0xff] }
  0x3e   : > { %1699 = vmatpush.bf16.msrb.mxu1 %v2945_v41  ;;  %1966 = vmatpush.bf16.msrb.mxu0 %v2969_v42  ;;  %v3380_v41 = vpack.c.b16 %v759_v24, %v758_v23  ;;  %v227_v42 = vld [vmem:[%s3137_s25 + $0xb4] sm:$0xff]  }
  0x3f   : > { %v3396_v2 = vunpack.c.l.bf16 %v227_v42  ;;  %v3398_v3 = vunpack.c.h.bf16 %v227_v42  ;;  %v187_v42 = vld [vmem:[%s3137_s25 + $0x14] sm:$0x1] }
  0x40   : > { %1789 = vmatpush.bf16.msrb.mxu2 %v2952_v43  ;;  %v3383_v43 = vpack.c.b16 %v767_v26, %v766_v25 }
  0x41   : > { %1878 = vmatpush.bf16.msrb.mxu3 %v2960_v44  ;;  %v3385_v44 = vpack.c.b16 %v743_v28, %v742_v27  ;;  %4187 = vst [vmem:[#allocation11_spill] sm:$0xff] %v3396_v2  ;;  %v320_v22 = vpack.c.bf16 %v3396_v2, %v3396_v2  ;;  %v321_v23 = vpack.c.bf16 %v3398_v3, %v3398_v3  ;;  %v184_v28 = vld [vmem:[%s3137_s25 + $0x8] sm:$0x1] }
  0x42   : > { %1700 = vmatpush.bf16.msrb.mxu1 %v2944_v61  ;;  %1967 = vmatpush.bf16.msrb.mxu0 %v2968_v62  ;;  %4186 = vst [vmem:[#allocation10_spill] sm:$0xff] %v3383_v43  ;;  %v191_v61 = vld [vmem:[%s3137_s25 + $0x24] sm:$0xff]   ;;  %v3388_v62 = vunpack.c.l.bf16 %v203_v35 }
  0x43   : > { %4188 = vst [vmem:[#allocation12_spill] sm:$0xff] %v3398_v3  ;;  %v3402_v4 = vunpack.c.l.bf16 %v191_v61  ;;  %v3404_v5 = vunpack.c.h.bf16 %v191_v61 }
  0x44   : > { %1790 = vmatpush.bf16.msrb.mxu2 %v2951_v63  ;;  %v3390_v63 = vunpack.c.h.bf16 %v203_v35  ;;  %v768_v35 = vunpack.c.l.b16 %v320_v22 }
  0x45   : > { %1879 = vmatpush.bf16.msrb.mxu3 %v2959_v0  ;;  %v3392_v0 = vunpack.c.l.bf16 %v215_v36  ;;  %v296_v24 = vpack.c.bf16 %v3402_v4, %v3402_v4  ;;  %v297_v25 = vpack.c.bf16 %v3404_v5, %v3404_v5  ;;  %v769_v36 = vunpack.c.l.b16 %v321_v23 }
  0x46   : > { %1701 = vmatpush.bf16.msrb.mxu1 %v2943_v14  ;;  %1968 = vmatpush.bf16.msrb.mxu0 %v2967_v18  ;;  %v304_v14 = vpack.c.bf16 %v3388_v62, %v3388_v62  ;;  %v305_v18 = vpack.c.bf16 %v3390_v63, %v3390_v63  ;;  %v376_v23 = vrot.slane %v3230_v56, 1 }
  0x47   : > { %v744_v61 = vunpack.c.l.b16 %v296_v24  ;;  %v3442_v32 = vpack.c.b16 %v769_v36, %v768_v35  ;;  %v377_v24 = vrot.slane %v3232_v57, 1 }
  0x48   : > { %1791 = vmatpush.bf16.msrb.mxu2 %v2950_v19  ;;  %v312_v19 = vpack.c.bf16 %v3392_v0, %v3392_v0  ;;  %v752_v26 = vunpack.c.l.b16 %v304_v14  ;;  %v753_v27 = vunpack.c.l.b16 %v305_v18  ;;  %v371_v14 = vrot.slane %v3161_v16, 1 }
  0x49   : > { %1880 = vmatpush.bf16.msrb.mxu3 %v2958_v20  ;;  %v3005_v20 = vld [vmem:[%s4135_s1 + $0x238] sm:$0xff]  ;;  %4190 = vst [vmem:[#allocation14_spill] sm:$0xff] %v3442_v32  ;;  %v372_v18 = vrot.slane %v3163_v17, 1 }
  0x4a   : > { %1702 = vmatpush.bf16.msrb.mxu1 %v2942_v29  ;;  %1969 = vmatpush.bf16.msrb.mxu0 %v2966_v34  ;;  %v760_v29 = vunpack.c.l.b16 %v312_v19  ;;  %v761_v34 = vunpack.c.l.b16 %v313_v21  ;;  %v3438_v3 = vpack.c.b16 %v753_v27, %v752_v26  ;;  %v517_v21 = vrot.slane %v3163_v17, 2 }
  0x4b   : > { %1644 = vmatmul.bf16.gmra.mxu1 %v3378_v37  ;;  %1664 = vmatmul.bf16.gmra.mxu2 %v3380_v41  ;;  %v378_v27 = vsel %vm370_vm0, %v376_v23, %v377_v24  ;;  %v521_v23 = vrot.slane %v3230_v56, 2  ;;  %v2988_v56 = vld [vmem:[%s4135_s1 + $0x1b0] sm:$0xff] }
  0x4c   : > { %1684 = vmatmul.bf16.gmra.mxu3 %v3383_v43  ;;  %2140 = vmatpush.bf16.msra.mxu2 %v2989_v6  ;;  %v745_v43 = vunpack.c.l.b16 %v297_v25  ;;  %v238_v6 = vunpack.c.l.bf16 %v184_v28  ;;  %4189 = vst [vmem:[#allocation13_spill] sm:$0xff] %v3438_v3  ;;  %v3440_v2 = vpack.c.b16 %v761_v34, %v760_v29 }
  0x4d   : > { %1624 = vmatmul.bf16.gmra.mxu0 %v3385_v44  ;;  %2229 = vmatpush.bf16.msra.mxu3 %v2997_v7  ;;  %v241_v7 = vunpack.c.l.bf16 %v187_v42  ;;  %v485_v42 = vpack.c.bf16 %v378_v27, %v378_v27 }
  0x4e   : > { %2051 = vmatpush.bf16.msra.mxu1 %v2981_v8  ;;  %2318 = vmatpush.bf16.msra.mxu0 %v3005_v20  ;;  %v3444_v8 = vpack.c.b16 %v745_v43, %v744_v61  ;;  %v374_v19 = vrot.slane %v238_v6, 1  ;;  %v516_v20 = vrot.slane %v3161_v16, 2  ;;  %v519_v22 = vrot.slane %v238_v6, 2  ;;  %v190_v6 = vld [vmem:[%s3137_s25 + $0x20] sm:$0x1] }
  0x4f   : > { %v379_v25 = vrot.slane %v241_v7, 1  ;;  %v373_v43 = vsel %vm370_vm0, %v371_v14, %v372_v18 }
  0x50   : > { %v375_v16 = vsel %vm370_vm0, %v372_v18, %v374_v19  ;;  %v518_v17 = vsel %vm515_vm1, %v516_v20, %v517_v21  ;;  %v520_v26 = vsel %vm515_vm1, %v517_v21, %v519_v22  ;;  %v483_v29 = vpack.c.bf16 %v373_v43, %v373_v43  ;;  %2141 = vmatpush.bf16.msra.mxu2 %v2988_v56 }
  0x51   : > { %v380_v28 = vsel %vm370_vm0, %v377_v24, %v379_v25  ;;  %v484_v34 = vpack.c.bf16 %v375_v16, %v375_v16  ;;  %v628_v35 = vpack.c.bf16 %v518_v17, %v518_v17  ;;  %v629_v36 = vpack.c.bf16 %v520_v26, %v520_v26 }
  0x52   : > { %v486_v61 = vpack.c.bf16 %v380_v28, %v380_v28  ;;  %v834_v14 = vunpack.c.l.b16 %v483_v29  ;;  %v836_v18 = vunpack.c.l.b16 %v485_v42  ;;  %v244_v20 = vunpack.c.l.bf16 %v190_v6 }
  0x53   : > { %v930_v58 = vunpack.c.l.b16 %v628_v35  ;;  %v931_v49 = vunpack.c.l.b16 %v629_v36  ;;  %v522_v24 = vrot.slane %v3232_v57, 2  ;;  %v524_v25 = vrot.slane %v241_v7, 2  ;;  %v2996_v57 = vld [vmem:[%s4135_s1 + $0x1f0] sm:$0xff] }
  0x54   : > { %v837_v19 = vunpack.c.l.b16 %v486_v61  ;;  %v381_v43 = vrot.slane %v3326_v59, 1  ;;  %v382_v16 = vrot.slane %v3328_v60, 1  ;;  %v384_v17 = vrot.slane %v244_v20, 1  ;;  %2230 = vmatpush.bf16.msra.mxu3 %v2996_v57  ;;  %v196_v57 = vld [vmem:[%s3137_s25 + $0x38] sm:$0x1] }
  0x55   : > { %v962_v21 = vpack.c.b16 %v931_v49, %v930_v58  ;;  %v523_v26 = vsel %vm515_vm1, %v521_v23, %v522_v24  ;;  %v3004_v58 = vld [vmem:[%s4135_s1 + $0x230] sm:$0xff]  ;;  %v529_v23 = vrot.slane %v244_v20, 2 }
  0x56   : > { %v867_v22 = vpack.c.b16 %v837_v19, %v836_v18  ;;  %v385_v49 = vsel %vm370_vm0, %v382_v16, %v384_v17  ;;  %v630_v7 = vpack.c.bf16 %v523_v26, %v523_v26  ;;  %2319 = vmatpush.bf16.msra.mxu0 %v3004_v58  ;;  %v526_v19 = vrot.slane %v3326_v59, 2 }
  0x57   : > { %v488_v29 = vpack.c.bf16 %v385_v49, %v385_v49  ;;  %v250_v58 = vunpack.c.l.bf16 %v196_v57 }
  0x58   : > { %v932_v35 = vunpack.c.l.b16 %v630_v7 }
  0x59   : > { %v839_v61 = vunpack.c.l.b16 %v488_v29  ;;  %v532_v29 = vrot.slane %v3404_v5, 2 }
  0x5b   : > { %1649 = vmatmul.bf16.gmra.mxu1 %v3438_v3  ;;  %1669 = vmatmul.bf16.gmra.mxu2 %v3440_v2 }
  0x5c   : > { %1689 = vmatmul.bf16.gmra.mxu3 %v3442_v32  ;;  %v835_v32 = vunpack.c.l.b16 %v484_v34  ;;  %v193_v34 = vld [vmem:[%s3137_s25 + $0x2c] sm:$0x1] }
  0x5d   : > { %1629 = vmatmul.bf16.gmra.mxu0 %v3444_v8  ;;  %v247_v6 = vunpack.c.l.bf16 %v193_v34 }
  0x5e   : > { %v866_v40 = vpack.c.b16 %v835_v32, %v834_v14  ;;  %v525_v32 = vsel %vm515_vm1, %v522_v24, %v524_v25  ;;  %v386_v24 = vrot.slane %v3402_v4, 1  ;;  %v387_v25 = vrot.slane %v3404_v5, 1  ;;  %v2987_v5 = vld [vmem:[%s4135_s1 + $0x1a8] sm:$0xff] }
  0x5f   : > { %v631_v27 = vpack.c.bf16 %v525_v32, %v525_v32  ;;  %v534_v34 = vrot.slane %v247_v6, 2  ;;  %2142 = vmatpush.bf16.msra.mxu2 %v2987_v5  ;;  %v202_v5 = vld [vmem:[%s3137_s25 + $0x50] sm:$0x1] }
  0x61   : > { %v933_v36 = vunpack.c.l.b16 %v631_v27 }
  0x63   : > { %v3485_v14 = vpack.c.b16 %v933_v36, %v932_v35  ;;  %v391_v35 = vrot.slane %v3146_v9, 1  ;;  %v392_v36 = vrot.slane %v3148_v10, 1 }
  0x6b   : > { %1703 = vmatmul.bf16.vlgmr.msrb.gmra.mxu1 %v866_v40  ;;  %1792 = vmatmul.bf16.vlgmr.msrb.gmra.mxu2 %v962_v21  ;;  %v2980_v40 = vld [vmem:[%s4135_s1 + $0x170] sm:$0xff]  ;;  %v527_v21 = vrot.slane %v3328_v60, 2  ;;  %v388_v60 = vsel %vm370_vm0, %v386_v24, %v387_v25 }
  0x6c   : > { %1881 = vmatmul.bf16.vlgmr.msrb.gmra.mxu3 %v3292_v33  ;;  %v383_v33 = vsel %vm370_vm0, %v381_v43, %v382_v16  ;;  %2052 = vmatpush.bf16.msra.mxu1 %v2980_v40  ;;  %v389_v43 = vrot.slane %v247_v6, 1  ;;  %v489_v32 = vpack.c.bf16 %v388_v60, %v388_v60  ;;  %v2995_v6 = vld [vmem:[%s4135_s1 + $0x1e8] sm:$0xff]  ;;  %v199_v60 = vld [vmem:[%s3137_s25 + $0x44] sm:$0x1] }
  0x6d   : > { %1970 = vmatmul.bf16.vlgmr.msrb.gmra.mxu0 %v867_v22  ;;  %v487_v28 = vpack.c.bf16 %v383_v33, %v383_v33  ;;  %v528_v16 = vsel %vm515_vm1, %v526_v19, %v527_v21  ;;  %v530_v59 = vsel %vm515_vm1, %v527_v21, %v529_v23  ;;  %v393_v19 = vsel %vm370_vm0, %v391_v35, %v392_v36 }
  0x6e   : > { %v390_v20 = vsel %vm370_vm0, %v387_v25, %v389_v43  ;;  %v632_v17 = vpack.c.bf16 %v528_v16, %v528_v16  ;;  %v633_v26 = vpack.c.bf16 %v530_v59, %v530_v59  ;;  %v840_v33 = vunpack.c.l.b16 %v489_v32  ;;  %2231 = vmatpush.bf16.msra.mxu3 %v2995_v6  ;;  %v2979_v25 = vld [vmem:[%s4135_s1 + $0x168] sm:$0xff] }
  0x6f   : > { %v838_v42 = vunpack.c.l.b16 %v487_v28  ;;  %v490_v56 = vpack.c.bf16 %v390_v20, %v390_v20  ;;  %v531_v28 = vrot.slane %v3402_v4, 2  ;;  %v535_v4 = vsel %vm515_vm1, %v532_v29, %v534_v34  ;;  %v3003_v59 = vld [vmem:[%s4135_s1 + $0x228] sm:$0xff] }
  0x70   : > { %v935_v40 = vunpack.c.l.b16 %v633_v26  ;;  %v635_v24 = vpack.c.bf16 %v535_v4, %v535_v4  ;;  %v491_v43 = vpack.c.bf16 %v393_v19, %v393_v19  ;;  %2053 = vmatpush.bf16.msra.mxu1 %v2979_v25  ;;  %2320 = vmatpush.bf16.msra.mxu0 %v3003_v59  ;;  %v541_v59 = vrot.slane %v3217_v50, 2 }
  0x71   : > { %v3487_v18 = vpack.c.b16 %v839_v61, %v838_v42  ;;  %v841_v49 = vunpack.c.l.b16 %v490_v56  ;;  %v394_v42 = vrot.slane %v250_v58, 1  ;;  %v533_v61 = vsel %vm515_vm1, %v531_v28, %v532_v29 }
  0x72   : > { %v634_v23 = vpack.c.bf16 %v533_v61, %v533_v61  ;;  %v842_v26 = vunpack.c.l.b16 %v491_v43  ;;  %v253_v56 = vunpack.c.l.bf16 %v199_v60  ;;  %v396_v28 = vrot.slane %v3217_v50, 1 }
  0x73   : > { %v3503_v27 = vpack.c.b16 %v841_v49, %v840_v33  ;;  %v395_v21 = vsel %vm370_vm0, %v392_v36, %v394_v42  ;;  %v537_v33 = vrot.slane %v3148_v10, 2  ;;  %v539_v49 = vrot.slane %v250_v58, 2 }
  0x74   : > { %v492_v16 = vpack.c.bf16 %v395_v21, %v395_v21  ;;  %v936_v20 = vunpack.c.l.b16 %v634_v23  ;;  %v397_v29 = vrot.slane %v3219_v51, 1  ;;  %v399_v34 = vrot.slane %v253_v56, 1 }
  0x75   : > { %v542_v60 = vrot.slane %v3219_v51, 2 }
  0x76   : > { %v843_v32 = vunpack.c.l.b16 %v492_v16  ;;  %v398_v10 = vsel %vm370_vm0, %v396_v28, %v397_v29  ;;  %v400_v58 = vsel %vm370_vm0, %v397_v29, %v399_v34 }
  0x77   : > { %v493_v61 = vpack.c.bf16 %v398_v10, %v398_v10  ;;  %v494_v4 = vpack.c.bf16 %v400_v58, %v400_v58  ;;  %v543_v50 = vsel %vm515_vm1, %v541_v59, %v542_v60  ;;  %v2978_v10 = vld [vmem:[%s4135_s1 + $0x160] sm:$0xff] }
  0x78   : > { %2054 = vmatpush.bf16.msra.mxu1 %v2978_v10 }
  0x79   : > { %v844_v21 = vunpack.c.l.b16 %v493_v61  ;;  %v845_v23 = vunpack.c.l.b16 %v494_v4  ;;  %v3002_v4 = vld [vmem:[%s4135_s1 + $0x220] sm:$0xff] }
  0x7a   : > { %2321 = vmatpush.bf16.msra.mxu0 %v3002_v4 }
  0x7b   : > { %1708 = vmatmul.bf16.gmra.mxu1 %v867_v22  ;;  %1797 = vmatmul.bf16.gmra.mxu2 %v3485_v14  ;;  %v934_v22 = vunpack.c.l.b16 %v632_v17  ;;  %v937_v17 = vunpack.c.l.b16 %v635_v24  ;;  %v256_v24 = vunpack.c.l.bf16 %v202_v5  ;;  %v3551_v16 = vpack.c.b16 %v845_v23, %v844_v21  ;;  %v205_v5 = vld [vmem:[%s3137_s25 + $0x5c] sm:$0x1] }
  0x7c   : > { %1886 = vmatmul.bf16.gmra.mxu3 %v3385_v44  ;;  %v259_v59 = vunpack.c.l.bf16 %v205_v5 }
  0x7d   : > { %1975 = vmatmul.bf16.gmra.mxu0 %v3487_v18  ;;  %v3501_v7 = vpack.c.b16 %v935_v40, %v934_v22  ;;  %v3530_v57 = vpack.c.b16 %v937_v17, %v936_v20  ;;  %v3532_v22 = vpack.c.b16 %v843_v32, %v842_v26  ;;  %v536_v40 = vrot.slane %v3146_v9, 2  ;;  %4192 = vst [vmem:[#allocation16_spill] sm:$0xff] %v3551_v16 }
  0x7e   : > { %v540_v9 = vsel %vm515_vm1, %v537_v33, %v539_v49  ;;  %v544_v20 = vrot.slane %v253_v56, 2  ;;  %v401_v26 = vrot.slane %v3312_v45, 1  ;;  %v402_v32 = vrot.slane %v3314_v46, 1  ;;  %v2986_v56 = vld [vmem:[%s4135_s1 + $0x1a0] sm:$0xff] }
  0x7f   : > { %v538_v35 = vsel %vm515_vm1, %v536_v40, %v537_v33  ;;  %v637_v42 = vpack.c.bf16 %v540_v9, %v540_v9  ;;  %v404_v40 = vrot.slane %v256_v24, 1  ;;  %v2994_v33 = vld [vmem:[%s4135_s1 + $0x1e0] sm:$0xff]  ;;  %2143 = vmatpush.bf16.msra.mxu2 %v2986_v56  ;;  %v549_v56 = vrot.slane %v256_v24, 2 }
  0x80   : > { %v636_v36 = vpack.c.bf16 %v538_v35, %v538_v35  ;;  %v545_v51 = vsel %vm515_vm1, %v542_v60, %v544_v20  ;;  %v403_v49 = vsel %vm370_vm0, %v401_v26, %v402_v32  ;;  %2232 = vmatpush.bf16.msra.mxu3 %v2994_v33  ;;  %v638_v35 = vpack.c.bf16 %v543_v50, %v543_v50 }
  0x81   : > { %v939_v19 = vunpack.c.l.b16 %v637_v42  ;;  %v405_v28 = vsel %vm370_vm0, %v402_v32, %v404_v40  ;;  %v639_v9 = vpack.c.bf16 %v545_v51, %v545_v51  ;;  %v546_v50 = vrot.slane %v3312_v45, 2 }
  0x82   : > { %v938_v6 = vunpack.c.l.b16 %v636_v36  ;;  %v495_v36 = vpack.c.bf16 %v403_v49, %v403_v49  ;;  %v496_v42 = vpack.c.bf16 %v405_v28, %v405_v28  ;;  %v547_v51 = vrot.slane %v3314_v46, 2 }
  0x83   : > { %v406_v49 = vrot.slane %v3388_v62, 1  ;;  %v407_v28 = vrot.slane %v3390_v63, 1 }
  0x84   : > { %v3547_v25 = vpack.c.b16 %v939_v19, %v938_v6  ;;  %v940_v6 = vunpack.c.l.b16 %v638_v35  ;;  %v941_v19 = vunpack.c.l.b16 %v639_v9  ;;  %v846_v21 = vunpack.c.l.b16 %v495_v36 }
  0x85   : > { %v847_v23 = vunpack.c.l.b16 %v496_v42  ;;  %v409_v35 = vrot.slane %v259_v59, 1  ;;  %v548_v45 = vsel %vm515_vm1, %v546_v50, %v547_v51  ;;  %v550_v46 = vsel %vm515_vm1, %v547_v51, %v549_v56 }
  0x86   : > { %4191 = vst [vmem:[#allocation15_spill] sm:$0xff] %v3547_v25  ;;  %v3592_v26 = vpack.c.b16 %v941_v19, %v940_v6  ;;  %v408_v24 = vsel %vm370_vm0, %v406_v49, %v407_v28  ;;  %v640_v42 = vpack.c.bf16 %v548_v45, %v548_v45  ;;  %v641_v4 = vpack.c.bf16 %v550_v46, %v550_v46 }
  0x87   : > { %v3596_v40 = vpack.c.b16 %v847_v23, %v846_v21  ;;  %v410_v9 = vsel %vm370_vm0, %v407_v28, %v409_v35  ;;  %v497_v6 = vpack.c.bf16 %v408_v24, %v408_v24  ;;  %v208_v23 = vld [vmem:[%s3137_s25 + $0x68] sm:$0x1]  ;;  %v551_v24 = vrot.slane %v3388_v62, 2 }
  0x88   : > { %4195 = vst [vmem:[#allocation19_spill] sm:$0xff] %v3592_v26  ;;  %v498_v19 = vpack.c.bf16 %v410_v9, %v410_v9  ;;  %v942_v50 = vunpack.c.l.b16 %v640_v42  ;;  %v262_v49 = vunpack.c.l.bf16 %v208_v23  ;;  %v552_v9 = vrot.slane %v3390_v63, 2 }
  0x89   : > { %4196 = vst [vmem:[#allocation20_spill] sm:$0xff] %v3596_v40  ;;  %v848_v51 = vunpack.c.l.b16 %v497_v6  ;;  %v412_v6 = vrot.slane %v3152_v12, 1 }
  0x8a   : > { %v849_v56 = vunpack.c.l.b16 %v498_v19  ;;  %v414_v19 = vrot.slane %v262_v49, 1  ;;  %v553_v62 = vsel %vm515_vm1, %v551_v24, %v552_v9 }
  0x8b   : > { %1713 = vmatmul.bf16.gmra.mxu1 %v3487_v18  ;;  %1802 = vmatmul.bf16.gmra.mxu2 %v3501_v7 }
  0x8c   : > { %1891 = vmatmul.bf16.gmra.mxu3 %v3444_v8  ;;  %v3629_v46 = vpack.c.b16 %v849_v56, %v848_v51 }
  0x8d   : > { %1980 = vmatmul.bf16.gmra.mxu0 %v3503_v27 }
  0x8e   : > { %4200 = vst [vmem:[#allocation24_spill] sm:$0xff] %v3629_v46 }
  0x9b   : > { %1718 = vmatmul.bf16.gmra.mxu1 %v3503_v27  ;;  %1807 = vmatmul.bf16.gmra.mxu2 %v3530_v57 }
  0x9c   : > { %1896 = vmatmul.bf16.gmra.mxu3 %v3193_v38 }
  0x9d   : > { %1985 = vmatmul.bf16.gmra.mxu0 %v3532_v22 }
  0xa8   : > { %v3549_v43 = vpop.f32.mrf.mxu1 }
  0xaa   : > { %v3555_v17 = vpop.f32.mrf.mxu0 }
  0xab   : > { %1723 = vmatmul.bf16.gmra.mxu1 %v3532_v22  ;;  %1812 = vmatmul.bf16.gmra.mxu2 %v3547_v25 }
  0xac   : > { %1901 = vmatmul.bf16.gmra.mxu3 %v3286_v30  ;;  %v214_v30 = vld [vmem:[%s3137_s25 + $0x80] sm:$0x1] }
  0xad   : > { %1990 = vmatmul.bf16.gmra.mxu0 %v3551_v16 }
  0xae   : > { %v3573_v29 = vpop.f32.mrf.mxu2 }
  0xaf   : > { %v3575_v34 = vpop.f32.mrf.mxu3 }
  0xb0   : > { %4193 = vst [vmem:[#allocation17_spill] sm:$0xff] %v3575_v34  ;;  %v3580_v58 = vpop.f32.mrf.mxu1 }
  0xb2   : > { %v3582_v61 = vpop.f32.mrf.mxu0 }
  0xb6   : > { %v3588_v60 = vpop.f32.mrf.mxu2 }
  0xb7   : > { %v3590_v20 = vpop.f32.mrf.mxu3 }
  0xb8   : > { %4194 = vst [vmem:[#allocation18_spill] sm:$0xff] %v3590_v20  ;;  %v3594_v32 = vpop.f32.mrf.mxu1  ;;  %v943_v20 = vunpack.c.l.b16 %v641_v4  ;;  %v411_v4 = vrot.slane %v3150_v11, 1 }
  0xba   : > { %v3600_v33 = vpop.f32.mrf.mxu0  ;;  %v3625_v35 = vpack.c.b16 %v943_v20, %v942_v50  ;;  %v2993_v20 = vld [vmem:[%s4135_s1 + $0x1d8] sm:$0xff]  ;;  %v413_v23 = vsel %vm370_vm0, %v411_v4, %v412_v6  ;;  %v415_v50 = vsel %vm370_vm0, %v412_v6, %v414_v19  ;;  %v211_v19 = vld [vmem:[%s3137_s25 + $0x74] sm:$0x1] }
  0xbb   : > { %1728 = vmatmul.bf16.gmra.mxu1 %v3551_v16  ;;  %1817 = vmatmul.bf16.gmra.mxu2 %v3592_v26  ;;  %v2977_v4 = vld [vmem:[%s4135_s1 + $0x158] sm:$0xff]  ;;  %v556_v16 = vrot.slane %v3150_v11, 2 }
  0xbc   : > { %1906 = vmatmul.bf16.gmra.mxu3 %v3378_v37  ;;  %4199 = vst [vmem:[#allocation23_spill] sm:$0xff] %v3625_v35  ;;  %v3001_v6 = vld [vmem:[%s4135_s1 + $0x218] sm:$0xff]  ;;  %2055 = vmatpush.bf16.msra.mxu1 %v2977_v4 }
  0xbd   : > { %1995 = vmatmul.bf16.gmra.mxu0 %v3596_v40  ;;  %2233 = vmatpush.bf16.msra.mxu3 %v2993_v20 }
  0xbe   : > { %v3612_v10 = vpop.f32.mrf.mxu2  ;;  %2322 = vmatpush.bf16.msra.mxu0 %v3001_v6 }
  0xbf   : > { %v3614_v36 = vpop.f32.mrf.mxu3 }
  0xc0   : > { %4197 = vst [vmem:[#allocation21_spill] sm:$0xff] %v3614_v36  ;;  %v3616_v5 = vpop.f32.mrf.mxu1  ;;  %v554_v36 = vrot.slane %v259_v59, 2  ;;  %v2985_v59 = vld [vmem:[%s4135_s1 + $0x198] sm:$0xff] }
  0xc1   : > { %2144 = vmatpush.bf16.msra.mxu2 %v2985_v59 }
  0xc2   : > { %v3618_v21 = vpop.f32.mrf.mxu0  ;;  %v555_v63 = vsel %vm515_vm1, %v552_v9, %v554_v36  ;;  %v642_v36 = vpack.c.bf16 %v553_v62, %v553_v62 }
  0xc3   : > { %v643_v24 = vpack.c.bf16 %v555_v63, %v555_v63 }
  0xc4   : > { %v944_v59 = vunpack.c.l.b16 %v642_v36  ;;  %v557_v36 = vrot.slane %v3152_v12, 2 }
  0xc5   : > { %v945_v20 = vunpack.c.l.b16 %v643_v24  ;;  %v559_v24 = vrot.slane %v262_v49, 2 }
  0xc6   : > { %v3621_v34 = vpop.f32.mrf.mxu2  ;;  %v558_v11 = vsel %vm515_vm1, %v556_v16, %v557_v36 }
  0xc7   : > { %v3623_v28 = vpop.f32.mrf.mxu3  ;;  %v560_v12 = vsel %vm515_vm1, %v557_v36, %v559_v24 }
  0xc8   : > { %4198 = vst [vmem:[#allocation22_spill] sm:$0xff] %v3623_v28  ;;  %v3627_v45 = vpop.f32.mrf.mxu1  ;;  %v499_v28 = vpack.c.bf16 %v413_v23, %v413_v23 }
  0xca   : > { %v3633_v42 = vpop.f32.mrf.mxu0  ;;  %v850_v62 = vunpack.c.l.b16 %v499_v28  ;;  %v417_v28 = vrot.slane %v3223_v53, 1 }
  0xcb   : > { %1733 = vmatmul.bf16.gmra.mxu1 %v3596_v40  ;;  %1822 = vmatmul.bf16.gmra.mxu2 %v3625_v35  ;;  %v3670_v40 = vpack.c.b16 %v945_v20, %v944_v59 }
  0xcc   : > { %1911 = vmatmul.bf16.gmra.mxu3 %v3438_v3  ;;  %v500_v3 = vpack.c.bf16 %v415_v50, %v415_v50 }
  0xcd   : > { %2000 = vmatmul.bf16.gmra.mxu0 %v3629_v46  ;;  %4205 = vst [vmem:[#allocation29_spill] sm:$0xff] %v3670_v40 }
  0xce   : > { %v3651_v51 = vpop.f32.mrf.mxu2  ;;  %v851_v63 = vunpack.c.l.b16 %v500_v3  ;;  %v416_v3 = vrot.slane %v3221_v52, 1 }
  0xcf   : > { %4201 = vst [vmem:[#allocation25_spill] sm:$0xff] %v3651_v51  ;;  %v3653_v56 = vpop.f32.mrf.mxu3 }
  0xd0   : > { %4202 = vst [vmem:[#allocation26_spill] sm:$0xff] %v3653_v56  ;;  %v3655_v9 = vpop.f32.mrf.mxu1  ;;  %v265_v56 = vunpack.c.l.bf16 %v211_v19  ;;  %v3674_v26 = vpack.c.b16 %v851_v63, %v850_v62  ;;  %v418_v49 = vsel %vm370_vm0, %v416_v3, %v417_v28  ;;  %v644_v62 = vpack.c.bf16 %v558_v11, %v558_v11 }
  0xd1   : > { %v645_v63 = vpack.c.bf16 %v560_v12, %v560_v12  ;;  %v268_v3 = vunpack.c.l.bf16 %v214_v30  ;;  %v561_v11 = vrot.slane %v3221_v52, 2  ;;  %v562_v12 = vrot.slane %v3223_v53, 2 }
  0xd2   : > { %v3657_v35 = vpop.f32.mrf.mxu0  ;;  %4206 = vst [vmem:[#allocation30_spill] sm:$0xff] %v3674_v26  ;;  %v419_v6 = vrot.slane %v265_v56, 1  ;;  %v946_v16 = vunpack.c.l.b16 %v644_v62  ;;  %v422_v30 = vrot.slane %v3318_v48, 1 }
  0xd3   : > { %v563_v52 = vsel %vm515_vm1, %v561_v11, %v562_v12 }
  0xd4   : > { %v420_v19 = vsel %vm370_vm0, %v417_v28, %v419_v6 }
  0xd6   : > { %v3666_v23 = vpop.f32.mrf.mxu2 }
  0xd7   : > { %4203 = vst [vmem:[#allocation27_spill] sm:$0xff] %v3666_v23  ;;  %v3668_v50 = vpop.f32.mrf.mxu3  ;;  %v947_v23 = vunpack.c.l.b16 %v645_v63 }
  0xd8   : > { %4204 = vst [vmem:[#allocation28_spill] sm:$0xff] %v3668_v50  ;;  %v3672_v37 = vpop.f32.mrf.mxu1 }
  0xd9   : > { %v3703_v6 = vpack.c.b16 %v947_v23, %v946_v16 }
  0xda   : > { %v3678_v4 = vpop.f32.mrf.mxu0 }
  0xdb   : > { %1738 = vmatmul.bf16.gmra.mxu1 %v3629_v46  ;;  %1827 = vmatmul.bf16.gmra.mxu2 %v3670_v40  ;;  %v501_v40 = vpack.c.bf16 %v418_v49, %v418_v49  ;;  %4211 = vst [vmem:[#allocation35_spill] sm:$0xff] %v3703_v6  ;;  %v564_v49 = vrot.slane %v265_v56, 2  ;;  %v2992_v56 = vld [vmem:[%s4135_s1 + $0x1d0] sm:$0xff] }
  0xdc   : > { %1916 = vmatmul.bf16.gmra.mxu3 %v3195_v39  ;;  %v502_v39 = vpack.c.bf16 %v420_v19, %v420_v19 }
  0xdd   : > { %2005 = vmatmul.bf16.gmra.mxu0 %v3674_v26  ;;  %v852_v36 = vunpack.c.l.b16 %v501_v40  ;;  %v424_v40 = vrot.slane %v268_v3, 1  ;;  %v565_v53 = vsel %vm515_vm1, %v562_v12, %v564_v49  ;;  %2234 = vmatpush.bf16.msra.mxu3 %v2992_v56 }
  0xde   : > { %v3690_v59 = vpop.f32.mrf.mxu2  ;;  %v853_v24 = vunpack.c.l.b16 %v502_v39  ;;  %v421_v39 = vrot.slane %v3316_v47, 1  ;;  %v647_v11 = vpack.c.bf16 %v565_v53, %v565_v53 }
  0xdf   : > { %4207 = vst [vmem:[#allocation31_spill] sm:$0xff] %v3690_v59  ;;  %v3692_v20 = vpop.f32.mrf.mxu3  ;;  %v425_v16 = vsel %vm370_vm0, %v422_v30, %v424_v40  ;;  %v217_v59 = vld [vmem:[%s3137_s25 + $0x8c] sm:$0x1] }
  0xe0   : > { %4208 = vst [vmem:[#allocation32_spill] sm:$0xff] %v3692_v20  ;;  %v3694_v50 = vpop.f32.mrf.mxu1  ;;  %v3707_v20 = vpack.c.b16 %v853_v24, %v852_v36  ;;  %v423_v23 = vsel %vm370_vm0, %v421_v39, %v422_v30  ;;  %v646_v24 = vpack.c.bf16 %v563_v52, %v563_v52  ;;  %v2976_v39 = vld [vmem:[%s4135_s1 + $0x150] sm:$0xff]  ;;  %v949_v52 = vunpack.c.l.b16 %v647_v11 }
  0xe1   : > { %v3000_v30 = vld [vmem:[%s4135_s1 + $0x210] sm:$0xff]  ;;  %2056 = vmatpush.bf16.msra.mxu1 %v2976_v39  ;;  %v426_v11 = vrot.slane %v3392_v0, 1 }
  0xe2   : > { %v3696_v46 = vpop.f32.mrf.mxu0  ;;  %v948_v40 = vunpack.c.l.b16 %v646_v24  ;;  %2323 = vmatpush.bf16.msra.mxu0 %v3000_v30 }
  0xe6   : > { %v3699_v51 = vpop.f32.mrf.mxu2 }
  0xe7   : > { %4209 = vst [vmem:[#allocation33_spill] sm:$0xff] %v3699_v51  ;;  %v3701_v28 = vpop.f32.mrf.mxu3 }
  0xe8   : > { %4210 = vst [vmem:[#allocation34_spill] sm:$0xff] %v3701_v28  ;;  %v1704_v19 = vpop.f32.mrf.mxu1  ;;  %v503_v28 = vpack.c.bf16 %v423_v23, %v423_v23  ;;  %v3736_v23 = vpack.c.b16 %v949_v52, %v948_v40 }
  0xe9   : > { %v1705_v62 = vadd.f32 %v1704_v19, %v3555_v17  ;;  %v2984_v17 = vld [vmem:[%s4135_s1 + $0x190] sm:$0xff] }
  0xea   : > { %v1971_v63 = vpop.f32.mrf.mxu0  ;;  %2145 = vmatpush.bf16.msra.mxu2 %v2984_v17  ;;  %v271_v17 = vunpack.c.l.bf16 %v217_v59 }
  0xeb   : > { %1743 = vmatmul.bf16.gmra.mxu1 %v3674_v26  ;;  %1832 = vmatmul.bf16.gmra.mxu2 %v3703_v6 }
  0xec   : > { %1921 = vmatmul.bf16.gmra.mxu3 %v3288_v31  ;;  %v504_v31 = vpack.c.bf16 %v425_v16, %v425_v16  ;;  %v429_v59 = vrot.slane %v271_v17, 1 }
  0xed   : > { %2010 = vmatmul.bf16.gmra.mxu0 %v3707_v20 }
  0xee   : > { %v1793_v36 = vpop.f32.mrf.mxu2  ;;  %v855_v53 = vunpack.c.l.b16 %v504_v31  ;;  %v427_v31 = vrot.slane %v3394_v1, 1 }
  0xef   : > { %v1794_v12 = vadd.f32 %v1793_v36, %v1705_v62  ;;  %v1882_v49 = vpop.f32.mrf.mxu3  ;;  %v854_v62 = vunpack.c.l.b16 %v503_v28 }
  0xf0   : > { %v1706_v19 = vpop.f32.mrf.mxu1 }
  0xf1   : > { %v1883_v6 = vadd.f32 %v1882_v49, %v1794_v12  ;;  %v1707_v26 = vadd.f32 %v1706_v19, %v3582_v61  ;;  %v566_v12 = vrot.slane %v3316_v47, 2  ;;  %v567_v49 = vrot.slane %v3318_v48, 2 }
  0xf2   : > { %v1973_v51 = vpop.f32.mrf.mxu0  ;;  %v569_v19 = vrot.slane %v268_v3, 2  ;;  %v3740_v24 = vpack.c.b16 %v855_v53, %v854_v62  ;;  %v428_v3 = vsel %vm370_vm0, %v426_v11, %v427_v31 }
  0xf3   : > { %v3734_v56 = vadd.f32 %v1971_v63, %v1883_v6  ;;  %v568_v47 = vsel %vm515_vm1, %v566_v12, %v567_v49  ;;  %v505_v62 = vpack.c.bf16 %v428_v3, %v428_v3  ;;  %v3757_v12 = vld [vmem:[%s3137_s25 + $0x98] sm:$0x1] }
  0xf4   : > { %v570_v48 = vsel %vm515_vm1, %v567_v49, %v569_v19  ;;  %v648_v39 = vpack.c.bf16 %v568_v47, %v568_v47 }
  0xf5   : > { %v649_v30 = vpack.c.bf16 %v570_v48, %v570_v48 }
  0xf6   : > { %v1795_v61 = vpop.f32.mrf.mxu2  ;;  %v950_v49 = vunpack.c.l.b16 %v648_v39  ;;  %v574_v39 = vrot.slane %v271_v17, 2 }
  0xf7   : > { %v1796_v16 = vadd.f32 %v1795_v61, %v1707_v26  ;;  %v1884_v36 = vpop.f32.mrf.mxu3  ;;  %v951_v19 = vunpack.c.l.b16 %v649_v30  ;;  %v431_v30 = vrot.slane %v3154_v13, 1 }
  0xf8   : > { %v1709_v25 = vpop.f32.mrf.mxu1 }
  0xf9   : > { %v1885_v28 = vadd.f32 %v1884_v36, %v1796_v16  ;;  %v1710_v6 = vadd.f32 %v1709_v25, %v3600_v33  ;;  %v430_v25 = vsel %vm370_vm0, %v427_v31, %v429_v59  ;;  %v274_v31 = vunpack.c.l.bf16 %v3757_v12  ;;  %v2991_v12 = vld [vmem:[%s4135_s1 + $0x1c8] sm:$0xff] }
  0xfa   : > { %v1976_v63 = vpop.f32.mrf.mxu0  ;;  %v506_v53 = vpack.c.bf16 %v430_v25, %v430_v25  ;;  %2235 = vmatpush.bf16.msra.mxu3 %v2991_v12 }
  0xfb   : > { %1748 = vmatmul.bf16.gmra.mxu1 %v3707_v20  ;;  %1837 = vmatmul.bf16.gmra.mxu2 %v3736_v23  ;;  %v3749_v26 = vadd.f32 %v1973_v51, %v1885_v28  ;;  %v856_v28 = vunpack.c.l.b16 %v505_v62  ;;  %v434_v62 = vrot.slane %v274_v31, 1 }
  0xfc   : > { %1926 = vmatmul.bf16.gmra.mxu3 %v3380_v41  ;;  %v857_v11 = vunpack.c.l.b16 %v506_v53 }
  0xfd   : > { %2015 = vmatmul.bf16.gmra.mxu0 %v3740_v24 }
  0xfe   : > { %v1798_v33 = vpop.f32.mrf.mxu2  ;;  %v3764_v25 = vpack.c.b16 %v857_v11, %v856_v28 }
  0xff   : > { %v1799_v40 = vadd.f32 %v1798_v33, %v1710_v6  ;;  %v1887_v52 = vpop.f32.mrf.mxu3  ;;  %v3762_v6 = vpack.c.b16 %v951_v19, %v950_v49  ;;  %v572_v33 = vrot.slane %v3394_v1, 2 }
 0x100   : > { %v1711_v61 = vpop.f32.mrf.mxu1 }
 0x101   : > { %v1888_v16 = vadd.f32 %v1887_v52, %v1799_v40  ;;  %v1712_v51 = vadd.f32 %v1711_v61, %v3618_v21  ;;  %v571_v21 = vrot.slane %v3392_v0, 2  ;;  %v432_v52 = vrot.slane %v3159_v15, 1 }
 0x102   : > { %v1978_v36 = vpop.f32.mrf.mxu0  ;;  %v575_v1 = vsel %vm515_vm1, %v572_v33, %v574_v39  ;;  %v2975_v39 = vld [vmem:[%s4135_s1 + $0x148] sm:$0xff] }
 0x103   : > { %v3760_v59 = vadd.f32 %v1976_v63, %v1888_v16  ;;  %v573_v16 = vsel %vm515_vm1, %v571_v21, %v572_v33  ;;  %v433_v17 = vsel %vm370_vm0, %v431_v30, %v432_v52  ;;  %v651_v11 = vpack.c.bf16 %v575_v1, %v575_v1  ;;  %v2999_v30 = vld [vmem:[%s4135_s1 + $0x208] sm:$0xff]  ;;  %2057 = vmatpush.bf16.msra.mxu1 %v2975_v39 }
 0x104   : > { %v650_v49 = vpack.c.bf16 %v573_v16, %v573_v16  ;;  %2324 = vmatpush.bf16.msra.mxu0 %v2999_v30  ;;  %v4214_v30 = vld [vmem:[#allocation3_spill] sm:$0xff] }
 0x106   : > { %v1800_v47 = vpop.f32.mrf.mxu2 }
 0x107   : > { %v1801_v48 = vadd.f32 %v1800_v47, %v1712_v51  ;;  %v1889_v3 = vpop.f32.mrf.mxu3  ;;  %v435_v51 = vsel %vm370_vm0, %v432_v52, %v434_v62  ;;  %v507_v47 = vpack.c.bf16 %v433_v17, %v433_v17  ;;  %v223_v52 = vld [vmem:[%s3137_s25 + $0xa4] sm:$0x1]  ;;  %v952_v62 = vunpack.c.l.b16 %v650_v49 }
 0x108   : > { %v1714_v40 = vpop.f32.mrf.mxu1  ;;  %v277_v17 = vunpack.c.l.bf16 %v223_v52  ;;  %v577_v49 = vrot.slane %v3159_v15, 2 }
 0x109   : > { %v1890_v63 = vadd.f32 %v1889_v3, %v1801_v48  ;;  %v1715_v53 = vadd.f32 %v1714_v40, %v3633_v42  ;;  %v2983_v42 = vld [vmem:[%s4135_s1 + $0x188] sm:$0xff]  ;;  %v508_v48 = vpack.c.bf16 %v435_v51, %v435_v51 }
 0x10a   : > { %v1981_v61 = vpop.f32.mrf.mxu0  ;;  %2146 = vmatpush.bf16.msra.mxu2 %v2983_v42 }
 0x10b   : > { %1753 = vmatmul.bf16.gmra.mxu1 %v3740_v24  ;;  %1842 = vmatmul.bf16.gmra.mxu2 %v3762_v6  ;;  %v3774_v0 = vadd.f32 %v1978_v36, %v1890_v63  ;;  %v953_v63 = vunpack.c.l.b16 %v651_v11  ;;  %v859_v16 = vunpack.c.l.b16 %v508_v48  ;;  %v579_v11 = vrot.slane %v274_v31, 2 }
 0x10c   : > { %1931 = vmatmul.bf16.gmra.mxu3 %v3440_v2 }
 0x10d   : > { %2020 = vmatmul.bf16.gmra.mxu0 %v3764_v25  ;;  %v3797_v12 = vpack.c.b16 %v953_v63, %v952_v62  ;;  %v580_v15 = vsel %vm515_vm1, %v577_v49, %v579_v11 }
 0x10e   : > { %v1803_v36 = vpop.f32.mrf.mxu2 }
 0x10f   : > { %v1804_v19 = vadd.f32 %v1803_v36, %v1715_v53  ;;  %v1892_v28 = vpop.f32.mrf.mxu3  ;;  %v858_v53 = vunpack.c.l.b16 %v507_v47  ;;  %v436_v47 = vrot.slane %v3226_v54, 1 }
 0x110   : > { %v1716_v3 = vpop.f32.mrf.mxu1 }
 0x111   : > { %v1893_v21 = vadd.f32 %v1892_v28, %v1804_v19  ;;  %v1717_v33 = vadd.f32 %v1716_v3, %v3657_v35  ;;  %v3799_v36 = vpack.c.b16 %v859_v16, %v858_v53  ;;  %v576_v28 = vrot.slane %v3154_v13, 2 }
 0x112   : > { %v1983_v40 = vpop.f32.mrf.mxu0  ;;  %v653_v16 = vpack.c.bf16 %v580_v15, %v580_v15 }
 0x113   : > { %v3795_v1 = vadd.f32 %v1981_v61, %v1893_v21  ;;  %v437_v21 = vrot.slane %v3228_v55, 1  ;;  %v578_v13 = vsel %vm515_vm1, %v576_v28, %v577_v49 }
 0x114   : > { %v652_v53 = vpack.c.bf16 %v578_v13, %v578_v13  ;;  %v955_v49 = vunpack.c.l.b16 %v653_v16  ;;  %v4216_v16 = vld [vmem:[#allocation7_spill] sm:$0xff] }
 0x115   : > { %4212 = vst [vmem:[#allocation36_spill] sm:$0xff] %v3795_v1 }
 0x116   : > { %v1805_v35 = vpop.f32.mrf.mxu2  ;;  %v954_v28 = vunpack.c.l.b16 %v652_v53 }
 0x117   : > { %v1806_v51 = vadd.f32 %v1805_v35, %v1717_v33  ;;  %v1894_v42 = vpop.f32.mrf.mxu3  ;;  %v439_v33 = vrot.slane %v277_v17, 1 }
 0x118   : > { %v1719_v19 = vpop.f32.mrf.mxu1  ;;  %v3823_v15 = vpack.c.b16 %v955_v49, %v954_v28 }
 0x119   : > { %v1895_v48 = vadd.f32 %v1894_v42, %v1806_v51  ;;  %v1720_v61 = vadd.f32 %v1719_v19, %v3678_v4  ;;  %v438_v4 = vsel %vm370_vm0, %v436_v47, %v437_v21  ;;  %v440_v31 = vsel %vm370_vm0, %v437_v21, %v439_v33 }
 0x11a   : > { %v1986_v3 = vpop.f32.mrf.mxu0  ;;  %v509_v35 = vpack.c.bf16 %v438_v4, %v438_v4  ;;  %v510_v51 = vpack.c.bf16 %v440_v31, %v440_v31 }
 0x11b   : > { %1758 = vmatmul.bf16.gmra.mxu1 %v3764_v25  ;;  %1847 = vmatmul.bf16.gmra.mxu2 %v3797_v12  ;;  %v3808_v39 = vadd.f32 %v1983_v40, %v1895_v48 }
 0x11c   : > { %1936 = vmatmul.bf16.gmra.mxu3 %v4214_v30  ;;  %v860_v11 = vunpack.c.l.b16 %v509_v35  ;;  %v861_v47 = vunpack.c.l.b16 %v510_v51 }
 0x11d   : > { %4213 = vst [vmem:[#allocation37_spill] sm:$0xff] %v3808_v39  ;;  %2025 = vmatmul.bf16.gmra.mxu0 %v3799_v36  ;;  %v3818_v39 = vld [vmem:[%s3137_s25 + $0xb0] sm:$0x1] }
 0x11e   : > { %v1808_v52 = vpop.f32.mrf.mxu2  ;;  %v3825_v31 = vpack.c.b16 %v861_v47, %v860_v11 }
 0x11f   : > { %v1809_v62 = vadd.f32 %v1808_v52, %v1720_v61  ;;  %v1897_v63 = vpop.f32.mrf.mxu3  ;;  %v280_v61 = vunpack.c.l.bf16 %v3818_v39  ;;  %v582_v52 = vrot.slane %v3228_v55, 2 }
 0x120   : > { %v1721_v40 = vpop.f32.mrf.mxu1 }
 0x121   : > { %v1898_v42 = vadd.f32 %v1897_v63, %v1809_v62  ;;  %v1722_v19 = vadd.f32 %v1721_v40, %v3696_v46  ;;  %v581_v46 = vrot.slane %v3226_v54, 2  ;;  %v584_v62 = vrot.slane %v277_v17, 2  ;;  %v4217_v40 = vld [vmem:[#allocation8_spill] sm:$0xff]  ;;  %v2982_v17 = vld [vmem:[%s4135_s1 + $0x180] sm:$0xff] }
 0x122   : > { %v1988_v48 = vpop.f32.mrf.mxu0  ;;  %v442_v35 = vrot.slane %v4217_v40, 1  ;;  %v444_v39 = vrot.slane %v280_v61, 1  ;;  %2147 = vmatpush.bf16.msra.mxu2 %v2982_v17 }
 0x123   : > { %v3820_v1 = vadd.f32 %v1986_v3, %v1898_v42  ;;  %v441_v3 = vrot.slane %v4216_v16, 1  ;;  %v4219_v42 = vld [vmem:[#allocation6_spill] sm:$0xff]  ;;  %v583_v54 = vsel %vm515_vm1, %v581_v46, %v582_v52  ;;  %v585_v55 = vsel %vm515_vm1, %v582_v52, %v584_v62 }
 0x124   : > { %v445_v49 = vsel %vm370_vm0, %v442_v35, %v444_v39 }
 0x125   : > { %4215 = vst [vmem:[#allocation3_spill] sm:$0xff] %v3820_v1  ;;  %v512_v62 = vpack.c.bf16 %v445_v49, %v445_v49 }
 0x126   : > { %v1810_v21 = vpop.f32.mrf.mxu2 }
 0x127   : > { %v1811_v33 = vadd.f32 %v1810_v21, %v1722_v19  ;;  %v1899_v13 = vpop.f32.mrf.mxu3  ;;  %v2990_v19 = vld [vmem:[%s4135_s1 + $0x1c0] sm:$0xff] }
 0x128   : > { %v1724_v4 = vpop.f32.mrf.mxu1  ;;  %2236 = vmatpush.bf16.msra.mxu3 %v2990_v19 }
 0x129   : > { %v1900_v63 = vadd.f32 %v1899_v13, %v1811_v33  ;;  %v1725_v28 = vadd.f32 %v1724_v4, %v3549_v43  ;;  %v654_v33 = vpack.c.bf16 %v583_v54, %v583_v54  ;;  %v655_v13 = vpack.c.bf16 %v585_v55, %v585_v55  ;;  %v2974_v43 = vld [vmem:[%s4135_s1 + $0x140] sm:$0xff] }
 0x12a   : > { %v1991_v53 = vpop.f32.mrf.mxu0  ;;  %v2998_v4 = vld [vmem:[%s4135_s1 + $0x200] sm:$0xff]  ;;  %2058 = vmatpush.bf16.msra.mxu1 %v2974_v43  ;;  %v863_v55 = vunpack.c.l.b16 %v512_v62 }
 0x12b   : > { %1763 = vmatmul.bf16.gmra.mxu1 %v3799_v36  ;;  %1852 = vmatmul.bf16.gmra.mxu2 %v3823_v15  ;;  %v3833_v51 = vadd.f32 %v1988_v48, %v1900_v63  ;;  %v443_v48 = vsel %vm370_vm0, %v441_v3, %v442_v35  ;;  %v3855_v3 = vld [vmem:[%s3137_s25 + $0xbc] sm:$0x1]  ;;  %v956_v35 = vunpack.c.l.b16 %v654_v33  ;;  %v957_v39 = vunpack.c.l.b16 %v655_v13 }
 0x12c   : > { %1941 = vmatmul.bf16.gmra.mxu3 %v4219_v42  ;;  %v511_v52 = vpack.c.bf16 %v443_v48, %v443_v48  ;;  %2325 = vmatpush.bf16.msra.mxu0 %v2998_v4  ;;  %v586_v33 = vrot.slane %v4216_v16, 2  ;;  %v587_v13 = vrot.slane %v4217_v40, 2 }
 0x12d   : > { %4218 = vst [vmem:[#allocation7_spill] sm:$0xff] %v3833_v51  ;;  %2030 = vmatmul.bf16.gmra.mxu0 %v3825_v31 }
 0x12e   : > { %v1813_v11 = vpop.f32.mrf.mxu2  ;;  %v862_v54 = vunpack.c.l.b16 %v511_v52  ;;  %v589_v52 = vrot.slane %v280_v61, 2  ;;  %v588_v61 = vsel %vm515_vm1, %v586_v33, %v587_v13  ;;  %v3049_v33 = vld [vmem:[%s3137_s25 + $0xc0] sm:$0xff]  }
 0x12f   : > { %v1814_v47 = vadd.f32 %v1813_v11, %v1725_v28  ;;  %v1902_v21 = vpop.f32.mrf.mxu3  ;;  %v283_v28 = vunpack.c.l.bf16 %v3855_v3 }
 0x130   : > { %v1726_v46 = vpop.f32.mrf.mxu1  ;;  %v3863_v1 = vpack.c.b16 %v863_v55, %v862_v54  ;;  %v590_v16 = vsel %vm515_vm1, %v587_v13, %v589_v52 }
 0x131   : > { %v1903_v63 = vadd.f32 %v1902_v21, %v1814_v47  ;;  %v1727_v19 = vadd.f32 %v1726_v46, %v3580_v58  ;;  %v3861_v47 = vpack.c.b16 %v957_v39, %v956_v35  ;;  %v4223_v58 = vld [vmem:[#allocation12_spill] sm:$0xff]  ;;  %v449_v4 = vrot.slane %v283_v28, 1  ;;  %v4225_v35 = vld [vmem:[#allocation10_spill] sm:$0xff] }
 0x132   : > { %v1993_v51 = vpop.f32.mrf.mxu0  ;;  %v447_v46 = vrot.slane %v4223_v58, 1 }
 0x133   : > { %v3857_v17 = vadd.f32 %v1991_v53, %v1903_v63  ;;  %4221 = vst [vmem:[#allocation6_spill] sm:$0xff] %v3861_v47  ;;  %v4222_v63 = vld [vmem:[#allocation11_spill] sm:$0xff] }
 0x134   : > { %v446_v43 = vrot.slane %v4222_v63, 1  ;;  %v450_v54 = vsel %vm370_vm0, %v447_v46, %v449_v4  ;;  %v3887_v4 = vunpack.c.l.bf16 %v3049_v33 }
 0x135   : > { %4220 = vst [vmem:[#allocation8_spill] sm:$0xff] %v3857_v17 }
 0x136   : > { %v1815_v48 = vpop.f32.mrf.mxu2  ;;  %v448_v39 = vsel %vm370_vm0, %v446_v43, %v447_v46 }
 0x137   : > { %v1816_v49 = vadd.f32 %v1815_v48, %v1727_v19  ;;  %v1904_v11 = vpop.f32.mrf.mxu3  ;;  %v656_v48 = vpack.c.bf16 %v588_v61, %v588_v61  ;;  %v3889_v61 = vunpack.c.h.bf16 %v3049_v33 }
 0x138   : > { %v1729_v21 = vpop.f32.mrf.mxu1 }
 0x139   : > { %v1905_v62 = vadd.f32 %v1904_v11, %v1816_v49  ;;  %v1730_v40 = vadd.f32 %v1729_v21, %v3594_v32  ;;  %v657_v49 = vpack.c.bf16 %v590_v16, %v590_v16  ;;  %v958_v13 = vunpack.c.l.b16 %v656_v48  ;;  %4228 = vst [vmem:[#allocation39_spill] sm:$0xff] %v3889_v61 }
 0x13a   : > { %v1996_v53 = vpop.f32.mrf.mxu0 }
 0x13b   : > { %1768 = vmatmul.bf16.gmra.mxu1 %v3825_v31  ;;  %1857 = vmatmul.bf16.gmra.mxu2 %v3861_v47  ;;  %v3871_v3 = vadd.f32 %v1993_v51, %v1905_v62  ;;  %v513_v62 = vpack.c.bf16 %v448_v39, %v448_v39  ;;  %v3882_v47 = vld [vmem:[%s3137_s25 + $0xc8] sm:$0x1]  ;;  %v959_v52 = vunpack.c.l.b16 %v657_v49  ;;  %v665_v49 = vrot.slane %v3887_v4, 1 }
 0x13c   : > { %1946 = vmatmul.bf16.gmra.mxu3 %v4225_v35  ;;  %4226 = vst [vmem:[#allocation12_spill] sm:$0xff] %v3882_v47  ;;  %v4175_v16 = vunpack.c.l.bf16 %v3882_v47 }
 0x13d   : > { %4224 = vst [vmem:[#allocation11_spill] sm:$0xff] %v3871_v3  ;;  %2035 = vmatmul.bf16.gmra.mxu0 %v3863_v1  ;;  %v514_v3 = vpack.c.bf16 %v450_v54, %v450_v54  ;;  %v864_v21 = vunpack.c.l.b16 %v513_v62 }
 0x13e   : > { %v1818_v55 = vpop.f32.mrf.mxu2  ;;  %v668_v62 = vrot.slane %v4175_v16, 1 }
 0x13f   : > { %v1819_v19 = vadd.f32 %v1818_v55, %v1730_v40  ;;  %v1907_v51 = vpop.f32.mrf.mxu3  ;;  %v865_v43 = vunpack.c.l.b16 %v514_v3  ;;  %v3892_v55 = vpack.c.b16 %v959_v52, %v958_v13  ;;  %v594_v3 = vrot.slane %v283_v28, 2  ;;  %v4230_v13 = vld [vmem:[#allocation14_spill] sm:$0xff] }
 0x140   : > { %v1731_v11 = vpop.f32.mrf.mxu1 }
 0x141   : > { %v1908_v17 = vadd.f32 %v1907_v51, %v1819_v19  ;;  %v1732_v46 = vadd.f32 %v1731_v11, %v3616_v5  ;;  %v3894_v51 = vpack.c.b16 %v865_v43, %v864_v21  ;;  %v666_v11 = vrot.slane %v3889_v61, 1 }
 0x142   : > { %v1998_v35 = vpop.f32.mrf.mxu0 }
 0x143   : > { %v3884_v32 = vadd.f32 %v1996_v53, %v1908_v17  ;;  %v591_v17 = vrot.slane %v4222_v63, 2  ;;  %v592_v53 = vrot.slane %v4223_v58, 2  ;;  %v667_v52 = vsel %vm370_vm0, %v665_v49, %v666_v11 }
 0x144   : > { %v669_v21 = vsel %vm370_vm0, %v666_v11, %v668_v62  ;;  %v672_v16 = vpack.c.bf16 %v667_v52, %v667_v52 }
 0x145   : > { %4227 = vst [vmem:[#allocation38_spill] sm:$0xff] %v3884_v32  ;;  %v593_v28 = vsel %vm515_vm1, %v591_v17, %v592_v53  ;;  %v595_v63 = vsel %vm515_vm1, %v592_v53, %v594_v3  ;;  %v661_v17 = vpack.c.bf16 %v3889_v61, %v3889_v61  ;;  %v673_v53 = vpack.c.bf16 %v669_v21, %v669_v21 }
 0x146   : > { %v1820_v40 = vpop.f32.mrf.mxu2 }
 0x147   : > { %v1821_v39 = vadd.f32 %v1820_v40, %v1732_v46  ;;  %v1909_v54 = vpop.f32.mrf.mxu3  ;;  %v997_v62 = vunpack.c.l.b16 %v661_v17 }
 0x148   : > { %v1734_v19 = vpop.f32.mrf.mxu1 }
 0x149   : > { %v1910_v5 = vadd.f32 %v1909_v54, %v1821_v39  ;;  %v1735_v58 = vadd.f32 %v1734_v19, %v3627_v45  ;;  %v658_v39 = vpack.c.bf16 %v593_v28, %v593_v28  ;;  %v1003_v28 = vunpack.c.l.b16 %v673_v53 }
 0x14a   : > { %v2001_v48 = vpop.f32.mrf.mxu0 }
 0x14b   : > { %1773 = vmatmul.bf16.gmra.mxu1 %v3863_v1  ;;  %1862 = vmatmul.bf16.gmra.mxu2 %v3892_v55  ;;  %v3904_v33 = vadd.f32 %v1998_v35, %v1910_v5  ;;  %v659_v35 = vpack.c.bf16 %v595_v63, %v595_v63  ;;  %v660_v5 = vpack.c.bf16 %v3887_v4, %v3887_v4  ;;  %v960_v19 = vunpack.c.l.b16 %v658_v39 }
 0x14c   : > { %1951 = vmatmul.bf16.gmra.mxu3 %v4230_v13 }
 0x14d   : > { %4229 = vst [vmem:[#allocation40_spill] sm:$0xff] %v3904_v33  ;;  %2040 = vmatmul.bf16.gmra.mxu0 %v3894_v51  ;;  %v961_v49 = vunpack.c.l.b16 %v659_v35  ;;  %v996_v11 = vunpack.c.l.b16 %v660_v5 }
 0x14e   : > { %v1823_v43 = vpop.f32.mrf.mxu2 }
 0x14f   : > { %v1824_v46 = vadd.f32 %v1823_v43, %v1735_v58  ;;  %v1912_v40 = vpop.f32.mrf.mxu3  ;;  %v1002_v58 = vunpack.c.l.b16 %v672_v16  ;;  %v3920_v47 = vpack.c.b16 %v961_v49, %v960_v19  ;;  %v3922_v52 = vpack.c.b16 %v997_v62, %v996_v11 }
 0x150   : > { %v1736_v54 = vpop.f32.mrf.mxu1 }
 0x151   : > { %v1913_v3 = vadd.f32 %v1912_v40, %v1824_v46  ;;  %v1737_v63 = vadd.f32 %v1736_v54, %v3655_v9  ;;  %v3924_v21 = vpack.c.b16 %v1003_v28, %v1002_v58 }
 0x152   : > { %v2003_v45 = vpop.f32.mrf.mxu0 }
 0x153   : > { %v3917_v33 = vadd.f32 %v2001_v48, %v1913_v3 }
 0x156   : > { %v1825_v43 = vpop.f32.mrf.mxu2 }
 0x157   : > { %v1826_v32 = vadd.f32 %v1825_v43, %v1737_v63  ;;  %v1914_v13 = vpop.f32.mrf.mxu3 }
 0x158   : > { %v1739_v61 = vpop.f32.mrf.mxu1 }
 0x159   : > { %v1915_v46 = vadd.f32 %v1914_v13, %v1826_v32  ;;  %v1740_v9 = vadd.f32 %v1739_v61, %v3672_v37 }
 0x15a   : > { %v2006_v40 = vpop.f32.mrf.mxu0 }
 0x15b   : > { %1778 = vmatmul.bf16.gmra.mxu1 %v3894_v51  ;;  %1867 = vmatmul.bf16.gmra.mxu2 %v3920_v47  ;;  %v3928_v16 = vadd.f32 %v2003_v45, %v1915_v46 }
 0x15c   : > { %1956 = vmatmul.bf16.gmra.mxu3 %v3922_v52 }
 0x15d   : > { %2045 = vmatmul.bf16.gmra.mxu0 %v3924_v21 }
 0x15e   : > { %v1828_v48 = vpop.f32.mrf.mxu2 }
 0x15f   : > { %v1829_v39 = vadd.f32 %v1828_v48, %v1740_v9  ;;  %v1917_v35 = vpop.f32.mrf.mxu3 }
 0x160   : > { %v1741_v54 = vpop.f32.mrf.mxu1 }
 0x161   : > { %v1918_v5 = vadd.f32 %v1917_v35, %v1829_v39  ;;  %v1742_v13 = vadd.f32 %v1741_v54, %v3694_v50 }
 0x162   : > { %v2008_v17 = vpop.f32.mrf.mxu0 }
 0x163   : > { %v3933_v32 = vadd.f32 %v2006_v40, %v1918_v5 }
 0x166   : > { %v1830_v53 = vpop.f32.mrf.mxu2 }
 0x167   : > { %v1831_v3 = vadd.f32 %v1830_v53, %v1742_v13  ;;  %v1919_v45 = vpop.f32.mrf.mxu3 }
 0x168   : > { %v1744_v19 = vpop.f32.mrf.mxu1 }
 0x169   : > { %v1920_v49 = vadd.f32 %v1919_v45, %v1831_v3  ;;  %v1745_v61 = vadd.f32 %v1744_v19, %v3573_v29 }
 0x16a   : > { %v2011_v11 = vpop.f32.mrf.mxu0 }
 0x16b   : > { %2059 = vmatmul.bf16.vlgmr.msra.gmra.mxu1 %v3485_v14  ;;  %2148 = vmatmul.bf16.vlgmr.msra.gmra.mxu2 %v3385_v44  ;;  %v3938_v37 = vadd.f32 %v2008_v17, %v1920_v49 }
 0x16c   : > { %2237 = vmatmul.bf16.vlgmr.msra.gmra.mxu3 %v3487_v18 }
 0x16d   : > { %2326 = vmatmul.bf16.vlgmr.msra.gmra.mxu0 %v3501_v7 }
 0x16e   : > { %v1833_v62 = vpop.f32.mrf.mxu2 }
 0x16f   : > { %v1834_v50 = vadd.f32 %v1833_v62, %v1745_v61  ;;  %v1922_v58 = vpop.f32.mrf.mxu3  ;;  %v4231_v61 = vld [vmem:[#allocation15_spill] sm:$0xff]  ;;  %v4232_v62 = vld [vmem:[#allocation25_spill] sm:$0xff] }
 0x170   : > { %v1746_v28 = vpop.f32.mrf.mxu1 }
 0x171   : > { %v1923_v63 = vadd.f32 %v1922_v58, %v1834_v50  ;;  %v1747_v14 = vadd.f32 %v1746_v28, %v3588_v60 }
 0x172   : > { %v2013_v43 = vpop.f32.mrf.mxu0 }
 0x173   : > { %v3943_v46 = vadd.f32 %v2011_v11, %v1923_v63 }
 0x176   : > { %v1835_v40 = vpop.f32.mrf.mxu2 }
 0x177   : > { %v1836_v44 = vadd.f32 %v1835_v40, %v1747_v14  ;;  %v1924_v9 = vpop.f32.mrf.mxu3 }
 0x178   : > { %v1749_v48 = vpop.f32.mrf.mxu1 }
 0x179   : > { %v1925_v39 = vadd.f32 %v1924_v9, %v1836_v44  ;;  %v1750_v35 = vadd.f32 %v1749_v48, %v3612_v10  ;;  %v4233_v44 = vld [vmem:[#allocation27_spill] sm:$0xff] }
 0x17a   : > { %v2016_v18 = vpop.f32.mrf.mxu0 }
 0x17b   : > { %2064 = vmatmul.bf16.gmra.mxu1 %v3501_v7  ;;  %2153 = vmatmul.bf16.gmra.mxu2 %v3444_v8  ;;  %v3948_v29 = vadd.f32 %v2013_v43, %v1925_v39 }
 0x17c   : > { %2242 = vmatmul.bf16.gmra.mxu3 %v3503_v27 }
 0x17d   : > { %2331 = vmatmul.bf16.gmra.mxu0 %v3530_v57 }
 0x17e   : > { %v1838_v54 = vpop.f32.mrf.mxu2 }
 0x17f   : > { %v1839_v60 = vadd.f32 %v1838_v54, %v1750_v35  ;;  %v1927_v5 = vpop.f32.mrf.mxu3  ;;  %v4234_v35 = vld [vmem:[#allocation4_spill] sm:$0xff] }
 0x180   : > { %v1751_v17 = vpop.f32.mrf.mxu1 }
 0x181   : > { %v1928_v13 = vadd.f32 %v1927_v5, %v1839_v60  ;;  %v1752_v7 = vadd.f32 %v1751_v17, %v3621_v34  ;;  %v4235_v60 = vld [vmem:[#allocation16_spill] sm:$0xff]  ;;  %v4236_v5 = vld [vmem:[#allocation19_spill] sm:$0xff] }
 0x182   : > { %v2018_v53 = vpop.f32.mrf.mxu0  ;;  %v4237_v17 = vld [vmem:[#allocation31_spill] sm:$0xff] }
 0x183   : > { %v3953_v3 = vadd.f32 %v2016_v18, %v1928_v13 }
 0x186   : > { %v1840_v45 = vpop.f32.mrf.mxu2 }
 0x187   : > { %v1841_v8 = vadd.f32 %v1840_v45, %v1752_v7  ;;  %v1929_v19 = vpop.f32.mrf.mxu3 }
 0x188   : > { %v1754_v49 = vpop.f32.mrf.mxu1 }
 0x189   : > { %v1930_v11 = vadd.f32 %v1929_v19, %v1841_v8  ;;  %v1755_v50 = vadd.f32 %v1754_v49, %v4232_v62 }
 0x18a   : > { %v2021_v27 = vpop.f32.mrf.mxu0 }
 0x18b   : > { %2069 = vmatmul.bf16.gmra.mxu1 %v3530_v57  ;;  %2158 = vmatmul.bf16.gmra.mxu2 %v3193_v38  ;;  %v3958_v10 = vadd.f32 %v2018_v53, %v1930_v11 }
 0x18c   : > { %2247 = vmatmul.bf16.gmra.mxu3 %v3532_v22 }
 0x18d   : > { %2336 = vmatmul.bf16.gmra.mxu0 %v4231_v61 }
 0x18e   : > { %v1843_v58 = vpop.f32.mrf.mxu2 }
 0x18f   : > { %v1844_v34 = vadd.f32 %v1843_v58, %v1755_v50  ;;  %v1932_v28 = vpop.f32.mrf.mxu3 }
 0x190   : > { %v1756_v63 = vpop.f32.mrf.mxu1 }
 0x191   : > { %v1933_v43 = vadd.f32 %v1932_v28, %v1844_v34  ;;  %v1757_v57 = vadd.f32 %v1756_v63, %v4233_v44  ;;  %v4240_v44 = vld [vmem:[#allocation20_spill] sm:$0xff] }
 0x192   : > { %v2023_v14 = vpop.f32.mrf.mxu0 }
 0x193   : > { %v3963_v40 = vadd.f32 %v2021_v27, %v1933_v43  ;;  %v4238_v27 = vld [vmem:[#allocation33_spill] sm:$0xff] }
 0x194   : > { %v4239_v43 = vld [vmem:[#allocation9_spill] sm:$0xff] }
 0x196   : > { %v1845_v9 = vpop.f32.mrf.mxu2 }
 0x197   : > { %v1846_v38 = vadd.f32 %v1845_v9, %v1757_v57  ;;  %v1934_v48 = vpop.f32.mrf.mxu3  ;;  %v4241_v57 = vld [vmem:[#allocation23_spill] sm:$0xff]  ;;  %v4242_v9 = vld [vmem:[#allocation17_spill] sm:$0xff] }
 0x198   : > { %v1759_v39 = vpop.f32.mrf.mxu1 }
 0x199   : > { %v1935_v18 = vadd.f32 %v1934_v48, %v1846_v38  ;;  %v1760_v13 = vadd.f32 %v1759_v39, %v4237_v17 }
 0x19a   : > { %v2026_v22 = vpop.f32.mrf.mxu0 }
 0x19b   : > { %2074 = vmatmul.bf16.gmra.mxu1 %v4231_v61  ;;  %2163 = vmatmul.bf16.gmra.mxu2 %v4234_v35  ;;  %v3968_v54 = vadd.f32 %v2023_v14, %v1935_v18 }
 0x19c   : > { %2252 = vmatmul.bf16.gmra.mxu3 %v4235_v60 }
 0x19d   : > { %2341 = vmatmul.bf16.gmra.mxu0 %v4236_v5 }
 0x19e   : > { %v1848_v53 = vpop.f32.mrf.mxu2 }
 0x19f   : > { %v1849_v7 = vadd.f32 %v1848_v53, %v1760_v13  ;;  %v1937_v45 = vpop.f32.mrf.mxu3  ;;  %v4243_v13 = vld [vmem:[#allocation18_spill] sm:$0xff] }
 0x1a0   : > { %v1761_v8 = vpop.f32.mrf.mxu1 }
 0x1a1   : > { %v1938_v19 = vadd.f32 %v1937_v45, %v1849_v7  ;;  %v1762_v61 = vadd.f32 %v1761_v8, %v4238_v27  ;;  %v4244_v27 = vld [vmem:[#allocation13_spill] sm:$0xff] }
 0x1a2   : > { %v2028_v49 = vpop.f32.mrf.mxu0 }
 0x1a3   : > { %v3973_v11 = vadd.f32 %v2026_v22, %v1938_v19 }
 0x1a6   : > { %v1850_v62 = vpop.f32.mrf.mxu2 }
 0x1a7   : > { %v1851_v50 = vadd.f32 %v1850_v62, %v1762_v61  ;;  %v1939_v58 = vpop.f32.mrf.mxu3  ;;  %v4245_v62 = vld [vmem:[#allocation24_spill] sm:$0xff] }
 0x1a8   : > { %v1764_v34 = vpop.f32.mrf.mxu1 }
 0x1a9   : > { %v1940_v28 = vadd.f32 %v1939_v58, %v1851_v50  ;;  %v1765_v38 = vadd.f32 %v1764_v34, %v4242_v9  ;;  %v4246_v50 = vld [vmem:[#allocation29_spill] sm:$0xff] }
 0x1aa   : > { %v2031_v63 = vpop.f32.mrf.mxu0  ;;  %v4247_v58 = vld [vmem:[#allocation21_spill] sm:$0xff] }
 0x1ab   : > { %2079 = vmatmul.bf16.gmra.mxu1 %v4236_v5  ;;  %2168 = vmatmul.bf16.gmra.mxu2 %v4239_v43  ;;  %v3978_v14 = vadd.f32 %v2028_v49, %v1940_v28 }
 0x1ac   : > { %2257 = vmatmul.bf16.gmra.mxu3 %v4240_v44 }
 0x1ad   : > { %2346 = vmatmul.bf16.gmra.mxu0 %v4241_v57 }
 0x1ae   : > { %v1853_v48 = vpop.f32.mrf.mxu2 }
 0x1af   : > { %v1854_v39 = vadd.f32 %v1853_v48, %v1765_v38  ;;  %v1942_v18 = vpop.f32.mrf.mxu3 }
 0x1b0   : > { %v1766_v22 = vpop.f32.mrf.mxu1 }
 0x1b1   : > { %v1943_v35 = vadd.f32 %v1942_v18, %v1854_v39  ;;  %v1767_v5 = vadd.f32 %v1766_v22, %v4243_v13  ;;  %v4248_v39 = vld [vmem:[#allocation22_spill] sm:$0xff] }
 0x1b2   : > { %v2033_v60 = vpop.f32.mrf.mxu0 }
 0x1b3   : > { %v3983_v17 = vadd.f32 %v2031_v63, %v1943_v35 }
 0x1b6   : > { %v1855_v53 = vpop.f32.mrf.mxu2 }
 0x1b7   : > { %v1856_v7 = vadd.f32 %v1855_v53, %v1767_v5  ;;  %v1944_v45 = vpop.f32.mrf.mxu3  ;;  %v4249_v53 = vld [vmem:[#allocation2_spill] sm:$0xff] }
 0x1b8   : > { %v1769_v8 = vpop.f32.mrf.mxu1 }
 0x1b9   : > { %v1945_v19 = vadd.f32 %v1944_v45, %v1856_v7  ;;  %v1770_v34 = vadd.f32 %v1769_v8, %v4247_v58  ;;  %v4250_v45 = vld [vmem:[#allocation30_spill] sm:$0xff]  ;;  %v4251_v8 = vld [vmem:[#allocation35_spill] sm:$0xff] }
 0x1ba   : > { %v2036_v49 = vpop.f32.mrf.mxu0 }
 0x1bb   : > { %2084 = vmatmul.bf16.gmra.mxu1 %v4241_v57  ;;  %2173 = vmatmul.bf16.gmra.mxu2 %v4244_v27  ;;  %v3988_v61 = vadd.f32 %v2033_v60, %v1945_v19  ;;  %v4252_v19 = vld [vmem:[#allocation26_spill] sm:$0xff] }
 0x1bc   : > { %2262 = vmatmul.bf16.gmra.mxu3 %v4245_v62 }
 0x1bd   : > { %2351 = vmatmul.bf16.gmra.mxu0 %v4246_v50 }
 0x1be   : > { %v1858_v28 = vpop.f32.mrf.mxu2 }
 0x1bf   : > { %v1859_v63 = vadd.f32 %v1858_v28, %v1770_v34  ;;  %v1947_v43 = vpop.f32.mrf.mxu3 }
 0x1c0   : > { %v1771_v44 = vpop.f32.mrf.mxu1 }
 0x1c1   : > { %v1948_v9 = vadd.f32 %v1947_v43, %v1859_v63  ;;  %v1772_v57 = vadd.f32 %v1771_v44, %v4248_v39  ;;  %v4253_v44 = vld [vmem:[#allocation28_spill] sm:$0xff] }
 0x1c2   : > { %v2038_v38 = vpop.f32.mrf.mxu0 }
 0x1c3   : > { %v3993_v48 = vadd.f32 %v2036_v49, %v1948_v9 }
 0x1c6   : > { %v1860_v18 = vpop.f32.mrf.mxu2 }
 0x1c7   : > { %v1861_v22 = vadd.f32 %v1860_v18, %v1772_v57  ;;  %v1949_v35 = vpop.f32.mrf.mxu3 }
 0x1c8   : > { %v1774_v60 = vpop.f32.mrf.mxu1 }
 0x1c9   : > { %v1950_v13 = vadd.f32 %v1949_v35, %v1861_v22  ;;  %v1775_v49 = vadd.f32 %v1774_v60, %v4252_v19  ;;  %v4254_v35 = vld [vmem:[#allocation5_spill] sm:$0xff] }
 0x1ca   : > { %v2041_v5 = vpop.f32.mrf.mxu0 }
 0x1cb   : > { %2089 = vmatmul.bf16.gmra.mxu1 %v4246_v50  ;;  %2178 = vmatmul.bf16.gmra.mxu2 %v4249_v53  ;;  %v3998_v7 = vadd.f32 %v2038_v38, %v1950_v13  ;;  %v4255_v13 = vld [vmem:[#allocation32_spill] sm:$0xff] }
 0x1cc   : > { %2267 = vmatmul.bf16.gmra.mxu3 %v4250_v45 }
 0x1cd   : > { %2356 = vmatmul.bf16.gmra.mxu0 %v4251_v8 }
 0x1ce   : > { %v1863_v27 = vpop.f32.mrf.mxu2 }
 0x1cf   : > { %v1864_v62 = vadd.f32 %v1863_v27, %v1775_v49  ;;  %v1952_v58 = vpop.f32.mrf.mxu3 }
 0x1d0   : > { %v1776_v34 = vpop.f32.mrf.mxu1 }
 0x1d1   : > { %v1953_v28 = vadd.f32 %v1952_v58, %v1864_v62  ;;  %v1777_v50 = vadd.f32 %v1776_v34, %v4253_v44  ;;  %v4256_v34 = vld [vmem:[#allocation34_spill] sm:$0xff] }
 0x1d2   : > { %v2043_v63 = vpop.f32.mrf.mxu0 }
 0x1d3   : > { %v4003_v43 = vadd.f32 %v2041_v5, %v1953_v28 }
 0x1d6   : > { %v1865_v9 = vpop.f32.mrf.mxu2 }
 0x1d7   : > { %v1866_v39 = vadd.f32 %v1865_v9, %v1777_v50  ;;  %v1954_v38 = vpop.f32.mrf.mxu3 }
 0x1d8   : > { %v1779_v57 = vpop.f32.mrf.mxu1 }
 0x1d9   : > { %v1955_v18 = vadd.f32 %v1954_v38, %v1866_v39  ;;  %v1780_v5 = vadd.f32 %v1779_v57, %v4255_v13 }
 0x1da   : > { %v2046_v22 = vpop.f32.mrf.mxu0 }
 0x1db   : > { %2094 = vmatmul.bf16.gmra.mxu1 %v4251_v8  ;;  %2183 = vmatmul.bf16.gmra.mxu2 %v4254_v35  ;;  %v4008_v60 = vadd.f32 %v2043_v63, %v1955_v18 }
 0x1dc   : > { %2272 = vmatmul.bf16.gmra.mxu3 %v3707_v20 }
 0x1dd   : > { %2361 = vmatmul.bf16.gmra.mxu0 %v3736_v23 }
 0x1de   : > { %v1868_v53 = vpop.f32.mrf.mxu2 }
 0x1df   : > { %v1869_v45 = vadd.f32 %v1868_v53, %v1780_v5  ;;  %v1957_v19 = vpop.f32.mrf.mxu3 }
 0x1e0   : > { %v1781_v49 = vpop.f32.mrf.mxu1 }
 0x1e1   : > { %v1958_v27 = vadd.f32 %v1957_v19, %v1869_v45  ;;  %v1782_v8 = vadd.f32 %v1781_v49, %v4256_v34 }
 0x1e2   : > { %v2048_v62 = vpop.f32.mrf.mxu0 }
 0x1e3   : > { %v4013_v58 = vadd.f32 %v2046_v22, %v1958_v27 }
 0x1e6   : > { %v1870_v28 = vpop.f32.mrf.mxu2 }
 0x1e7   : > { %v1871_v63 = vadd.f32 %v1870_v28, %v1782_v8  ;;  %v1959_v44 = vpop.f32.mrf.mxu3 }
 0x1e8   : > { %v2060_v50 = vpop.f32.mrf.mxu1 }
 0x1e9   : > { %v1960_v20 = vadd.f32 %v1959_v44, %v1871_v63  ;;  %v2061_v38 = vadd.f32 %v2060_v50, %v3734_v56 }
 0x1ea   : > { %v2327_v9 = vpop.f32.mrf.mxu0 }
 0x1eb   : > { %2099 = vmatmul.bf16.gmra.mxu1 %v3736_v23  ;;  %2188 = vmatmul.bf16.gmra.mxu2 %v3380_v41  ;;  %v4018_v39 = vadd.f32 %v2048_v62, %v1960_v20 }
 0x1ec   : > { %2277 = vmatmul.bf16.gmra.mxu3 %v3740_v24 }
 0x1ed   : > { %2366 = vmatmul.bf16.gmra.mxu0 %v3762_v6 }
 0x1ee   : > { %v2149_v57 = vpop.f32.mrf.mxu2 }
 0x1ef   : > { %v2150_v18 = vadd.f32 %v2149_v57, %v2061_v38  ;;  %v2238_v22 = vpop.f32.mrf.mxu3 }
 0x1f0   : > { %v2062_v35 = vpop.f32.mrf.mxu1 }
 0x1f1   : > { %v2239_v13 = vadd.f32 %v2238_v22, %v2150_v18  ;;  %v2063_v23 = vadd.f32 %v2062_v35, %v3749_v26 }
 0x1f2   : > { %v2329_v5 = vpop.f32.mrf.mxu0 }
 0x1f3   : > { %v2328_v41 = vadd.f32 %v2327_v9, %v2239_v13 }
 0x1f5   : > { %2407 = vst [vmem:[%s4027_s20] sm:$0xff] %v2328_v41  ;;  %v2476_v62 = vmul.f32 %v2328_v41, %v2328_v41 }
 0x1f6   : > { %v2151_v24 = vpop.f32.mrf.mxu2 }
 0x1f7   : > { %v2152_v56 = vadd.f32 %v2151_v24, %v2063_v23  ;;  %v2240_v53 = vpop.f32.mrf.mxu3 }
 0x1f8   : > { %v2065_v45 = vpop.f32.mrf.mxu1 }
 0x1f9   : > { %v2241_v19 = vadd.f32 %v2240_v53, %v2152_v56  ;;  %v2066_v8 = vadd.f32 %v2065_v45, %v3760_v59  ;;  %v4257_v56 = vld [vmem:[#allocation36_spill] sm:$0xff] }
 0x1fa   : > { %v2332_v49 = vpop.f32.mrf.mxu0 }
 0x1fb   : > { %v2330_v27 = vadd.f32 %v2329_v5, %v2241_v19  ;;  %2104 = vmatmul.bf16.gmra.mxu1 %v3762_v6  ;;  %2193 = vmatmul.bf16.gmra.mxu2 %v3440_v2 }
 0x1fc   : > { %2282 = vmatmul.bf16.gmra.mxu3 %v3764_v25 }
 0x1fd   : > { %2371 = vmatmul.bf16.gmra.mxu0 %v3797_v12  ;;  %2408 = vst [vmem:[%s4027_s20 + $0x8] sm:$0xff] %v2330_v27  ;;  %v2439_v34 = vadd.f32 %v2330_v27, %v2328_v41  ;;  %v2477_v26 = vmul.f32 %v2330_v27, %v2330_v27 }
 0x1fe   : > { %v2154_v28 = vpop.f32.mrf.mxu2 }
 0x1ff   : > { %v2508_v63 = vadd.f32 %v2477_v26, %v2476_v62  ;;  %v2155_v44 = vadd.f32 %v2154_v28, %v2066_v8  ;;  %v2243_v50 = vpop.f32.mrf.mxu3 }
 0x200   : > { %v2067_v20 = vpop.f32.mrf.mxu1 }
 0x201   : > { %v2244_v9 = vadd.f32 %v2243_v50, %v2155_v44  ;;  %v2068_v57 = vadd.f32 %v2067_v20, %v3774_v0 }
 0x202   : > { %v2334_v6 = vpop.f32.mrf.mxu0 }
 0x203   : > { %v2333_v38 = vadd.f32 %v2332_v49, %v2244_v9 }
 0x205   : > { %2409 = vst [vmem:[%s4027_s20 + $0x10] sm:$0xff] %v2333_v38  ;;  %v2440_v2 = vadd.f32 %v2439_v34, %v2333_v38  ;;  %v2478_v25 = vmul.f32 %v2333_v38, %v2333_v38 }
 0x206   : > { %v2156_v18 = vpop.f32.mrf.mxu2 }
 0x207   : > { %v2509_v22 = vadd.f32 %v2508_v63, %v2478_v25  ;;  %v2157_v35 = vadd.f32 %v2156_v18, %v2068_v57  ;;  %v2245_v13 = vpop.f32.mrf.mxu3  ;;  %v4259_v25 = vld [vmem:[#allocation6_spill] sm:$0xff] }
 0x208   : > { %v2070_v5 = vpop.f32.mrf.mxu1 }
 0x209   : > { %v2246_v59 = vadd.f32 %v2245_v13, %v2157_v35  ;;  %v2071_v53 = vadd.f32 %v2070_v5, %v4257_v56 }
 0x20a   : > { %v2337_v41 = vpop.f32.mrf.mxu0 }
 0x20b   : > { %v2335_v23 = vadd.f32 %v2334_v6, %v2246_v59  ;;  %2109 = vmatmul.bf16.gmra.mxu1 %v3797_v12  ;;  %2198 = vmatmul.bf16.gmra.mxu2 %v4214_v30 }
 0x20c   : > { %2287 = vmatmul.bf16.gmra.mxu3 %v3799_v36  ;;  %v4258_v36 = vld [vmem:[#allocation37_spill] sm:$0xff] }
 0x20d   : > { %2376 = vmatmul.bf16.gmra.mxu0 %v3823_v15  ;;  %2410 = vst [vmem:[%s4027_s20 + $0x18] sm:$0xff] %v2335_v23  ;;  %v2441_v24 = vadd.f32 %v2440_v2, %v2335_v23  ;;  %v2479_v0 = vmul.f32 %v2335_v23, %v2335_v23 }
 0x20e   : > { %v2159_v45 = vpop.f32.mrf.mxu2 }
 0x20f   : > { %v2510_v19 = vadd.f32 %v2509_v22, %v2479_v0  ;;  %v2160_v49 = vadd.f32 %v2159_v45, %v2071_v53  ;;  %v2248_v27 = vpop.f32.mrf.mxu3  ;;  %v4260_v22 = vld [vmem:[#allocation3_spill] sm:$0xff] }
 0x210   : > { %v2072_v62 = vpop.f32.mrf.mxu1 }
 0x211   : > { %v2249_v34 = vadd.f32 %v2248_v27, %v2160_v49  ;;  %v2073_v28 = vadd.f32 %v2072_v62, %v4258_v36 }
 0x212   : > { %v2339_v26 = vpop.f32.mrf.mxu0 }
 0x213   : > { %v2338_v12 = vadd.f32 %v2337_v41, %v2249_v34 }
 0x215   : > { %2411 = vst [vmem:[%s4027_s20 + $0x20] sm:$0xff] %v2338_v12  ;;  %v2442_v30 = vadd.f32 %v2441_v24, %v2338_v12  ;;  %v2480_v8 = vmul.f32 %v2338_v12, %v2338_v12 }
 0x216   : > { %v2161_v63 = vpop.f32.mrf.mxu2 }
 0x217   : > { %v2511_v44 = vadd.f32 %v2510_v19, %v2480_v8  ;;  %v2162_v50 = vadd.f32 %v2161_v63, %v2073_v28  ;;  %v2250_v20 = vpop.f32.mrf.mxu3  ;;  %v4263_v28 = vld [vmem:[#allocation8_spill] sm:$0xff] }
 0x218   : > { %v2075_v9 = vpop.f32.mrf.mxu1 }
 0x219   : > { %v2251_v6 = vadd.f32 %v2250_v20, %v2162_v50  ;;  %v2076_v35 = vadd.f32 %v2075_v9, %v4260_v22  ;;  %v4264_v22 = vld [vmem:[#allocation11_spill] sm:$0xff] }
 0x21a   : > { %v2342_v38 = vpop.f32.mrf.mxu0 }
 0x21b   : > { %v2340_v2 = vadd.f32 %v2339_v26, %v2251_v6  ;;  %2114 = vmatmul.bf16.gmra.mxu1 %v3823_v15  ;;  %2203 = vmatmul.bf16.gmra.mxu2 %v4219_v42 }
 0x21c   : > { %2292 = vmatmul.bf16.gmra.mxu3 %v3825_v31  ;;  %v4261_v31 = vld [vmem:[#allocation7_spill] sm:$0xff] }
 0x21d   : > { %2381 = vmatmul.bf16.gmra.mxu0 %v4259_v25  ;;  %2412 = vst [vmem:[%s4027_s20 + $0x28] sm:$0xff] %v2340_v2  ;;  %v2443_v57 = vadd.f32 %v2442_v30, %v2340_v2  ;;  %v2481_v18 = vmul.f32 %v2340_v2, %v2340_v2  ;;  %v4262_v30 = vld [vmem:[#allocation10_spill] sm:$0xff] }
 0x21e   : > { %v2164_v13 = vpop.f32.mrf.mxu2 }
 0x21f   : > { %v2512_v5 = vadd.f32 %v2511_v44, %v2481_v18  ;;  %v2165_v59 = vadd.f32 %v2164_v13, %v2076_v35  ;;  %v2253_v41 = vpop.f32.mrf.mxu3 }
 0x220   : > { %v2077_v23 = vpop.f32.mrf.mxu1 }
 0x221   : > { %v2254_v24 = vadd.f32 %v2253_v41, %v2165_v59  ;;  %v2078_v53 = vadd.f32 %v2077_v23, %v4261_v31  ;;  %v674_v23 = vrot.slane %v3887_v4, 2 }
 0x222   : > { %v2344_v0 = vpop.f32.mrf.mxu0 }
 0x223   : > { %v2343_v15 = vadd.f32 %v2342_v38, %v2254_v24  ;;  %v4265_v24 = vld [vmem:[#allocation39_spill] sm:$0xff] }
 0x225   : > { %2413 = vst [vmem:[%s4027_s20 + $0x30] sm:$0xff] %v2343_v15  ;;  %v2444_v42 = vadd.f32 %v2443_v57, %v2343_v15  ;;  %v2482_v56 = vmul.f32 %v2343_v15, %v2343_v15  ;;  %v4266_v15 = vld [vmem:[#allocation12_spill] sm:$0xff] }
 0x226   : > { %v2166_v45 = vpop.f32.mrf.mxu2 }
 0x227   : > { %v2513_v19 = vadd.f32 %v2512_v5, %v2482_v56  ;;  %v2167_v49 = vadd.f32 %v2166_v45, %v2078_v53  ;;  %v2255_v27 = vpop.f32.mrf.mxu3 }
 0x228   : > { %v2080_v62 = vpop.f32.mrf.mxu1 }
 0x229   : > { %v2256_v34 = vadd.f32 %v2255_v27, %v2167_v49  ;;  %v2081_v63 = vadd.f32 %v2080_v62, %v4263_v28 }
 0x22a   : > { %v2347_v26 = vpop.f32.mrf.mxu0 }
 0x22b   : > { %v2345_v12 = vadd.f32 %v2344_v0, %v2256_v34  ;;  %2119 = vmatmul.bf16.gmra.mxu1 %v4259_v25  ;;  %2208 = vmatmul.bf16.gmra.mxu2 %v4262_v30  ;;  %v675_v0 = vrot.slane %v4265_v24, 2  ;;  %v4269_v34 = vld [vmem:[#allocation38_spill] sm:$0xff] }
 0x22c   : > { %2297 = vmatmul.bf16.gmra.mxu3 %v3863_v1 }
 0x22d   : > { %2386 = vmatmul.bf16.gmra.mxu0 %v3892_v55  ;;  %2414 = vst [vmem:[%s4027_s20 + $0x38] sm:$0xff] %v2345_v12  ;;  %v2445_v8 = vadd.f32 %v2444_v42, %v2345_v12  ;;  %v2483_v36 = vmul.f32 %v2345_v12, %v2345_v12  ;;  %v4267_v42 = vunpack.c.l.bf16 %v4266_v15  ;;  %v676_v49 = vsel %vm515_vm1, %v674_v23, %v675_v0 }
 0x22e   : > { %v2169_v44 = vpop.f32.mrf.mxu2 }
 0x22f   : > { %v2514_v50 = vadd.f32 %v2513_v19, %v2483_v36  ;;  %v2170_v20 = vadd.f32 %v2169_v44, %v2081_v63  ;;  %v2258_v9 = vpop.f32.mrf.mxu3  ;;  %v677_v56 = vrot.slane %v4267_v42, 2  ;;  %v4268_v19 = vld [vmem:[#allocation14_spill] sm:$0xff]  ;;  %v681_v36 = vpack.c.bf16 %v676_v49, %v676_v49  ;;  %v233_v63 = vld [vmem:[%s3137_s25 + $0xcc] sm:$0xff]  }
 0x230   : > { %v2082_v6 = vpop.f32.mrf.mxu1 }
 0x231   : > { %v2259_v38 = vadd.f32 %v2258_v9, %v2170_v20  ;;  %v2083_v1 = vadd.f32 %v2082_v6, %v4264_v22  ;;  %v678_v4 = vsel %vm515_vm1, %v675_v0, %v677_v56  ;;  %v235_v20 = vld [vmem:[%s3137_s25 + $0xd4] sm:$0x1]  ;;  %v1008_v6 = vunpack.c.l.b16 %v681_v36  ;;  %s2642_s25 = sshll.u32 %s4272_s13, 1 }
 0x232   : > { %v2349_v2 = vpop.f32.mrf.mxu0  ;;  %v682_v28 = vpack.c.bf16 %v678_v4, %v678_v4  ;;  %s181_s23 = scalar_lea.vmem %s4137_s3, %s2642_s25 }
 0x233   : > { %v2348_v25 = vadd.f32 %v2347_v26, %v2259_v38 }
 0x234   : > { %v1009_v38 = vunpack.c.l.b16 %v682_v28 }
 0x235   : > { %2415 = vst [vmem:[%s4027_s20 + $0x40] sm:$0xff] %v2348_v25  ;;  %v2446_v57 = vadd.f32 %v2445_v8, %v2348_v25  ;;  %v2484_v18 = vmul.f32 %v2348_v25, %v2348_v25  ;;  %v288_v25 = vunpack.c.h.bf16 %v233_v63 }
 0x236   : > { %v2171_v35 = vpop.f32.mrf.mxu2  ;;  %v1010_v23 = vpack.c.b16 %v1009_v38, %v1008_v6 }
 0x237   : > { %v2515_v13 = vadd.f32 %v2514_v50, %v2484_v18  ;;  %v2172_v5 = vadd.f32 %v2171_v35, %v2083_v1  ;;  %v2260_v59 = vpop.f32.mrf.mxu3  ;;  %v4270_v1 = vld [vmem:[#allocation40_spill] sm:$0xff]  ;;  %v689_v15 = vrot.slane %v288_v25, 1 }
 0x238   : > { %v2085_v41 = vpop.f32.mrf.mxu1 }
 0x239   : > { %v2261_v31 = vadd.f32 %v2260_v59, %v2172_v5  ;;  %v2086_v26 = vadd.f32 %v2085_v41, %v4269_v34 }
 0x23a   : > { %v2352_v53 = vpop.f32.mrf.mxu0 }
 0x23b   : > { %v2350_v45 = vadd.f32 %v2349_v2, %v2261_v31  ;;  %2124 = vmatmul.bf16.gmra.mxu1 %v3892_v55  ;;  %2213 = vmatmul.bf16.gmra.mxu2 %v4268_v19  ;;  %v287_v2 = vunpack.c.l.bf16 %v233_v63  ;;  %v698_v31 = vrot.slane %v288_v25, 2 }
 0x23c   : > { %2302 = vmatmul.bf16.gmra.mxu3 %v3894_v51 }
 0x23d   : > { %2391 = vmatmul.bf16.gmra.mxu0 %v3920_v47  ;;  %2416 = vst [vmem:[%s4027_s20 + $0x48] sm:$0xff] %v2350_v45  ;;  %v2447_v27 = vadd.f32 %v2446_v57, %v2350_v45  ;;  %v2485_v62 = vmul.f32 %v2350_v45, %v2350_v45  ;;  %v289_v57 = vunpack.c.l.bf16 %v235_v20  ;;  %v688_v24 = vrot.slane %v287_v2, 1 }
 0x23e   : > { %v2174_v12 = vpop.f32.mrf.mxu2  ;;  %v697_v56 = vrot.slane %v287_v2, 2  ;;  %v683_v36 = vpack.c.bf16 %v287_v2, %v287_v2 }
 0x23f   : > { %v2516_v30 = vadd.f32 %v2515_v13, %v2485_v62  ;;  %v2175_v55 = vadd.f32 %v2174_v12, %v2086_v26  ;;  %v2263_v8 = vpop.f32.mrf.mxu3  ;;  %v691_v42 = vrot.slane %v289_v57, 1  ;;  %v700_v19 = vrot.slane %v289_v57, 2 }
 0x240   : > { %v2087_v51 = vpop.f32.mrf.mxu1  ;;  %v690_v4 = vsel %vm370_vm0, %v688_v24, %v689_v15  ;;  %v699_v62 = vsel %vm515_vm1, %v697_v56, %v698_v31  ;;  %v1014_v38 = vunpack.c.l.b16 %v683_v36 }
 0x241   : > { %v2264_v44 = vadd.f32 %v2263_v8, %v2175_v55  ;;  %v2088_v35 = vadd.f32 %v2087_v51, %v4270_v1  ;;  %v695_v51 = vpack.c.bf16 %v690_v4, %v690_v4 }
 0x242   : > { %v2354_v50 = vpop.f32.mrf.mxu0 }
 0x243   : > { %v2353_v9 = vadd.f32 %v2352_v53, %v2264_v44  ;;  %v704_v44 = vpack.c.bf16 %v699_v62, %v699_v62 }
 0x245   : > { %2417 = vst [vmem:[%s4027_s20 + $0x50] sm:$0xff] %v2353_v9  ;;  %v2448_v18 = vadd.f32 %v2447_v27, %v2353_v9  ;;  %v2486_v22 = vmul.f32 %v2353_v9, %v2353_v9  ;;  %v692_v27 = vsel %vm370_vm0, %v689_v15, %v691_v42 }
 0x246   : > { %v2176_v13 = vpop.f32.mrf.mxu2  ;;  %v696_v63 = vpack.c.bf16 %v692_v27, %v692_v27 }
 0x247   : > { %v2517_v5 = vadd.f32 %v2516_v30, %v2486_v22  ;;  %v2177_v59 = vadd.f32 %v2176_v13, %v2088_v35  ;;  %v2265_v41 = vpop.f32.mrf.mxu3  ;;  %v701_v30 = vsel %vm515_vm1, %v698_v31, %v700_v19  ;;  %v1026_v22 = vunpack.c.l.b16 %v704_v44 }
 0x248   : > { %v2090_v0 = vpop.f32.mrf.mxu1 }
 0x249   : > { %v2266_v53 = vadd.f32 %v2265_v41, %v2177_v59  ;;  %v2091_v12 = vadd.f32 %v2090_v0, %v3917_v33  ;;  %v1020_v33 = vunpack.c.l.b16 %v695_v51 }
 0x24a   : > { %v2357_v45 = vpop.f32.mrf.mxu0 }
 0x24b   : > { %v2355_v49 = vadd.f32 %v2354_v50, %v2266_v53  ;;  %2129 = vmatmul.bf16.gmra.mxu1 %v3920_v47  ;;  %2218 = vmatmul.bf16.gmra.mxu2 %v3922_v52  ;;  %v705_v50 = vpack.c.bf16 %v701_v30, %v701_v30 }
 0x24c   : > { %2307 = vmatmul.bf16.gmra.mxu3 %v3924_v21  ;;  %v684_v21 = vpack.c.bf16 %v288_v25, %v288_v25 }
 0x24d   : > { %2396 = vmatmul.bf16.gmra.mxu0 %v1010_v23  ;;  %2418 = vst [vmem:[%s4027_s20 + $0x58] sm:$0xff] %v2355_v49  ;;  %v2449_v34 = vadd.f32 %v2448_v18, %v2355_v49  ;;  %v2487_v26 = vmul.f32 %v2355_v49, %v2355_v49  ;;  %v1021_v18 = vunpack.c.l.b16 %v696_v63  ;;  %v1027_v1 = vunpack.c.l.b16 %v705_v50 }
 0x24e   : > { %v2179_v55 = vpop.f32.mrf.mxu2  ;;  %v1015_v57 = vunpack.c.l.b16 %v684_v21 }
 0x24f   : > { %v2518_v47 = vadd.f32 %v2517_v5, %v2487_v26  ;;  %v2180_v8 = vadd.f32 %v2179_v55, %v2091_v12  ;;  %v2268_v52 = vpop.f32.mrf.mxu3  ;;  %v1022_v15 = vpack.c.b16 %v1021_v18, %v1020_v33  ;;  %v1028_v42 = vpack.c.b16 %v1027_v1, %v1026_v22 }
 0x250   : > { %v2092_v28 = vpop.f32.mrf.mxu1  ;;  %v1016_v24 = vpack.c.b16 %v1015_v57, %v1014_v38 }
 0x251   : > { %v2269_v20 = vadd.f32 %v2268_v52, %v2180_v8  ;;  %v2093_v2 = vadd.f32 %v2092_v28, %v3928_v16 }
 0x252   : > { %v2359_v9 = vpop.f32.mrf.mxu0 }
 0x253   : > { %v2358_v6 = vadd.f32 %v2357_v45, %v2269_v20 }
 0x255   : > { %2419 = vst [vmem:[%s4027_s20 + $0x60] sm:$0xff] %v2358_v6  ;;  %v2450_v35 = vadd.f32 %v2449_v34, %v2358_v6  ;;  %v2488_v13 = vmul.f32 %v2358_v6, %v2358_v6 }
 0x256   : > { %v2181_v25 = vpop.f32.mrf.mxu2 }
 0x257   : > { %v2519_v5 = vadd.f32 %v2518_v47, %v2488_v13  ;;  %v2182_v59 = vadd.f32 %v2181_v25, %v2093_v2  ;;  %v2270_v41 = vpop.f32.mrf.mxu3 }
 0x258   : > { %v2095_v0 = vpop.f32.mrf.mxu1 }
 0x259   : > { %v2271_v56 = vadd.f32 %v2270_v41, %v2182_v59  ;;  %v2096_v19 = vadd.f32 %v2095_v0, %v3933_v32 }
 0x25a   : > { %v2362_v31 = vpop.f32.mrf.mxu0 }
 0x25b   : > { %v2360_v53 = vadd.f32 %v2359_v9, %v2271_v56  ;;  %2134 = vmatmul.bf16.gmra.mxu1 %v1010_v23  ;;  %2223 = vmatmul.bf16.gmra.mxu2 %v1016_v24 }
 0x25c   : > { %2312 = vmatmul.bf16.gmra.mxu3 %v1022_v15 }
 0x25d   : > { %2401 = vmatmul.bf16.gmra.mxu0 %v1028_v42  ;;  %2420 = vst [vmem:[%s4027_s20 + $0x68] sm:$0xff] %v2360_v53  ;;  %v2451_v45 = vadd.f32 %v2450_v35, %v2360_v53  ;;  %v2489_v16 = vmul.f32 %v2360_v53, %v2360_v53 }
 0x25e   : > { %v2184_v49 = vpop.f32.mrf.mxu2 }
 0x25f   : > { %v2520_v4 = vadd.f32 %v2519_v5, %v2489_v16  ;;  %v2185_v27 = vadd.f32 %v2184_v49, %v2096_v19  ;;  %v2273_v62 = vpop.f32.mrf.mxu3 }
 0x260   : > { %v2097_v34 = vpop.f32.mrf.mxu1 }
 0x261   : > { %v2274_v26 = vadd.f32 %v2273_v62, %v2185_v27  ;;  %v2098_v47 = vadd.f32 %v2097_v34, %v3938_v37 }
 0x262   : > { %v2364_v12 = vpop.f32.mrf.mxu0 }
 0x263   : > { %v2363_v30 = vadd.f32 %v2362_v31, %v2274_v26 }
 0x265   : > { %2421 = vst [vmem:[%s4027_s20 + $0x70] sm:$0xff] %v2363_v30  ;;  %v2452_v23 = vadd.f32 %v2451_v45, %v2363_v30  ;;  %v2490_v55 = vmul.f32 %v2363_v30, %v2363_v30 }
 0x266   : > { %v2186_v8 = vpop.f32.mrf.mxu2 }
 0x267   : > { %v2521_v52 = vadd.f32 %v2520_v4, %v2490_v55  ;;  %v2187_v36 = vadd.f32 %v2186_v8, %v2098_v47  ;;  %v2275_v21 = vpop.f32.mrf.mxu3 }
 0x268   : > { %v2100_v28 = vpop.f32.mrf.mxu1 }
 0x269   : > { %v2276_v32 = vadd.f32 %v2275_v21, %v2187_v36  ;;  %v2101_v20 = vadd.f32 %v2100_v28, %v3943_v46 }
 0x26a   : > { %v2367_v51 = vpop.f32.mrf.mxu0 }
 0x26b   : > { %v2365_v63 = vadd.f32 %v2364_v12, %v2276_v32 }
 0x26d   : > { %2422 = vst [vmem:[%s4027_s20 + $0x78] sm:$0xff] %v2365_v63  ;;  %v2453_v44 = vadd.f32 %v2452_v23, %v2365_v63  ;;  %v2491_v50 = vmul.f32 %v2365_v63, %v2365_v63 }
 0x26e   : > { %v2189_v9 = vpop.f32.mrf.mxu2 }
 0x26f   : > { %v2522_v6 = vadd.f32 %v2521_v52, %v2491_v50  ;;  %v2190_v38 = vadd.f32 %v2189_v9, %v2101_v20  ;;  %v2278_v57 = vpop.f32.mrf.mxu3 }
 0x270   : > { %v2102_v33 = vpop.f32.mrf.mxu1 }
 0x271   : > { %v2279_v37 = vadd.f32 %v2278_v57, %v2190_v38  ;;  %v2103_v13 = vadd.f32 %v2102_v33, %v3948_v29 }
 0x272   : > { %v2369_v18 = vpop.f32.mrf.mxu0 }
 0x273   : > { %v2368_v22 = vadd.f32 %v2367_v51, %v2279_v37 }
 0x275   : > { %2423 = vst [vmem:[%s4027_s20 + $0x80] sm:$0xff] %v2368_v22  ;;  %v2454_v1 = vadd.f32 %v2453_v44, %v2368_v22  ;;  %v2492_v35 = vmul.f32 %v2368_v22, %v2368_v22 }
 0x276   : > { %v2191_v2 = vpop.f32.mrf.mxu2 }
 0x277   : > { %v2523_v25 = vadd.f32 %v2522_v6, %v2492_v35  ;;  %v2192_v5 = vadd.f32 %v2191_v2, %v2103_v13  ;;  %v2280_v59 = vpop.f32.mrf.mxu3 }
 0x278   : > { %v2105_v41 = vpop.f32.mrf.mxu1 }
 0x279   : > { %v2281_v46 = vadd.f32 %v2280_v59, %v2192_v5  ;;  %v2106_v56 = vadd.f32 %v2105_v41, %v3953_v3 }
 0x27a   : > { %v2372_v24 = vpop.f32.mrf.mxu0 }
 0x27b   : > { %v2370_v0 = vadd.f32 %v2369_v18, %v2281_v46 }
 0x27d   : > { %2424 = vst [vmem:[%s4027_s20 + $0x88] sm:$0xff] %v2370_v0  ;;  %v2455_v15 = vadd.f32 %v2454_v1, %v2370_v0  ;;  %v2493_v42 = vmul.f32 %v2370_v0, %v2370_v0 }
 0x27e   : > { %v2194_v31 = vpop.f32.mrf.mxu2 }
 0x27f   : > { %v2524_v53 = vadd.f32 %v2523_v25, %v2493_v42  ;;  %v2195_v45 = vadd.f32 %v2194_v31, %v2106_v56  ;;  %v2283_v16 = vpop.f32.mrf.mxu3 }
 0x280   : > { %v2107_v19 = vpop.f32.mrf.mxu1 }
 0x281   : > { %v2284_v29 = vadd.f32 %v2283_v16, %v2195_v45  ;;  %v2108_v34 = vadd.f32 %v2107_v19, %v3958_v10 }
 0x282   : > { %v2374_v49 = vpop.f32.mrf.mxu0 }
 0x283   : > { %v2373_v4 = vadd.f32 %v2372_v24, %v2284_v29 }
 0x285   : > { %2425 = vst [vmem:[%s4027_s20 + $0x90] sm:$0xff] %v2373_v4  ;;  %v2456_v27 = vadd.f32 %v2455_v15, %v2373_v4  ;;  %v2494_v62 = vmul.f32 %v2373_v4, %v2373_v4 }
 0x286   : > { %v2196_v26 = vpop.f32.mrf.mxu2 }
 0x287   : > { %v2525_v12 = vadd.f32 %v2524_v53, %v2494_v62  ;;  %v2197_v30 = vadd.f32 %v2196_v26, %v2108_v34  ;;  %v2285_v23 = vpop.f32.mrf.mxu3 }
 0x288   : > { %v2110_v55 = vpop.f32.mrf.mxu1 }
 0x289   : > { %v2286_v3 = vadd.f32 %v2285_v23, %v2197_v30  ;;  %v2111_v21 = vadd.f32 %v2110_v55, %v3963_v40 }
 0x28a   : > { %v2377_v47 = vpop.f32.mrf.mxu0 }
 0x28b   : > { %v2375_v8 = vadd.f32 %v2374_v49, %v2286_v3 }
 0x28d   : > { %2426 = vst [vmem:[%s4027_s20 + $0x98] sm:$0xff] %v2375_v8  ;;  %v2457_v52 = vadd.f32 %v2456_v27, %v2375_v8  ;;  %v2495_v36 = vmul.f32 %v2375_v8, %v2375_v8 }
 0x28e   : > { %v2199_v28 = vpop.f32.mrf.mxu2 }
 0x28f   : > { %v2526_v32 = vadd.f32 %v2525_v12, %v2495_v36  ;;  %v2200_v51 = vadd.f32 %v2199_v28, %v2111_v21  ;;  %v2288_v63 = vpop.f32.mrf.mxu3 }
 0x290   : > { %v2112_v44 = vpop.f32.mrf.mxu1 }
 0x291   : > { %v2289_v10 = vadd.f32 %v2288_v63, %v2200_v51  ;;  %v2113_v38 = vadd.f32 %v2112_v44, %v3968_v54 }
 0x292   : > { %v2379_v50 = vpop.f32.mrf.mxu0 }
 0x293   : > { %v2378_v20 = vadd.f32 %v2377_v47, %v2289_v10 }
 0x295   : > { %2427 = vst [vmem:[%s4027_s20 + $0xa0] sm:$0xff] %v2378_v20  ;;  %v2458_v9 = vadd.f32 %v2457_v52, %v2378_v20  ;;  %v2496_v6 = vmul.f32 %v2378_v20, %v2378_v20 }
 0x296   : > { %v2201_v57 = vpop.f32.mrf.mxu2 }
 0x297   : > { %v2527_v33 = vadd.f32 %v2526_v32, %v2496_v6  ;;  %v2202_v37 = vadd.f32 %v2201_v57, %v2113_v38  ;;  %v2290_v18 = vpop.f32.mrf.mxu3 }
 0x298   : > { %v2115_v22 = vpop.f32.mrf.mxu1 }
 0x299   : > { %v2291_v40 = vadd.f32 %v2290_v18, %v2202_v37  ;;  %v2116_v25 = vadd.f32 %v2115_v22, %v3973_v11 }
 0x29a   : > { %v2382_v1 = vpop.f32.mrf.mxu0 }
 0x29b   : > { %v2380_v35 = vadd.f32 %v2379_v50, %v2291_v40 }
 0x29d   : > { %2428 = vst [vmem:[%s4027_s20 + $0xa8] sm:$0xff] %v2380_v35  ;;  %v2459_v13 = vadd.f32 %v2458_v9, %v2380_v35  ;;  %v2497_v2 = vmul.f32 %v2380_v35, %v2380_v35 }
 0x29e   : > { %v2204_v5 = vpop.f32.mrf.mxu2 }
 0x29f   : > { %v2528_v59 = vadd.f32 %v2527_v33, %v2497_v2  ;;  %v2205_v41 = vadd.f32 %v2204_v5, %v2116_v25  ;;  %v2293_v46 = vpop.f32.mrf.mxu3 }
 0x2a0   : > { %v2117_v24 = vpop.f32.mrf.mxu1 }
 0x2a1   : > { %v2294_v54 = vadd.f32 %v2293_v46, %v2205_v41  ;;  %v2118_v31 = vadd.f32 %v2117_v24, %v3978_v14 }
 0x2a2   : > { %v2384_v0 = vpop.f32.mrf.mxu0 }
 0x2a3   : > { %v2383_v15 = vadd.f32 %v2382_v1, %v2294_v54 }
 0x2a5   : > { %2429 = vst [vmem:[%s4027_s20 + $0xb0] sm:$0xff] %v2383_v15  ;;  %v2460_v42 = vadd.f32 %v2459_v13, %v2383_v15  ;;  %v2498_v56 = vmul.f32 %v2383_v15, %v2383_v15 }
 0x2a6   : > { %v2206_v53 = vpop.f32.mrf.mxu2 }
 0x2a7   : > { %v2529_v45 = vadd.f32 %v2528_v59, %v2498_v56  ;;  %v2207_v16 = vadd.f32 %v2206_v53, %v2118_v31  ;;  %v2295_v19 = vpop.f32.mrf.mxu3 }
 0x2a8   : > { %v2120_v29 = vpop.f32.mrf.mxu1 }
 0x2a9   : > { %v2296_v11 = vadd.f32 %v2295_v19, %v2207_v16  ;;  %v2121_v34 = vadd.f32 %v2120_v29, %v3983_v17 }
 0x2aa   : > { %v2387_v49 = vpop.f32.mrf.mxu0 }
 0x2ab   : > { %v2385_v4 = vadd.f32 %v2384_v0, %v2296_v11 }
 0x2ad   : > { %2430 = vst [vmem:[%s4027_s20 + $0xb8] sm:$0xff] %v2385_v4  ;;  %v2461_v27 = vadd.f32 %v2460_v42, %v2385_v4  ;;  %v2499_v62 = vmul.f32 %v2385_v4, %v2385_v4 }
 0x2ae   : > { %v2209_v26 = vpop.f32.mrf.mxu2 }
 0x2af   : > { %v2530_v12 = vadd.f32 %v2529_v45, %v2499_v62  ;;  %v2210_v30 = vadd.f32 %v2209_v26, %v2121_v34  ;;  %v2298_v23 = vpop.f32.mrf.mxu3 }
 0x2b0   : > { %v2122_v55 = vpop.f32.mrf.mxu1 }
 0x2b1   : > { %v2299_v14 = vadd.f32 %v2298_v23, %v2210_v30  ;;  %v2123_v36 = vadd.f32 %v2122_v55, %v3988_v61 }
 0x2b2   : > { %v2389_v3 = vpop.f32.mrf.mxu0 }
 0x2b3   : > { %v2388_v47 = vadd.f32 %v2387_v49, %v2299_v14 }
 0x2b5   : > { %2431 = vst [vmem:[%s4027_s20 + $0xc0] sm:$0xff] %v2388_v47  ;;  %v2462_v8 = vadd.f32 %v2461_v27, %v2388_v47  ;;  %v2500_v52 = vmul.f32 %v2388_v47, %v2388_v47 }
 0x2b6   : > { %v2211_v21 = vpop.f32.mrf.mxu2 }
 0x2b7   : > { %v2531_v28 = vadd.f32 %v2530_v12, %v2500_v52  ;;  %v2212_v32 = vadd.f32 %v2211_v21, %v2123_v36  ;;  %v2300_v51 = vpop.f32.mrf.mxu3 }
 0x2b8   : > { %v2125_v63 = vpop.f32.mrf.mxu1 }
 0x2b9   : > { %v2301_v17 = vadd.f32 %v2300_v51, %v2212_v32  ;;  %v2126_v9 = vadd.f32 %v2125_v63, %v3993_v48 }
 0x2ba   : > { %v2392_v44 = vpop.f32.mrf.mxu0 }
 0x2bb   : > { %v2390_v10 = vadd.f32 %v2389_v3, %v2301_v17 }
 0x2bd   : > { %2432 = vst [vmem:[%s4027_s20 + $0xc8] sm:$0xff] %v2390_v10  ;;  %v2463_v50 = vadd.f32 %v2462_v8, %v2390_v10  ;;  %v2501_v20 = vmul.f32 %v2390_v10, %v2390_v10 }
 0x2be   : > { %v2214_v6 = vpop.f32.mrf.mxu2 }
 0x2bf   : > { %v2532_v38 = vadd.f32 %v2531_v28, %v2501_v20  ;;  %v2215_v57 = vadd.f32 %v2214_v6, %v2126_v9  ;;  %v2303_v33 = vpop.f32.mrf.mxu3 }
 0x2c0   : > { %v2127_v37 = vpop.f32.mrf.mxu1 }
 0x2c1   : > { %v2304_v61 = vadd.f32 %v2303_v33, %v2215_v57  ;;  %v2128_v35 = vadd.f32 %v2127_v37, %v3998_v7 }
 0x2c2   : > { %v2394_v18 = vpop.f32.mrf.mxu0 }
 0x2c3   : > { %v2393_v22 = vadd.f32 %v2392_v44, %v2304_v61 }
 0x2c5   : > { %2433 = vst [vmem:[%s4027_s20 + $0xd0] sm:$0xff] %v2393_v22  ;;  %v2464_v40 = vadd.f32 %v2463_v50, %v2393_v22  ;;  %v2502_v1 = vmul.f32 %v2393_v22, %v2393_v22 }
 0x2c6   : > { %v2216_v13 = vpop.f32.mrf.mxu2 }
 0x2c7   : > { %v2533_v2 = vadd.f32 %v2532_v38, %v2502_v1  ;;  %v2217_v25 = vadd.f32 %v2216_v13, %v2128_v35  ;;  %v2305_v5 = vpop.f32.mrf.mxu3 }
 0x2c8   : > { %v2130_v48 = vpop.f32.mrf.mxu1 }
 0x2c9   : > { %v2306_v59 = vadd.f32 %v2305_v5, %v2217_v25  ;;  %v2131_v0 = vadd.f32 %v2130_v48, %v4003_v43 }
 0x2ca   : > { %v2397_v46 = vpop.f32.mrf.mxu0 }
 0x2cb   : > { %v2395_v41 = vadd.f32 %v2394_v18, %v2306_v59 }
 0x2cd   : > { %2434 = vst [vmem:[%s4027_s20 + $0xd8] sm:$0xff] %v2395_v41  ;;  %v2465_v24 = vadd.f32 %v2464_v40, %v2395_v41  ;;  %v2503_v54 = vmul.f32 %v2395_v41, %v2395_v41 }
 0x2ce   : > { %v2219_v15 = vpop.f32.mrf.mxu2 }
 0x2cf   : > { %v2534_v42 = vadd.f32 %v2533_v2, %v2503_v54  ;;  %v2220_v56 = vadd.f32 %v2219_v15, %v2131_v0  ;;  %v2308_v31 = vpop.f32.mrf.mxu3 }
 0x2d0   : > { %v2132_v7 = vpop.f32.mrf.mxu1 }
 0x2d1   : > { %v2309_v53 = vadd.f32 %v2308_v31, %v2220_v56  ;;  %v2133_v29 = vadd.f32 %v2132_v7, %v4008_v60 }
 0x2d2   : > { %v2399_v11 = vpop.f32.mrf.mxu0 }
 0x2d3   : > { %v2398_v45 = vadd.f32 %v2397_v46, %v2309_v53 }
 0x2d5   : > { %2435 = vst [vmem:[%s4027_s20 + $0xe0] sm:$0xff] %v2398_v45  ;;  %v2466_v16 = vadd.f32 %v2465_v24, %v2398_v45  ;;  %v2504_v19 = vmul.f32 %v2398_v45, %v2398_v45 }
 0x2d6   : > { %v2221_v49 = vpop.f32.mrf.mxu2 }
 0x2d7   : > { %v2535_v4 = vadd.f32 %v2534_v42, %v2504_v19  ;;  %v2222_v27 = vadd.f32 %v2221_v49, %v2133_v29  ;;  %v2310_v62 = vpop.f32.mrf.mxu3 }
 0x2d8   : > { %v2135_v43 = vpop.f32.mrf.mxu1 }
 0x2d9   : > { %v2311_v34 = vadd.f32 %v2310_v62, %v2222_v27  ;;  %v2136_v23 = vadd.f32 %v2135_v43, %v4013_v58 }
 0x2da   : > { %v2402_v60 = vpop.f32.mrf.mxu0 }
 0x2db   : > { %v2400_v26 = vadd.f32 %v2399_v11, %v2311_v34 }
 0x2dd   : > { %2436 = vst [vmem:[%s4027_s20 + $0xe8] sm:$0xff] %v2400_v26  ;;  %v2467_v12 = vadd.f32 %v2466_v16, %v2400_v26  ;;  %v2505_v30 = vmul.f32 %v2400_v26, %v2400_v26 }
 0x2de   : > { %v2224_v55 = vpop.f32.mrf.mxu2 }
 0x2df   : > { %v2536_v14 = vadd.f32 %v2535_v4, %v2505_v30  ;;  %v2225_v3 = vadd.f32 %v2224_v55, %v2136_v23  ;;  %v2313_v47 = vpop.f32.mrf.mxu3 }
 0x2e0   : > { %v2137_v52 = vpop.f32.mrf.mxu1 }
 0x2e1   : > { %v2314_v8 = vadd.f32 %v2313_v47, %v2225_v3  ;;  %v2138_v32 = vadd.f32 %v2137_v52, %v4018_v39 }
 0x2e2   : > { %v2404_v58 = vpop.f32.mrf.mxu0 }
 0x2e3   : > { %v2403_v36 = vadd.f32 %v2402_v60, %v2314_v8 }
 0x2e5   : > { %2437 = vst [vmem:[%s4027_s20 + $0xf0] sm:$0xff] %v2403_v36  ;;  %v2468_v21 = vadd.f32 %v2467_v12, %v2403_v36  ;;  %v2506_v28 = vmul.f32 %v2403_v36, %v2403_v36 }
 0x2e6   : > { %v2226_v51 = vpop.f32.mrf.mxu2 }
 0x2e7   : > { %v2537_v63 = vadd.f32 %v2536_v14, %v2506_v28  ;;  %v2227_v17 = vadd.f32 %v2226_v51, %v2138_v32  ;;  %v2315_v44 = vpop.f32.mrf.mxu3 }
 0x2e9   : > { %v2316_v10 = vadd.f32 %v2315_v44, %v2227_v17 }
 0x2eb   : > { %v2405_v50 = vadd.f32 %v2404_v58, %v2316_v10 }
 0x2ed   : > { %2438 = vst [vmem:[%s4027_s20 + $0xf8] sm:$0xff] %v2405_v50  ;;  %v2469_v20 = vadd.f32 %v2468_v21, %v2405_v50  ;;  %v2507_v9 = vmul.f32 %v2405_v50, %v2405_v50 }
 0x2ef   : > { %v2470_v6 = vrot.slane %v2469_v20, 4  ;;  %v2538_v38 = vadd.f32 %v2537_v63, %v2507_v9 }
 0x2f1   : > { %v2471_v57 = vadd.f32 %v2470_v6, %v2469_v20  ;;  %v2539_v33 = vrot.slane %v2538_v38, 4 }
 0x2f3   : > { %v2472_v37 = vrot.slane %v2471_v57, 2  ;;  %v2540_v61 = vadd.f32 %v2539_v33, %v2538_v38 }
 0x2f5   : > { %v2473_v18 = vadd.f32 %v2472_v37, %v2471_v57  ;;  %v2541_v22 = vrot.slane %v2540_v61, 2 }
 0x2f7   : > { %v2474_v39 = vrot.slane %v2473_v18, 1  ;;  %v2542_v40 = vadd.f32 %v2541_v22, %v2540_v61 }
 0x2f9   : > { %v2543_v1 = vrot.slane %v2542_v40, 1  ;;  %v2475_v35 = vadd.f32 %v2474_v39, %v2473_v18 }
 0x2fb   : > { %v2544_v13 = vadd.f32 %v2543_v1, %v2542_v40 }
 0x2fd   : > { %v2546_v2 = vsel %vm2545_vm2, %v2475_v35, %v2544_v13 }
 0x2fe   : > { %2547 = vst [vmem:[%s181_s23] sm:$0x3] %v2546_v2 }
 0x2ff PF: > { %s14_s12 = sadd.s32 1, %s3089_s12  }
 0x300   : > { %p11_p4 = scmp.ge.s32.totalorder %s14_s12, 4  }
 0x302   :  { %13 = sbr.rel (!%p11_p4) target bundleno = 1 (0x1), region = 70 }

// kernel: residual_block.4
= control target key start
LH: loop header
LB: loop body
LE: loop exit
PB: predicated region body
PF: predicated region fallthrough
CT: control target
= control target key end

     0   :  { %s3270_s15 = smov 0   ;;  %s4369_s0 = inlined_call_operand.vmem [shape: f32[2,16,16,128], index: 0, kind: input, shape index: {}]   ;;  %s4370_s1 = inlined_call_operand.vmem [shape: f32[2,128], index: 1, kind: input, shape index: {}]   ;;  %s4371_s2 = inlined_call_operand.vmem [shape: bf16[1152,128], index: 2, kind: input, shape index: {}]   ;;  %s4372_s3 = inlined_call_operand.vmem [shape: f32[2,16,16,128], index: 3, kind: output, shape index: {0}]   ;;  %s4373_s4 = inlined_call_operand.vmem [shape: f32[2,2,128], index: 4, kind: output, shape index: {1}]  }
   0x1 LB: > { %s2815_s16 = sadd.s32 4294967295, %s3241_s15   ;;  %p2819_p0 = scmp.ge.s32.totalorder %s3241_s15, 1  ;;  %s3241_s15 = sphi %s3270_s15, %s15_s15  }
   0x2   : > { %p165_p1 = scmp.lt.s32.totalorder %s3241_s15, 3 }
   0x4   : > { %p166_p2 = pnand %p2819_p0, %p165_p1 }
   0x6   : > { %169 = sbr.rel (%p166_p2) target bundleno = 794 (0x31a), region = 32 }
   0xb   : > { %v3124_v0 = vld [vmem:[%s4371_s2 + $0x38] sm:$0xff]  ;;  %p195_p3 = scmp.lt.s32.totalorder %s2815_s16, 1  ;;  %v3243_v1 = vmov 0.0   ;;  %v3123_v2 = vld [vmem:[%s4371_s2 + $0x30] sm:$0xff]  ;;  %v3291_v3 = vld [vmem:[%s4370_s1] ss:$0 sm:$0xff] }
   0xc   : > { %220 = vst [vmem:[#allocation2 + $0x60] sm:$0x1] %v3243_v1  ;;  %3189 = vmatpush.bf16.msra.mxu1 %v3124_v0  ;;  %3190 = vmatpush.bf16.msra.mxu2 %v3124_v0  ;;  %v3305_v4 = vld [vmem:[%s4370_s1 + $0x1] ss:$0 sm:$0xff]  ;;  %v3122_v5 = vld [vmem:[%s4371_s2 + $0x28] sm:$0xff]  ;;  %v3120_v15 = vld [vmem:[%s4371_s2 + $0x18] sm:$0xff] }
   0xd   : > { %s4476_s16 = smov (!%p195_p3, %s2815_s16), 1  ;;  %209 = vst [vmem:[#allocation2] sm:$0xff] %v3243_v1  ;;  %3191 = vmatpush.bf16.msra.mxu3 %v3124_v0  ;;  %1787 = vmatpush.bf16.msra.mxu0 %v3124_v0  ;;  %v3121_v12 = vld [vmem:[%s4371_s2 + $0x20] sm:$0xff]  ;;  %v3119_v16 = vld [vmem:[%s4371_s2 + $0x10] sm:$0xff]  ;;  %v3118_v20 = vld [vmem:[%s4371_s2 + $0x8] sm:$0xff]  ;;  %vm551_vm0 = vcmask 1046528  }
   0xe   : > { %s3115_s23 = sshll.u32 %s4476_s16, 8  ;;  %210 = vst [vmem:[#allocation2 + $0x8] sm:$0xff] %v3243_v1  ;;  %v3117_v24 = vld [vmem:[%s4371_s2] sm:$0xff]  ;;  %v3140_v30 = vld [vmem:[%s4371_s2 + $0xb8] sm:$0xff]  ;;  %v3139_v35 = vld [vmem:[%s4371_s2 + $0xb0] sm:$0xff]  ;;  %vm696_vm1 = vcmask 1045504  }
   0xf   : > { %s3300_s26 = scalar_lea.vmem %s4369_s0, %s3115_s23  ;;  %211 = vst [vmem:[#allocation2 + $0x10] sm:$0x3] %v3243_v1  ;;  %v3148_v31 = vld [vmem:[%s4371_s2 + $0xf8] sm:$0xff]  ;;  %v3147_v38 = vld [vmem:[%s4371_s2 + $0xf0] sm:$0xff]  ;;  %s4262_s18 = scalar_lea.vmem %s4372_s3, %s3115_s23  ;;  %vm2726_vm2 = vcmask 1040384  }
  0x10   : > { %3192 = vmatpush.bf16.msra.mxu1 %v3123_v2  ;;  %3193 = vmatpush.bf16.msra.mxu2 %v3123_v2  ;;  %v258_v6 = vld [vmem:[%s3300_s26 + $0x30] sm:$0xff]  ;;  %v259_v7 = vld [vmem:[%s3300_s26 + $0x38] sm:$0xff]  ;;  %213 = vst [vmem:[#allocation2 + $0x198] sm:$0xff] %v3243_v1  ;;  %v260_v40 = vld [vmem:[%s3300_s26 + $0x40] sm:$0xff]  ;;  %s2824_s23 = sshll.u32 %s4476_s16, 1 }
  0x11   : > { %3194 = vmatpush.bf16.msra.mxu3 %v3123_v2  ;;  %1788 = vmatpush.bf16.msra.mxu0 %v3123_v2  ;;  %v292_v8 = vmul.f32 %v3291_v3, %v258_v6  ;;  %v293_v9 = vmul.f32 %v3291_v3, %v259_v7  ;;  %215 = vst [vmem:[#allocation2 + $0x1a8] sm:$0x3] %v3243_v1  ;;  %v266_v25 = vld [vmem:[%s3300_s26 + $0x70] sm:$0xff]  ;;  %v267_v26 = vld [vmem:[%s3300_s26 + $0x78] sm:$0xff]  ;;  %v261_v43 = vld [vmem:[%s3300_s26 + $0x48] sm:$0xff]  ;;  %s208_s21 = scalar_lea.vmem %s4373_s4, %s2824_s23 }
  0x12   : > { %217 = vst [vmem:[#allocation2 + $0x18] sm:$0x1] %v3243_v1  ;;  %v300_v28 = vmul.f32 %v3291_v3, %v266_v25  ;;  %v301_v29 = vmul.f32 %v3291_v3, %v267_v26  ;;  %v274_v32 = vld [vmem:[%s3300_s26 + $0xb0] sm:$0xff]  ;;  %v3132_v33 = vld [vmem:[%s4371_s2 + $0x78] sm:$0xff]  ;;  %v268_v45 = vld [vmem:[%s3300_s26 + $0x80] sm:$0xff]  ;;  %v294_v46 = vmul.f32 %v3291_v3, %v260_v40  ;;  %v295_v50 = vmul.f32 %v3291_v3, %v261_v43 }
  0x13   : > { %v326_v10 = vadd.f32 %v3305_v4, %v292_v8  ;;  %v327_v11 = vadd.f32 %v3305_v4, %v293_v9  ;;  %218 = vst [vmem:[#allocation2 + $0x30] sm:$0x1] %v3243_v1  ;;  %v275_v34 = vld [vmem:[%s3300_s26 + $0xb8] sm:$0xff]  ;;  %v3131_v39 = vld [vmem:[%s4371_s2 + $0x70] sm:$0xff]  ;;  %v308_v42 = vmul.f32 %v3291_v3, %v274_v32  ;;  %v269_v47 = vld [vmem:[%s3300_s26 + $0x88] sm:$0xff]  ;;  %v302_v55 = vmul.f32 %v3291_v3, %v268_v45 }
  0x14   : > { %3195 = vmatpush.bf16.msra.mxu1 %v3122_v5  ;;  %3196 = vmatpush.bf16.msra.mxu2 %v3122_v5  ;;  %219 = vst [vmem:[#allocation2 + $0x48] sm:$0x1] %v3243_v1  ;;  %v3156_v36 = vld [vmem:[%s4371_s2 + $0x138] sm:$0xff]  ;;  %v334_v37 = vadd.f32 %v3305_v4, %v300_v28  ;;  %v335_v41 = vadd.f32 %v3305_v4, %v301_v29  ;;  %v276_v48 = vld [vmem:[%s3300_s26 + $0xc0] sm:$0xff]  ;;  %v277_v51 = vld [vmem:[%s3300_s26 + $0xc8] sm:$0xff]  ;;  %v3244_v28 = vmov 0.0|0.0  }
  0x15   : > { %3197 = vmatpush.bf16.msra.mxu3 %v3122_v5  ;;  %1789 = vmatpush.bf16.msra.mxu0 %v3122_v5  ;;  %v358_v13 = vmax.f32 %v326_v10, 0.0  ;;  %v359_v14 = vmax.f32 %v327_v11, 0.0  ;;  %221 = vst [vmem:[#allocation2 + $0x78] sm:$0x1] %v3243_v1  ;;  %v309_v44 = vmul.f32 %v3291_v3, %v275_v34  ;;  %v252_v52 = vld [vmem:[%s3300_s26] sm:$0xff]  ;;  %v342_v54 = vadd.f32 %v3305_v4, %v308_v42  ;;  %v253_v63 = vld [vmem:[%s3300_s26 + $0x8] sm:$0xff] }
  0x16   : > { %222 = vst [vmem:[#allocation2 + $0x90] sm:$0x1] %v3243_v1  ;;  %v366_v49 = vmax.f32 %v334_v37, 0.0  ;;  %v367_v53 = vmax.f32 %v335_v41, 0.0  ;;  %v303_v57 = vmul.f32 %v3291_v3, %v269_v47  ;;  %v310_v58 = vmul.f32 %v3291_v3, %v276_v48  ;;  %v262_v5 = vld [vmem:[%s3300_s26 + $0x50] sm:$0xff]  ;;  %v263_v9 = vld [vmem:[%s3300_s26 + $0x58] sm:$0xff] }
  0x17   : > { %391 = vst [vmem:[#allocation2 + $0x61] sm:$0xff] %v358_v13  ;;  %v343_v56 = vadd.f32 %v3305_v4, %v309_v44  ;;  %v328_v59 = vadd.f32 %v3305_v4, %v294_v46  ;;  %v311_v60 = vmul.f32 %v3291_v3, %v277_v51  ;;  %v286_v61 = vmul.f32 %v3291_v3, %v252_v52  ;;  %v3155_v25 = vld [vmem:[%s4371_s2 + $0x130] sm:$0xff]  ;;  %v3130_v32 = vld [vmem:[%s4371_s2 + $0x68] sm:$0xff]  ;;  %v3137_v40 = vld [vmem:[%s4371_s2 + $0xa0] sm:$0xff] }
  0x18   : > { %3198 = vmatpush.bf16.msra.mxu1 %v3121_v12  ;;  %3199 = vmatpush.bf16.msra.mxu2 %v3121_v12  ;;  %392 = vst [vmem:[#allocation2 + $0x69] sm:$0xff] %v359_v14  ;;  %v329_v62 = vadd.f32 %v3305_v4, %v295_v50  ;;  %v374_v0 = vmax.f32 %v342_v54, 0.0  ;;  %v336_v2 = vadd.f32 %v3305_v4, %v302_v55  ;;  %v270_v14 = vld [vmem:[%s3300_s26 + $0x90] sm:$0xff]  ;;  %v3459_v29 = vunpack.c.l.b16 %v3244_v28  ;;  %v3145_v41 = vld [vmem:[%s4371_s2 + $0xe0] sm:$0xff]  ;;  %v3154_v45 = vld [vmem:[%s4371_s2 + $0x128] sm:$0xff] }
  0x19   : > { %3200 = vmatpush.bf16.msra.mxu3 %v3121_v12  ;;  %1790 = vmatpush.bf16.msra.mxu0 %v3121_v12  ;;  %223 = vst [vmem:[#allocation2 + $0xa8] sm:$0x1] %v3243_v1  ;;  %v375_v6 = vmax.f32 %v343_v56, 0.0  ;;  %v337_v7 = vadd.f32 %v3305_v4, %v303_v57  ;;  %v3431_v8 = vadd.f32 %v3305_v4, %v310_v58  ;;  %v360_v10 = vmax.f32 %v328_v59, 0.0  ;;  %v254_v34 = vld [vmem:[%s3300_s26 + $0x10] sm:$0xff]  ;;  %v3129_v46 = vld [vmem:[%s4371_s2 + $0x60] sm:$0xff] }
  0x1a   : > { %224 = vst [vmem:[#allocation2 + $0xc0] sm:$0x1] %v3243_v1  ;;  %v3436_v11 = vadd.f32 %v3305_v4, %v311_v60  ;;  %v287_v12 = vmul.f32 %v3291_v3, %v253_v63  ;;  %v3440_v13 = vadd.f32 %v3305_v4, %v286_v61  ;;  %v297_v26 = vmul.f32 %v3291_v3, %v263_v9 }
  0x1b   : > { %225 = vst [vmem:[#allocation2 + $0xd8] sm:$0x1] %v3243_v1 }
  0x1c   : > { %3201 = vmatpush.bf16.msra.mxu1 %v3120_v15  ;;  %3202 = vmatpush.bf16.msra.mxu2 %v3120_v15  ;;  %226 = vst [vmem:[#allocation2 + $0xf0] sm:$0x1] %v3243_v1  ;;  %v377_v37 = vmax.f32 %v3436_v11, 0.0  ;;  %v331_v51 = vadd.f32 %v3305_v4, %v297_v26 }
  0x1d   : > { %3203 = vmatpush.bf16.msra.mxu3 %v3120_v15  ;;  %1791 = vmatpush.bf16.msra.mxu0 %v3120_v15  ;;  %227 = vst [vmem:[#allocation2 + $0x108] sm:$0x1] %v3243_v1  ;;  %v361_v15 = vmax.f32 %v329_v62, 0.0 }
  0x1e   : > { %v3337_v17 = vld [vmem:[#allocation2 + $0x60] sm:$0xff]  ;;  %228 = vst [vmem:[#allocation2 + $0x120] sm:$0x1] %v3243_v1 }
  0x1f   : > { %v3340_v18 = vld [vmem:[#allocation2 + $0x68] sm:$0xff]  ;;  %v479_v19 = vpack.c.bf16 %v3337_v17, %v3337_v17  ;;  %229 = vst [vmem:[#allocation2 + $0x138] sm:$0x1] %v3243_v1 }
  0x20   : > { %3204 = vmatpush.bf16.msra.mxu1 %v3119_v16  ;;  %3205 = vmatpush.bf16.msra.mxu2 %v3119_v16  ;;  %v480_v21 = vpack.c.bf16 %v3340_v18, %v3340_v18  ;;  %230 = vst [vmem:[#allocation2 + $0x150] sm:$0x1] %v3243_v1 }
  0x21   : > { %3206 = vmatpush.bf16.msra.mxu3 %v3119_v16  ;;  %1792 = vmatpush.bf16.msra.mxu0 %v3119_v16  ;;  %231 = vst [vmem:[#allocation2 + $0x168] sm:$0x1] %v3243_v1  ;;  %v927_v22 = vunpack.c.l.b16 %v479_v19  ;;  %v296_v16 = vmul.f32 %v3291_v3, %v262_v5  ;;  %v271_v19 = vld [vmem:[%s3300_s26 + $0x98] sm:$0xff]  ;;  %v363_v5 = vmax.f32 %v331_v51, 0.0 }
  0x22   : > { %v928_v23 = vunpack.c.l.b16 %v480_v21  ;;  %232 = vst [vmem:[#allocation2 + $0x180] sm:$0x1] %v3243_v1  ;;  %v279_v21 = vld [vmem:[%s3300_s26 + $0xd8] sm:$0xff]  ;;  %v305_v42 = vmul.f32 %v3291_v3, %v271_v19 }
  0x23   : > { %235 = vst [vmem:[#allocation2 + $0x29] sm:$0x1] %v3243_v1  ;;  %v330_v47 = vadd.f32 %v3305_v4, %v296_v16  ;;  %v313_v52 = vmul.f32 %v3291_v3, %v279_v21 }
  0x24   : > { %3207 = vmatpush.bf16.msra.mxu1 %v3118_v20  ;;  %3208 = vmatpush.bf16.msra.mxu2 %v3118_v20  ;;  %236 = vst [vmem:[#allocation2 + $0x41] sm:$0x1] %v3243_v1  ;;  %v3362_v27 = vpack.c.b16 %v928_v23, %v927_v22  ;;  %v368_v22 = vmax.f32 %v336_v2, 0.0  ;;  %v3138_v23 = vld [vmem:[%s4371_s2 + $0xa8] sm:$0xff]  ;;  %v339_v60 = vadd.f32 %v3305_v4, %v305_v42 }
  0x25   : > { %3209 = vmatpush.bf16.msra.mxu3 %v3118_v20  ;;  %1793 = vmatpush.bf16.msra.mxu0 %v3118_v20  ;;  %237 = vst [vmem:[#allocation2 + $0x59] sm:$0x1] %v3243_v1  ;;  %v278_v20 = vld [vmem:[%s3300_s26 + $0xd0] sm:$0xff]  ;;  %v362_v62 = vmax.f32 %v330_v47, 0.0 }
  0x26   : > { %238 = vst [vmem:[#allocation2 + $0x71] sm:$0x1] %v3243_v1  ;;  %v312_v48 = vmul.f32 %v3291_v3, %v278_v20 }
  0x27   : > { %239 = vst [vmem:[#allocation2 + $0x89] sm:$0x1] %v3243_v1 }
  0x28   : > { %3210 = vmatpush.bf16.msra.mxu1 %v3117_v24  ;;  %3211 = vmatpush.bf16.msra.mxu2 %v3117_v24  ;;  %240 = vst [vmem:[#allocation2 + $0xa1] sm:$0x1] %v3243_v1  ;;  %v346_v63 = vadd.f32 %v3305_v4, %v312_v48 }
  0x29   : > { %3212 = vmatpush.bf16.msra.mxu3 %v3117_v24  ;;  %1794 = vmatpush.bf16.msra.mxu0 %v3117_v24  ;;  %241 = vst [vmem:[#allocation2 + $0xb9] sm:$0x1] %v3243_v1  ;;  %v3146_v24 = vld [vmem:[%s4371_s2 + $0xe8] sm:$0xff] }
  0x2a   : > { %242 = vst [vmem:[#allocation2 + $0xd1] sm:$0x1] %v3243_v1  ;;  %v378_v21 = vmax.f32 %v346_v63, 0.0 }
  0x2b   : > { %1815 = vmatmul.bf16.vlgmr.msra.gmra.mxu1 %v3362_v27  ;;  %243 = vst [vmem:[#allocation2 + $0xe9] sm:$0x1] %v3243_v1 }
  0x2c   : > { %1965 = vmatpush.bf16.msrb.mxu2 %v3140_v30  ;;  %1876 = vmatpush.bf16.msrb.mxu1 %v3132_v33  ;;  %244 = vst [vmem:[#allocation2 + $0x101] sm:$0x1] %v3243_v1  ;;  %v369_v30 = vmax.f32 %v337_v7, 0.0  ;;  %v304_v33 = vmul.f32 %v3291_v3, %v270_v14 }
  0x2d   : > { %2054 = vmatpush.bf16.msrb.mxu3 %v3148_v31  ;;  %2143 = vmatpush.bf16.msrb.mxu0 %v3156_v36  ;;  %245 = vst [vmem:[#allocation2 + $0x119] sm:$0x1] %v3243_v1  ;;  %v376_v31 = vmax.f32 %v3431_v8, 0.0 }
  0x2e   : > { %246 = vst [vmem:[#allocation2 + $0x131] sm:$0x1] %v3243_v1  ;;  %v338_v56 = vadd.f32 %v3305_v4, %v304_v33 }
  0x2f   : > { %247 = vst [vmem:[#allocation2 + $0x149] sm:$0x1] %v3243_v1 }
  0x30   : > { %1966 = vmatpush.bf16.msrb.mxu2 %v3139_v35  ;;  %1877 = vmatpush.bf16.msrb.mxu1 %v3131_v39  ;;  %248 = vst [vmem:[#allocation2 + $0x161] sm:$0x1] %v3243_v1  ;;  %v255_v35 = vld [vmem:[%s3300_s26 + $0x18] sm:$0xff]  ;;  %v352_v39 = vmax.f32 %v3440_v13, 0.0  ;;  %v370_v11 = vmax.f32 %v338_v56, 0.0 }
  0x31   : > { %2055 = vmatpush.bf16.msrb.mxu3 %v3147_v38  ;;  %249 = vst [vmem:[#allocation2 + $0x179] sm:$0x1] %v3243_v1  ;;  %v321_v38 = vadd.f32 %v3305_v4, %v287_v12  ;;  %2144 = vmatpush.bf16.msrb.mxu0 %v3155_v25  ;;  %v289_v57 = vmul.f32 %v3291_v3, %v255_v35  ;;  %v3152_v56 = vld [vmem:[%s4371_s2 + $0x118] sm:$0xff] }
  0x32   : > { %250 = vst [vmem:[#allocation2 + $0x191] sm:$0x1] %v3243_v1 }
  0x33   : > { %399 = vst [vmem:[#allocation2 + $0xc1] sm:$0xff] %v366_v49  ;;  %v353_v59 = vmax.f32 %v321_v38, 0.0  ;;  %v323_v12 = vadd.f32 %v3305_v4, %v289_v57 }
  0x34   : > { %400 = vst [vmem:[#allocation2 + $0xc9] sm:$0xff] %v367_v53  ;;  %1967 = vmatpush.bf16.msrb.mxu2 %v3138_v23  ;;  %1878 = vmatpush.bf16.msrb.mxu1 %v3130_v32  ;;  %v288_v53 = vmul.f32 %v3291_v3, %v254_v34 }
  0x35   : > { %216 = vst [vmem:[#allocation2] sm:$0x1] %v3243_v1  ;;  %2056 = vmatpush.bf16.msrb.mxu3 %v3146_v24  ;;  %2145 = vmatpush.bf16.msrb.mxu0 %v3154_v45  ;;  %v3153_v45 = vld [vmem:[%s4371_s2 + $0x120] sm:$0xff] }
  0x36   : > { %233 = vst [vmem:[#allocation2 + $0x198] sm:$0x1] %v3243_v1  ;;  %v322_v7 = vadd.f32 %v3305_v4, %v288_v53 }
  0x37   : > { %234 = vst [vmem:[#allocation2 + $0x11] sm:$0x1] %v3243_v1 }
  0x38   : > { %251 = vst [vmem:[#allocation2 + $0x1a9] sm:$0x1] %v3243_v1  ;;  %1968 = vmatpush.bf16.msrb.mxu2 %v3137_v40  ;;  %1879 = vmatpush.bf16.msrb.mxu1 %v3129_v46  ;;  %v3136_v40 = vld [vmem:[%s4371_s2 + $0x98] sm:$0xff] }
  0x39   : > { %407 = vst [vmem:[#allocation2 + $0x121] sm:$0xff] %v374_v0  ;;  %2057 = vmatpush.bf16.msrb.mxu3 %v3145_v41  ;;  %v3144_v41 = vld [vmem:[%s4371_s2 + $0xd8] sm:$0xff]  ;;  %2146 = vmatpush.bf16.msrb.mxu0 %v3153_v45 }
  0x3a   : > { %v3468_v36 = vld [vmem:[#allocation2 + $0xc0] sm:$0xff]  ;;  %408 = vst [vmem:[#allocation2 + $0x129] sm:$0xff] %v375_v6  ;;  %v347_v6 = vadd.f32 %v3305_v4, %v313_v52  ;;  %v3128_v46 = vld [vmem:[%s4371_s2 + $0x58] sm:$0xff]  ;;  %v3135_v52 = vld [vmem:[%s4371_s2 + $0x90] sm:$0xff] }
  0x3b   : > { %v3480_v43 = vld [vmem:[#allocation2 + $0xc8] sm:$0xff]  ;;  %v487_v44 = vpack.c.bf16 %v3468_v36, %v3468_v36  ;;  %393 = vst [vmem:[#allocation2 + $0x79] sm:$0xff] %v360_v10 }
  0x3c   : > { %v488_v49 = vpack.c.bf16 %v3480_v43, %v3480_v43  ;;  %v3494_v50 = vld [vmem:[#allocation2] sm:$0xff]  ;;  %394 = vst [vmem:[#allocation2 + $0x81] sm:$0xff] %v361_v15  ;;  %v371_v15 = vmax.f32 %v339_v60, 0.0  ;;  %v379_v25 = vmax.f32 %v347_v6, 0.0  ;;  %1969 = vmatpush.bf16.msrb.mxu2 %v3136_v40  ;;  %1880 = vmatpush.bf16.msrb.mxu1 %v3128_v46  ;;  %v3127_v60 = vld [vmem:[%s4371_s2 + $0x50] sm:$0xff] }
  0x3d   : > { %v935_v54 = vunpack.c.l.b16 %v487_v44  ;;  %v471_v55 = vpack.c.bf16 %v3494_v50, %v3494_v50  ;;  %401 = vst [vmem:[#allocation2 + $0xd9] sm:$0xff] %v368_v22  ;;  %2058 = vmatpush.bf16.msrb.mxu3 %v3144_v41  ;;  %2147 = vmatpush.bf16.msrb.mxu0 %v3152_v56  ;;  %v3134_v56 = vld [vmem:[%s4371_s2 + $0x88] sm:$0xff] }
  0x3e   : > { %v936_v58 = vunpack.c.l.b16 %v488_v49  ;;  %402 = vst [vmem:[#allocation2 + $0xe1] sm:$0xff] %v369_v30  ;;  %v355_v30 = vmax.f32 %v323_v12, 0.0 }
  0x3f   : > { %v919_v61 = vunpack.c.l.b16 %v471_v55  ;;  %409 = vst [vmem:[#allocation2 + $0x139] sm:$0xff] %v376_v31  ;;  %v3143_v55 = vld [vmem:[%s4371_s2 + $0xd0] sm:$0xff] }
  0x40   : > { %v3505_v0 = vpack.c.b16 %v936_v58, %v935_v54  ;;  %v453_v2 = vld [vmem:[#allocation2 + $0x120] sm:$0xff]  ;;  %410 = vst [vmem:[#allocation2 + $0x141] sm:$0xff] %v377_v37  ;;  %1970 = vmatpush.bf16.msrb.mxu2 %v3135_v52  ;;  %1881 = vmatpush.bf16.msrb.mxu1 %v3127_v60 }
  0x41   : > { %v454_v8 = vld [vmem:[#allocation2 + $0x128] sm:$0xff]  ;;  %v495_v9 = vpack.c.bf16 %v453_v2, %v453_v2  ;;  %v951_v10 = vpack.c.b16 %v3459_v29, %v919_v61  ;;  %385 = vst [vmem:[#allocation2 + $0x19] sm:$0xff] %v352_v39  ;;  %v354_v29 = vmax.f32 %v322_v7, 0.0  ;;  %2059 = vmatpush.bf16.msrb.mxu3 %v3143_v55 }
  0x42   : > { %4399 = vst [vmem:[#allocation3_spill] sm:$0xff] %v3505_v0  ;;  %1835 = vmatmul.bf16.vlgmr.msra.gmra.mxu2 %v3505_v0  ;;  %v496_v13 = vpack.c.bf16 %v454_v8, %v454_v8  ;;  %v3512_v14 = vld [vmem:[#allocation2 + $0x78] sm:$0xff] }
  0x43   : > { %386 = vst [vmem:[#allocation2 + $0x21] sm:$0xff] %v353_v59  ;;  %v943_v16 = vunpack.c.l.b16 %v495_v9  ;;  %1795 = vmatmul.bf16.vlgmr.msra.gmra.mxu0 %v951_v10  ;;  %v3514_v19 = vld [vmem:[#allocation2 + $0x80] sm:$0xff]  ;;  %v481_v20 = vpack.c.bf16 %v3512_v14, %v3512_v14 }
  0x44   : > { %395 = vst [vmem:[#allocation2 + $0x91] sm:$0xff] %v362_v62  ;;  %v944_v22 = vunpack.c.l.b16 %v496_v13  ;;  %v482_v23 = vpack.c.bf16 %v3514_v19, %v3514_v19  ;;  %v3520_v24 = vld [vmem:[#allocation2 + $0xd8] sm:$0xff]  ;;  %v265_v13 = vld [vmem:[%s3300_s26 + $0x68] sm:$0xff]  ;;  %1971 = vmatpush.bf16.msrb.mxu2 %v3134_v56  ;;  %v419_v56 = vld [vmem:[#allocation2 + $0x10] sm:$0x3] }
  0x45   : > { %396 = vst [vmem:[#allocation2 + $0x99] sm:$0xff] %v363_v5  ;;  %v929_v26 = vunpack.c.l.b16 %v481_v20  ;;  %v3522_v28 = vld [vmem:[#allocation2 + $0xe0] sm:$0xff]  ;;  %v489_v33 = vpack.c.bf16 %v3520_v24, %v3520_v24 }
  0x46   : > { %403 = vst [vmem:[#allocation2 + $0xf1] sm:$0xff] %v370_v11  ;;  %v3524_v31 = vpack.c.b16 %v944_v22, %v943_v16  ;;  %v930_v32 = vunpack.c.l.b16 %v482_v23  ;;  %v490_v34 = vpack.c.bf16 %v3522_v28, %v3522_v28  ;;  %v456_v35 = vld [vmem:[#allocation2 + $0x138] sm:$0xff]  ;;  %v264_v11 = vld [vmem:[%s3300_s26 + $0x60] sm:$0xff]  ;;  %v273_v16 = vld [vmem:[%s3300_s26 + $0xa8] sm:$0xff] }
  0x47   : > { %404 = vst [vmem:[#allocation2 + $0xf9] sm:$0xff] %v371_v15  ;;  %v457_v37 = vld [vmem:[#allocation2 + $0x140] sm:$0xff]  ;;  %v937_v47 = vunpack.c.l.b16 %v489_v33  ;;  %v497_v57 = vpack.c.bf16 %v456_v35, %v456_v35  ;;  %v298_v33 = vmul.f32 %v3291_v3, %v264_v11 }
  0x48   : > { %4400 = vst [vmem:[#allocation4_spill] sm:$0xff] %v3524_v31  ;;  %1855 = vmatmul.bf16.vlgmr.msra.gmra.mxu3 %v3524_v31  ;;  %v3531_v38 = vpack.c.b16 %v930_v32, %v929_v26  ;;  %v3533_v39 = vld [vmem:[#allocation2 + $0x18] sm:$0xff]  ;;  %v938_v48 = vunpack.c.l.b16 %v490_v34  ;;  %v498_v58 = vpack.c.bf16 %v457_v37, %v457_v37  ;;  %v272_v15 = vld [vmem:[%s3300_s26 + $0xa0] sm:$0xff]  ;;  %v299_v34 = vmul.f32 %v3291_v3, %v265_v13 }
  0x49   : > { %411 = vst [vmem:[#allocation2 + $0x151] sm:$0xff] %v378_v21  ;;  %v473_v44 = vpack.c.bf16 %v3533_v39, %v3533_v39  ;;  %v945_v5 = vunpack.c.l.b16 %v497_v57  ;;  %v280_v20 = vld [vmem:[%s3300_s26 + $0xe0] sm:$0xff]  ;;  %v281_v21 = vld [vmem:[%s3300_s26 + $0xe8] sm:$0xff]  ;;  %v306_v35 = vmul.f32 %v3291_v3, %v272_v15  ;;  %v307_v37 = vmul.f32 %v3291_v3, %v273_v16 }
  0x4a   : > { %4401 = vst [vmem:[#allocation5_spill] sm:$0xff] %v3531_v38  ;;  %v3541_v42 = vld [vmem:[#allocation2 + $0x20] sm:$0xff]  ;;  %1820 = vmatmul.bf16.gmra.mxu1 %v3531_v38  ;;  %v3574_v63 = vpack.c.b16 %v938_v48, %v937_v47  ;;  %v946_v6 = vunpack.c.l.b16 %v498_v58  ;;  %v314_v40 = vmul.f32 %v3291_v3, %v280_v20  ;;  %v315_v41 = vmul.f32 %v3291_v3, %v281_v21  ;;  %v3142_v57 = vld [vmem:[%s4371_s2 + $0xc8] sm:$0xff]  ;;  %v3151_v58 = vld [vmem:[%s4371_s2 + $0x110] sm:$0xff] }
  0x4b   : > { %412 = vst [vmem:[#allocation2 + $0x159] sm:$0xff] %v379_v25  ;;  %v474_v49 = vpack.c.bf16 %v3541_v42, %v3541_v42  ;;  %v3554_v51 = vld [vmem:[#allocation2 + $0x90] sm:$0xff]  ;;  %v921_v53 = vunpack.c.l.b16 %v473_v44  ;;  %v257_v44 = vld [vmem:[%s3300_s26 + $0x28] sm:$0xff]  ;;  %v332_v46 = vadd.f32 %v3305_v4, %v298_v33  ;;  %v333_v47 = vadd.f32 %v3305_v4, %v299_v34  ;;  %v3133_v16 = vld [vmem:[%s4371_s2 + $0x80] sm:$0xff]  ;;  %2060 = vmatpush.bf16.msrb.mxu3 %v3142_v57 }
  0x4c   : > { %387 = vst [vmem:[#allocation2 + $0x31] sm:$0xff] %v354_v29  ;;  %v3559_v54 = vld [vmem:[#allocation2 + $0x98] sm:$0xff]  ;;  %v483_v61 = vpack.c.bf16 %v3554_v51, %v3554_v51  ;;  %v3592_v22 = vpack.c.b16 %v946_v6, %v945_v5  ;;  %v256_v29 = vld [vmem:[%s3300_s26 + $0x20] sm:$0xff]  ;;  %v341_v52 = vadd.f32 %v3305_v4, %v307_v37  ;;  %v349_v55 = vadd.f32 %v3305_v4, %v315_v41 }
  0x4d   : > { %388 = vst [vmem:[#allocation2 + $0x39] sm:$0xff] %v355_v30  ;;  %v922_v59 = vunpack.c.l.b16 %v474_v49  ;;  %v484_v62 = vpack.c.bf16 %v3559_v54, %v3559_v54  ;;  %v3578_v9 = vld [vmem:[#allocation2 + $0xf0] sm:$0xff]  ;;  %v290_v48 = vmul.f32 %v3291_v3, %v256_v29  ;;  %v340_v49 = vadd.f32 %v3305_v4, %v306_v35  ;;  %2148 = vmatpush.bf16.msrb.mxu0 %v3151_v58 }
  0x4e   : > { %4402 = vst [vmem:[#allocation6_spill] sm:$0xff] %v3574_v63  ;;  %v931_v7 = vunpack.c.l.b16 %v483_v61  ;;  %v3580_v10 = vld [vmem:[#allocation2 + $0xf8] sm:$0xff]  ;;  %v491_v23 = vpack.c.bf16 %v3578_v9, %v3578_v9  ;;  %v364_v61 = vmax.f32 %v332_v46, 0.0  ;;  %v291_v5 = vmul.f32 %v3291_v3, %v257_v44  ;;  %1972 = vmatpush.bf16.msrb.mxu2 %v3133_v16  ;;  %v3149_v46 = vld [vmem:[%s4371_s2 + $0x100] sm:$0xff] }
  0x4f   : > { %v3576_v2 = vpack.c.b16 %v922_v59, %v921_v53  ;;  %v932_v8 = vunpack.c.l.b16 %v484_v62  ;;  %v492_v25 = vpack.c.bf16 %v3580_v10, %v3580_v10  ;;  %v348_v53 = vadd.f32 %v3305_v4, %v314_v40  ;;  %v3180_v16 = vld [vmem:[%s4371_s2 + $0x1f8] sm:$0xff] }
  0x50   : > { %v459_v59 = vld [vmem:[#allocation2 + $0x150] sm:$0xff]  ;;  %v365_v62 = vmax.f32 %v333_v47, 0.0  ;;  %v324_v6 = vadd.f32 %v3305_v4, %v290_v48  ;;  %v372_v13 = vmax.f32 %v340_v49, 0.0  ;;  %v373_v15 = vmax.f32 %v341_v52, 0.0  ;;  %397 = vst [vmem:[#allocation2 + $0xa9] sm:$0xff] %v364_v61 }
  0x51   : > { %v3601_v30 = vpack.c.b16 %v932_v8, %v931_v7  ;;  %v3126_v7 = vld [vmem:[%s4371_s2 + $0x48] sm:$0xff]  ;;  %v939_v8 = vunpack.c.l.b16 %v491_v23  ;;  %v940_v11 = vunpack.c.l.b16 %v492_v25  ;;  %v380_v3 = vmax.f32 %v348_v53, 0.0  ;;  %v3141_v23 = vld [vmem:[%s4371_s2 + $0xc0] sm:$0xff] }
  0x52   : > { %1840 = vmatmul.bf16.gmra.mxu2 %v3574_v63  ;;  %v460_v60 = vld [vmem:[#allocation2 + $0x158] sm:$0xff]  ;;  %v325_v29 = vadd.f32 %v3305_v4, %v291_v5  ;;  %v3150_v25 = vld [vmem:[%s4371_s2 + $0x108] sm:$0xff]  ;;  %v499_v33 = vpack.c.bf16 %v459_v59, %v459_v59  ;;  %398 = vst [vmem:[#allocation2 + $0xb1] sm:$0xff] %v365_v62  ;;  %v381_v35 = vmax.f32 %v349_v55, 0.0  ;;  %1882 = vmatpush.bf16.msrb.mxu1 %v3126_v7  ;;  %v356_v4 = vmax.f32 %v324_v6, 0.0 }
  0x53   : > { %v3584_v12 = vld [vmem:[#allocation2 + $0x30] sm:$0xff]  ;;  %1800 = vmatmul.bf16.gmra.mxu0 %v3576_v2  ;;  %4403 = vst [vmem:[#allocation7_spill] sm:$0xff] %v3601_v30  ;;  %v500_v34 = vpack.c.bf16 %v460_v60, %v460_v60  ;;  %v3650_v37 = vpack.c.b16 %v940_v11, %v939_v8  ;;  %2061 = vmatpush.bf16.msrb.mxu3 %v3141_v23  ;;  %v552_v62 = vrot.slane %v3494_v50, 1  ;;  %v553_v5 = vrot.slane %v3243_v1, 1 }
  0x54   : > { %v3598_v26 = vld [vmem:[#allocation2 + $0x38] sm:$0xff]  ;;  %v475_v32 = vpack.c.bf16 %v3584_v12, %v3584_v12  ;;  %405 = vst [vmem:[#allocation2 + $0x109] sm:$0xff] %v372_v13  ;;  %v357_v40 = vmax.f32 %v325_v29, 0.0  ;;  %2149 = vmatpush.bf16.msrb.mxu0 %v3150_v25  ;;  %v947_v44 = vunpack.c.l.b16 %v499_v33  ;;  %v555_v8 = vrot.slane %v419_v56, 1 }
  0x55   : > { %v476_v45 = vpack.c.bf16 %v3598_v26, %v3598_v26  ;;  %406 = vst [vmem:[#allocation2 + $0x111] sm:$0xff] %v373_v15  ;;  %v3172_v15 = vld [vmem:[%s4371_s2 + $0x1b8] sm:$0xff] }
  0x56   : > { %v923_v20 = vunpack.c.l.b16 %v475_v32  ;;  %v3125_v32 = vld [vmem:[%s4371_s2 + $0x40] sm:$0xff]  ;;  %413 = vst [vmem:[#allocation2 + $0x169] sm:$0xff] %v380_v3  ;;  %v3164_v3 = vld [vmem:[%s4371_s2 + $0x178] sm:$0xff]  ;;  %2321 = vmatpush.bf16.msra.mxu2 %v3172_v15 }
  0x57   : > { %v924_v21 = vunpack.c.l.b16 %v476_v45  ;;  %v948_v45 = vunpack.c.l.b16 %v500_v34  ;;  %414 = vst [vmem:[#allocation2 + $0x171] sm:$0xff] %v381_v35  ;;  %1883 = vmatpush.bf16.msrb.mxu1 %v3125_v32  ;;  %v3658_v47 = vld [vmem:[#allocation2 + $0xa8] sm:$0xff]  ;;  %v3188_v29 = vld [vmem:[%s4371_s2 + $0x238] sm:$0xff]  ;;  %v554_v35 = vsel %vm551_vm0, %v552_v62, %v553_v5  ;;  %v556_v32 = vsel %vm551_vm0, %v553_v5, %v555_v8  ;;  %2410 = vmatpush.bf16.msra.mxu3 %v3180_v16 }
  0x58   : > { %1860 = vmatmul.bf16.gmra.mxu3 %v3592_v22  ;;  %389 = vst [vmem:[#allocation2 + $0x49] sm:$0xff] %v356_v4  ;;  %v485_v49 = vpack.c.bf16 %v3658_v47, %v3658_v47  ;;  %2150 = vmatpush.bf16.msrb.mxu0 %v3149_v46  ;;  %v422_v46 = vld [vmem:[#allocation2 + $0x28] sm:$0x3]  ;;  %v700_v5 = vrot.slane %v419_v56, 2 }
  0x59   : > { %v3652_v41 = vpack.c.b16 %v924_v21, %v923_v20  ;;  %390 = vst [vmem:[#allocation2 + $0x51] sm:$0xff] %v357_v40  ;;  %v3661_v48 = vld [vmem:[#allocation2 + $0xb0] sm:$0xff]  ;;  %v3665_v52 = vpack.c.b16 %v948_v45, %v947_v44  ;;  %v698_v45 = vrot.slane %v3243_v1, 2  ;;  %v560_v8 = vrot.slane %v422_v46, 1 }
  0x5a   : > { %1825 = vmatmul.bf16.gmra.mxu1 %v3601_v30  ;;  %v486_v53 = vpack.c.bf16 %v3661_v48, %v3661_v48  ;;  %v933_v57 = vunpack.c.l.b16 %v485_v49  ;;  %v697_v49 = vrot.slane %v3494_v50, 2 }
  0x5b   : > { %v3669_v55 = vld [vmem:[#allocation2 + $0x108] sm:$0xff]  ;;  %2232 = vmatpush.bf16.msra.mxu1 %v3164_v3  ;;  %v701_v16 = vsel %vm696_vm1, %v698_v45, %v700_v5  ;;  %v563_v5 = vrot.slane %v3598_v26, 1 }
  0x5c   : > { %v3671_v58 = vld [vmem:[#allocation2 + $0x110] sm:$0xff]  ;;  %v934_v59 = vunpack.c.l.b16 %v486_v53  ;;  %v493_v60 = vpack.c.bf16 %v3669_v55, %v3669_v55  ;;  %2499 = vmatpush.bf16.msra.mxu0 %v3188_v29  ;;  %v699_v50 = vsel %vm696_vm1, %v697_v49, %v698_v45  ;;  %v702_v49 = vrot.slane %v3533_v39, 2 }
  0x5d   : > { %v494_v61 = vpack.c.bf16 %v3671_v58, %v3671_v58  ;;  %v462_v6 = vld [vmem:[#allocation2 + $0x168] sm:$0xff] }
  0x5e   : > { %v463_v7 = vld [vmem:[#allocation2 + $0x170] sm:$0xff]  ;;  %v3680_v11 = vpack.c.b16 %v934_v59, %v933_v57  ;;  %v941_v23 = vunpack.c.l.b16 %v493_v60  ;;  %v501_v4 = vpack.c.bf16 %v462_v6, %v462_v6  ;;  %v664_v57 = vpack.c.bf16 %v554_v35, %v554_v35 }
  0x5f   : > { %v3682_v13 = vld [vmem:[#allocation2 + $0x48] sm:$0xff]  ;;  %v942_v25 = vunpack.c.l.b16 %v494_v61  ;;  %v502_v40 = vpack.c.bf16 %v463_v7, %v463_v7  ;;  %v665_v59 = vpack.c.bf16 %v556_v32, %v556_v32  ;;  %v557_v60 = vrot.slane %v3533_v39, 1 }
  0x60   : > { %4404 = vst [vmem:[#allocation8_spill] sm:$0xff] %v3680_v11  ;;  %v3690_v20 = vld [vmem:[#allocation2 + $0x50] sm:$0xff]  ;;  %v477_v21 = vpack.c.bf16 %v3682_v13, %v3682_v13  ;;  %v558_v61 = vrot.slane %v3541_v42, 1  ;;  %v949_v6 = vunpack.c.l.b16 %v501_v4  ;;  %v1015_v1 = vunpack.c.l.b16 %v664_v57 }
  0x61   : > { %v478_v33 = vpack.c.bf16 %v3690_v20, %v3690_v20  ;;  %v3707_v53 = vpack.c.b16 %v942_v25, %v941_v23  ;;  %v950_v7 = vunpack.c.l.b16 %v502_v40  ;;  %v1016_v15 = vunpack.c.l.b16 %v665_v59 }
  0x62   : > { %1845 = vmatmul.bf16.gmra.mxu2 %v3650_v37  ;;  %v925_v34 = vunpack.c.l.b16 %v477_v21  ;;  %v559_v3 = vsel %vm551_vm0, %v557_v60, %v558_v61  ;;  %v561_v56 = vsel %vm551_vm0, %v558_v61, %v560_v8  ;;  %v809_v23 = vpack.c.bf16 %v699_v50, %v699_v50 }
  0x63   : > { %1805 = vmatmul.bf16.gmra.mxu0 %v3652_v41  ;;  %v926_v44 = vunpack.c.l.b16 %v478_v33  ;;  %v3717_v21 = vpack.c.b16 %v950_v7, %v949_v6  ;;  %v1047_v29 = vpack.c.b16 %v1016_v15, %v1015_v1  ;;  %v810_v25 = vpack.c.bf16 %v701_v16, %v701_v16 }
  0x64   : > { %v666_v33 = vpack.c.bf16 %v559_v3, %v559_v3  ;;  %v1111_v35 = vunpack.c.l.b16 %v809_v23  ;;  %v703_v57 = vrot.slane %v3541_v42, 2  ;;  %v705_v60 = vrot.slane %v422_v46, 2  ;;  %v3171_v46 = vld [vmem:[%s4371_s2 + $0x1b0] sm:$0xff] }
  0x65   : > { %v3711_v62 = vpack.c.b16 %v926_v44, %v925_v34  ;;  %v667_v34 = vpack.c.bf16 %v561_v56, %v561_v56  ;;  %v1112_v32 = vunpack.c.l.b16 %v810_v25  ;;  %v425_v44 = vld [vmem:[#allocation2 + $0x40] sm:$0x3]  ;;  %v562_v61 = vrot.slane %v3584_v12, 1  ;;  %v3179_v3 = vld [vmem:[%s4371_s2 + $0x1f0] sm:$0xff]  ;;  %2322 = vmatpush.bf16.msra.mxu2 %v3171_v46 }
  0x66   : > { %v1017_v4 = vunpack.c.l.b16 %v666_v33  ;;  %v565_v6 = vrot.slane %v425_v44, 1  ;;  %v704_v7 = vsel %vm696_vm1, %v702_v49, %v703_v57  ;;  %v706_v8 = vsel %vm696_vm1, %v703_v57, %v705_v60  ;;  %v3163_v56 = vld [vmem:[%s4371_s2 + $0x170] sm:$0xff]  ;;  %2411 = vmatpush.bf16.msra.mxu3 %v3179_v3 }
  0x67   : > { %v1018_v40 = vunpack.c.l.b16 %v667_v34  ;;  %v1143_v45 = vpack.c.b16 %v1112_v32, %v1111_v35  ;;  %v564_v1 = vsel %vm551_vm0, %v562_v61, %v563_v5  ;;  %v811_v39 = vpack.c.bf16 %v704_v7, %v704_v7  ;;  %2233 = vmatpush.bf16.msra.mxu1 %v3163_v56  ;;  %v428_v34 = vld [vmem:[#allocation2 + $0x58] sm:$0x3] }
  0x68   : > { %1865 = vmatmul.bf16.gmra.mxu3 %v3665_v52  ;;  %v566_v15 = vsel %vm551_vm0, %v563_v5, %v565_v6  ;;  %v812_v50 = vpack.c.bf16 %v706_v8, %v706_v8  ;;  %v668_v42 = vpack.c.bf16 %v564_v1, %v564_v1  ;;  %v572_v35 = vrot.slane %v3337_v17, 1  ;;  %v431_v5 = vld [vmem:[#allocation2 + $0x70] sm:$0x3] }
  0x69   : > { %v1048_v59 = vpack.c.b16 %v1018_v40, %v1017_v4  ;;  %v669_v16 = vpack.c.bf16 %v566_v15, %v566_v15  ;;  %v1113_v23 = vunpack.c.l.b16 %v811_v39  ;;  %v573_v32 = vrot.slane %v3340_v18, 1 }
  0x6a   : > { %1830 = vmatmul.bf16.gmra.mxu1 %v3680_v11  ;;  %v1114_v25 = vunpack.c.l.b16 %v812_v50  ;;  %v707_v40 = vrot.slane %v3584_v12, 2  ;;  %v710_v57 = vrot.slane %v425_v44, 2  ;;  %v568_v60 = vrot.slane %v3690_v20, 1 }
  0x6b   : > { %v1020_v33 = vunpack.c.l.b16 %v669_v16  ;;  %v570_v61 = vrot.slane %v428_v34, 1  ;;  %v575_v6 = vrot.slane %v431_v5, 1 }
  0x6c   : > { %v3745_v4 = vpack.c.b16 %v1114_v25, %v1113_v23 }
  0x6d   : > { %v576_v8 = vsel %vm551_vm0, %v573_v32, %v575_v6  ;;  %v571_v1 = vsel %vm551_vm0, %v568_v60, %v570_v61  ;;  %v715_v6 = vrot.slane %v428_v34, 2 }
  0x6e   : > { %v673_v39 = vpack.c.bf16 %v576_v8, %v576_v8  ;;  %v671_v56 = vpack.c.bf16 %v571_v1, %v571_v1 }
  0x70   : > { %v1024_v46 = vunpack.c.l.b16 %v673_v39 }
  0x72   : > { %1850 = vmatmul.bf16.gmra.mxu2 %v3707_v53 }
  0x73   : > { %1810 = vmatmul.bf16.gmra.mxu0 %v3711_v62 }
  0x78   : > { %1870 = vmatmul.bf16.gmra.mxu3 %v3717_v21 }
  0x7a   : > { %1884 = vmatmul.bf16.vlgmr.msrb.gmra.mxu1 %v1047_v29  ;;  %v3187_v29 = vld [vmem:[%s4371_s2 + $0x230] sm:$0xff] }
  0x7b   : > { %2500 = vmatpush.bf16.msra.mxu0 %v3187_v29 }
  0x82   : > { %1973 = vmatmul.bf16.vlgmr.msrb.gmra.mxu2 %v1143_v45  ;;  %v708_v45 = vrot.slane %v3598_v26, 2  ;;  %v574_v26 = vsel %vm551_vm0, %v572_v35, %v573_v32  ;;  %v717_v35 = vrot.slane %v3337_v17, 2  ;;  %v718_v32 = vrot.slane %v3340_v18, 2 }
  0x83   : > { %2151 = vmatmul.bf16.vlgmr.msrb.gmra.mxu0 %v1048_v59  ;;  %v672_v15 = vpack.c.bf16 %v574_v26, %v574_v26  ;;  %v434_v26 = vld [vmem:[#allocation2 + $0x88] sm:$0x3] }
  0x84   : > { %v709_v7 = vsel %vm696_vm1, %v707_v40, %v708_v45  ;;  %v711_v12 = vsel %vm696_vm1, %v708_v45, %v710_v57  ;;  %v577_v40 = vrot.slane %v3512_v14, 1  ;;  %v712_v45 = vrot.slane %v3682_v13, 2 }
  0x85   : > { %v813_v50 = vpack.c.bf16 %v709_v7, %v709_v7  ;;  %v1023_v16 = vunpack.c.l.b16 %v672_v15  ;;  %v713_v57 = vrot.slane %v3690_v20, 2  ;;  %v720_v7 = vrot.slane %v431_v5, 2 }
  0x86   : > { %v580_v8 = vrot.slane %v434_v26, 1 }
  0x87   : > { %v3762_v29 = vpack.c.b16 %v1024_v46, %v1023_v16  ;;  %v1115_v23 = vunpack.c.l.b16 %v813_v50  ;;  %v721_v17 = vsel %vm696_vm1, %v718_v32, %v720_v7  ;;  %v583_v7 = vrot.slane %v3559_v54, 1 }
  0x88   : > { %2062 = vmatmul.bf16.vlgmr.msrb.gmra.mxu3 %v3576_v2  ;;  %v1019_v2 = vunpack.c.l.b16 %v668_v42  ;;  %v814_v42 = vpack.c.bf16 %v711_v12, %v711_v12  ;;  %v719_v12 = vsel %vm696_vm1, %v717_v35, %v718_v32  ;;  %v818_v20 = vpack.c.bf16 %v721_v17, %v721_v17  ;;  %v3162_v32 = vld [vmem:[%s4371_s2 + $0x168] sm:$0xff]  ;;  %v437_v17 = vld [vmem:[#allocation2 + $0xa0] sm:$0x3] }
  0x89   : > { %4405 = vst [vmem:[#allocation9_spill] sm:$0xff] %v3762_v29  ;;  %v817_v18 = vpack.c.bf16 %v719_v12, %v719_v12  ;;  %2234 = vmatpush.bf16.msra.mxu1 %v3162_v32  ;;  %v725_v12 = vrot.slane %v434_v26, 2 }
  0x8a   : > { %1889 = vmatmul.bf16.gmra.mxu1 %v1048_v59  ;;  %v3749_v49 = vpack.c.b16 %v1020_v33, %v1019_v2  ;;  %v567_v59 = vrot.slane %v3682_v13, 1  ;;  %v1116_v25 = vunpack.c.l.b16 %v814_v42  ;;  %v1022_v33 = vunpack.c.l.b16 %v671_v56 }
  0x8b   : > { %v714_v13 = vsel %vm696_vm1, %v712_v45, %v713_v57  ;;  %v1119_v1 = vunpack.c.l.b16 %v817_v18  ;;  %v1120_v15 = vunpack.c.l.b16 %v818_v20  ;;  %v722_v45 = vrot.slane %v3512_v14, 2 }
  0x8c   : > { %v569_v44 = vsel %vm551_vm0, %v567_v59, %v568_v60  ;;  %v3770_v59 = vpack.c.b16 %v1116_v25, %v1115_v23  ;;  %v578_v60 = vrot.slane %v3514_v19, 1  ;;  %v815_v42 = vpack.c.bf16 %v714_v13, %v714_v13  ;;  %v3170_v23 = vld [vmem:[%s4371_s2 + $0x1a8] sm:$0xff] }
  0x8d   : > { %v670_v3 = vpack.c.bf16 %v569_v44, %v569_v44  ;;  %v716_v44 = vsel %vm696_vm1, %v713_v57, %v715_v6  ;;  %v3783_v46 = vpack.c.b16 %v1120_v15, %v1119_v1  ;;  %2323 = vmatpush.bf16.msra.mxu2 %v3170_v23  ;;  %v723_v57 = vrot.slane %v3514_v19, 2 }
  0x8e   : > { %v579_v34 = vsel %vm551_vm0, %v577_v40, %v578_v60  ;;  %v581_v5 = vsel %vm551_vm0, %v578_v60, %v580_v8  ;;  %v816_v16 = vpack.c.bf16 %v716_v44, %v716_v44  ;;  %v3186_v40 = vld [vmem:[%s4371_s2 + $0x228] sm:$0xff]  ;;  %v582_v6 = vrot.slane %v3554_v51, 1 }
  0x8f   : > { %v1021_v2 = vunpack.c.l.b16 %v670_v3  ;;  %v674_v39 = vpack.c.bf16 %v579_v34, %v579_v34  ;;  %v675_v50 = vpack.c.bf16 %v581_v5, %v581_v5  ;;  %2501 = vmatpush.bf16.msra.mxu0 %v3186_v40  ;;  %v724_v18 = vsel %vm696_vm1, %v722_v45, %v723_v57  ;;  %v440_v40 = vld [vmem:[#allocation2 + $0xb8] sm:$0x3] }
  0x90   : > { %v1118_v35 = vunpack.c.l.b16 %v816_v16  ;;  %v726_v8 = vsel %vm696_vm1, %v723_v57, %v725_v12  ;;  %v585_v13 = vrot.slane %v437_v17, 1  ;;  %v819_v14 = vpack.c.bf16 %v724_v18, %v724_v18 }
  0x91   : > { %v3773_v61 = vpack.c.b16 %v1022_v33, %v1021_v2  ;;  %v1025_v3 = vunpack.c.l.b16 %v674_v39  ;;  %v1026_v56 = vunpack.c.l.b16 %v675_v50  ;;  %v3178_v2 = vld [vmem:[%s4371_s2 + $0x1e8] sm:$0xff]  ;;  %v1117_v33 = vunpack.c.l.b16 %v815_v42 }
  0x92   : > { %1978 = vmatmul.bf16.gmra.mxu2 %v3745_v4  ;;  %2412 = vmatpush.bf16.msra.mxu3 %v3178_v2  ;;  %v820_v20 = vpack.c.bf16 %v726_v8, %v726_v8  ;;  %v584_v44 = vsel %vm551_vm0, %v582_v6, %v583_v7  ;;  %v586_v1 = vsel %vm551_vm0, %v583_v7, %v585_v13  ;;  %v1121_v34 = vunpack.c.l.b16 %v819_v14 }
  0x93   : > { %2156 = vmatmul.bf16.gmra.mxu0 %v3749_v49  ;;  %v3789_v25 = vpack.c.b16 %v1026_v56, %v1025_v3  ;;  %v3803_v60 = vpack.c.b16 %v1118_v35, %v1117_v33  ;;  %v676_v5 = vpack.c.bf16 %v584_v44, %v584_v44  ;;  %v677_v15 = vpack.c.bf16 %v586_v1, %v586_v1 }
  0x94   : > { %v1122_v26 = vunpack.c.l.b16 %v820_v20  ;;  %v727_v3 = vrot.slane %v3554_v51, 2  ;;  %v728_v56 = vrot.slane %v3559_v54, 2  ;;  %v587_v2 = vrot.slane %v3658_v47, 1 }
  0x95   : > { %4406 = vst [vmem:[#allocation10_spill] sm:$0xff] %v3789_v25  ;;  %v1027_v50 = vunpack.c.l.b16 %v676_v5  ;;  %v1028_v42 = vunpack.c.l.b16 %v677_v15  ;;  %v588_v33 = vrot.slane %v3661_v48, 1  ;;  %v730_v35 = vrot.slane %v437_v17, 2  ;;  %v3169_v5 = vld [vmem:[%s4371_s2 + $0x1a0] sm:$0xff] }
  0x96   : > { %v3815_v39 = vpack.c.b16 %v1122_v26, %v1121_v34  ;;  %v729_v45 = vsel %vm696_vm1, %v727_v3, %v728_v56  ;;  %v590_v6 = vrot.slane %v440_v40, 1  ;;  %2324 = vmatpush.bf16.msra.mxu2 %v3169_v5  ;;  %v3161_v3 = vld [vmem:[%s4371_s2 + $0x160] sm:$0xff] }
  0x97   : > { %v3818_v16 = vpack.c.b16 %v1028_v42, %v1027_v50  ;;  %v731_v57 = vsel %vm696_vm1, %v728_v56, %v730_v35  ;;  %v821_v51 = vpack.c.bf16 %v729_v45, %v729_v45  ;;  %v589_v54 = vsel %vm551_vm0, %v587_v2, %v588_v33  ;;  %v3177_v50 = vld [vmem:[%s4371_s2 + $0x1e0] sm:$0xff]  ;;  %2235 = vmatpush.bf16.msra.mxu1 %v3161_v3 }
  0x98   : > { %2067 = vmatmul.bf16.gmra.mxu3 %v3652_v41  ;;  %4407 = vst [vmem:[#allocation11_spill] sm:$0xff] %v3815_v39  ;;  %v822_v7 = vpack.c.bf16 %v731_v57, %v731_v57  ;;  %v591_v12 = vsel %vm551_vm0, %v588_v33, %v590_v6  ;;  %v678_v8 = vpack.c.bf16 %v589_v54, %v589_v54  ;;  %v3185_v56 = vld [vmem:[%s4371_s2 + $0x220] sm:$0xff]  ;;  %v732_v2 = vrot.slane %v3658_v47, 2  ;;  %v443_v54 = vld [vmem:[#allocation2 + $0xd0] sm:$0x3] }
  0x99   : > { %4408 = vst [vmem:[#allocation12_spill] sm:$0xff] %v3818_v16  ;;  %v1123_v18 = vunpack.c.l.b16 %v821_v51  ;;  %v679_v13 = vpack.c.bf16 %v591_v12, %v591_v12  ;;  %2413 = vmatpush.bf16.msra.mxu3 %v3177_v50  ;;  %v733_v33 = vrot.slane %v3661_v48, 2  ;;  %2502 = vmatpush.bf16.msra.mxu0 %v3185_v56  ;;  %v592_v45 = vrot.slane %v3468_v36, 1 }
  0x9a   : > { %1894 = vmatmul.bf16.gmra.mxu1 %v3749_v49  ;;  %v1124_v17 = vunpack.c.l.b16 %v822_v7  ;;  %v1029_v44 = vunpack.c.l.b16 %v678_v8  ;;  %v593_v57 = vrot.slane %v3480_v43, 1  ;;  %v735_v51 = vrot.slane %v440_v40, 2 }
  0x9b   : > { %v1030_v1 = vunpack.c.l.b16 %v679_v13  ;;  %v734_v12 = vsel %vm696_vm1, %v732_v2, %v733_v33 }
  0x9c   : > { %v3837_v20 = vpack.c.b16 %v1124_v17, %v1123_v18  ;;  %v736_v47 = vsel %vm696_vm1, %v733_v33, %v735_v51  ;;  %v595_v18 = vrot.slane %v443_v54, 1  ;;  %v823_v48 = vpack.c.bf16 %v734_v12, %v734_v12 }
  0x9d   : > { %v3847_v15 = vpack.c.b16 %v1030_v1, %v1029_v44  ;;  %v824_v17 = vpack.c.bf16 %v736_v47, %v736_v47  ;;  %v594_v13 = vsel %vm551_vm0, %v592_v45, %v593_v57 }
  0x9e   : > { %4409 = vst [vmem:[#allocation13_spill] sm:$0xff] %v3837_v20  ;;  %v596_v40 = vsel %vm551_vm0, %v593_v57, %v595_v18  ;;  %v1125_v44 = vunpack.c.l.b16 %v823_v48  ;;  %v680_v5 = vpack.c.bf16 %v594_v13, %v594_v13  ;;  %v737_v57 = vrot.slane %v3468_v36, 2 }
  0x9f   : > { %4410 = vst [vmem:[#allocation14_spill] sm:$0xff] %v3847_v15  ;;  %v1126_v1 = vunpack.c.l.b16 %v824_v17  ;;  %v681_v50 = vpack.c.bf16 %v596_v40, %v596_v40  ;;  %v738_v18 = vrot.slane %v3480_v43, 2  ;;  %v597_v17 = vrot.slane %v3520_v24, 1 }
  0xa0   : > { %v1031_v2 = vunpack.c.l.b16 %v680_v5  ;;  %v598_v13 = vrot.slane %v3522_v28, 1  ;;  %v446_v5 = vld [vmem:[#allocation2 + $0xe8] sm:$0x3] }
  0xa1   : > { %v3881_v56 = vpack.c.b16 %v1126_v1, %v1125_v44  ;;  %v1032_v33 = vunpack.c.l.b16 %v681_v50  ;;  %v740_v44 = vrot.slane %v443_v54, 2  ;;  %v739_v50 = vsel %vm696_vm1, %v737_v57, %v738_v18 }
  0xa2   : > { %1983 = vmatmul.bf16.gmra.mxu2 %v3770_v59  ;;  %v825_v36 = vpack.c.bf16 %v739_v50, %v739_v50 }
  0xa3   : > { %2161 = vmatmul.bf16.gmra.mxu0 %v3773_v61  ;;  %4413 = vst [vmem:[#allocation17_spill] sm:$0xff] %v3881_v56  ;;  %v3888_v47 = vpack.c.b16 %v1032_v33, %v1031_v2  ;;  %v741_v2 = vsel %vm696_vm1, %v738_v18, %v740_v44  ;;  %v600_v33 = vrot.slane %v446_v5, 1 }
  0xa4   : > { %v826_v43 = vpack.c.bf16 %v741_v2, %v741_v2 }
  0xa5   : > { %4414 = vst [vmem:[#allocation18_spill] sm:$0xff] %v3888_v47  ;;  %v601_v54 = vsel %vm551_vm0, %v598_v13, %v600_v33 }
  0xa8   : > { %2072 = vmatmul.bf16.gmra.mxu3 %v3711_v62  ;;  %v3811_v19 = vpop.f32.mrf.mxu1 }
  0xaa   : > { %1899 = vmatmul.bf16.gmra.mxu1 %v3773_v61 }
  0xb0   : > { %v3823_v23 = vpop.f32.mrf.mxu1 }
  0xb2   : > { %1988 = vmatmul.bf16.gmra.mxu2 %v3803_v60 }
  0xb3   : > { %2166 = vmatmul.bf16.gmra.mxu0 %v3762_v29 }
  0xb8   : > { %2077 = vmatmul.bf16.gmra.mxu3 %v3362_v27 }
  0xba   : > { %1904 = vmatmul.bf16.gmra.mxu1 %v3762_v29 }
  0xc0   : > { %v3827_v32 = vpop.f32.mrf.mxu0 }
  0xc2   : > { %1993 = vmatmul.bf16.gmra.mxu2 %v3783_v46 }
  0xc3   : > { %2171 = vmatmul.bf16.gmra.mxu0 %v3789_v25 }
  0xc5   : > { %v3835_v14 = vpop.f32.mrf.mxu2 }
  0xc7   : > { %v3839_v34 = vpop.f32.mrf.mxu1 }
  0xc8   : > { %2082 = vmatmul.bf16.gmra.mxu3 %v3531_v38  ;;  %v3842_v26 = vpop.f32.mrf.mxu0 }
  0xca   : > { %1909 = vmatmul.bf16.gmra.mxu1 %v3789_v25  ;;  %v683_v25 = vpack.c.bf16 %v601_v54, %v601_v54 }
  0xcb   : > { %v3853_v42 = vpop.f32.mrf.mxu3 }
  0xcc   : > { %4411 = vst [vmem:[#allocation15_spill] sm:$0xff] %v3853_v42  ;;  %v1128_v42 = vunpack.c.l.b16 %v826_v43  ;;  %v603_v43 = vrot.slane %v3580_v10, 1 }
  0xcd   : > { %v3863_v35 = vpop.f32.mrf.mxu2 }
  0xcf   : > { %v3867_v6 = vpop.f32.mrf.mxu1 }
  0xd0   : > { %v3869_v7 = vpop.f32.mrf.mxu0 }
  0xd2   : > { %1998 = vmatmul.bf16.gmra.mxu2 %v3815_v39 }
  0xd3   : > { %v3874_v8 = vpop.f32.mrf.mxu3  ;;  %2176 = vmatmul.bf16.gmra.mxu0 %v3818_v16 }
  0xd4   : > { %4412 = vst [vmem:[#allocation16_spill] sm:$0xff] %v3874_v8  ;;  %v599_v8 = vsel %vm551_vm0, %v597_v17, %v598_v13  ;;  %v3168_v17 = vld [vmem:[%s4371_s2 + $0x198] sm:$0xff] }
  0xd5   : > { %v3879_v3 = vpop.f32.mrf.mxu2  ;;  %2325 = vmatpush.bf16.msra.mxu2 %v3168_v17 }
  0xd7   : > { %v3883_v51 = vpop.f32.mrf.mxu1 }
  0xd8   : > { %2087 = vmatmul.bf16.gmra.mxu3 %v3601_v30  ;;  %v3886_v12 = vpop.f32.mrf.mxu0  ;;  %v682_v30 = vpack.c.bf16 %v599_v8, %v599_v8  ;;  %v3176_v8 = vld [vmem:[%s4371_s2 + $0x1d8] sm:$0xff] }
  0xd9   : > { %2414 = vmatpush.bf16.msra.mxu3 %v3176_v8  ;;  %v449_v8 = vld [vmem:[#allocation2 + $0x100] sm:$0x3] }
  0xda   : > { %1914 = vmatmul.bf16.gmra.mxu1 %v3818_v16  ;;  %v1127_v16 = vunpack.c.l.b16 %v825_v36  ;;  %v1033_v44 = vunpack.c.l.b16 %v682_v30  ;;  %v602_v36 = vrot.slane %v3578_v9, 1 }
  0xdb   : > { %v3891_v45 = vpop.f32.mrf.mxu3 }
  0xdc   : > { %4415 = vst [vmem:[#allocation19_spill] sm:$0xff] %v3891_v45  ;;  %v3913_v18 = vpack.c.b16 %v1128_v42, %v1127_v16  ;;  %v3184_v16 = vld [vmem:[%s4371_s2 + $0x218] sm:$0xff]  ;;  %v743_v42 = vrot.slane %v3522_v28, 2 }
  0xdd   : > { %v3895_v48 = vpop.f32.mrf.mxu2  ;;  %2503 = vmatpush.bf16.msra.mxu0 %v3184_v16 }
  0xde   : > { %4417 = vst [vmem:[#allocation21_spill] sm:$0xff] %v3913_v18 }
  0xdf   : > { %v3899_v40 = vpop.f32.mrf.mxu1 }
  0xe0   : > { %v3901_v1 = vpop.f32.mrf.mxu0 }
  0xe2   : > { %2003 = vmatmul.bf16.gmra.mxu2 %v3837_v20  ;;  %v1034_v20 = vunpack.c.l.b16 %v683_v25  ;;  %v3160_v25 = vld [vmem:[%s4371_s2 + $0x158] sm:$0xff] }
  0xe3   : > { %v3906_v45 = vpop.f32.mrf.mxu3  ;;  %2181 = vmatmul.bf16.gmra.mxu0 %v3847_v15  ;;  %2236 = vmatpush.bf16.msra.mxu1 %v3160_v25 }
  0xe4   : > { %4416 = vst [vmem:[#allocation20_spill] sm:$0xff] %v3906_v45  ;;  %v3923_v13 = vpack.c.b16 %v1034_v20, %v1033_v44  ;;  %v742_v20 = vrot.slane %v3520_v24, 2  ;;  %v745_v44 = vrot.slane %v446_v5, 2  ;;  %v605_v45 = vrot.slane %v449_v8, 1 }
  0xe5   : > { %v3911_v57 = vpop.f32.mrf.mxu2 }
  0xe6   : > { %4418 = vst [vmem:[#allocation22_spill] sm:$0xff] %v3923_v13  ;;  %v746_v24 = vsel %vm696_vm1, %v743_v42, %v745_v44  ;;  %v606_v5 = vsel %vm551_vm0, %v603_v43, %v605_v45 }
  0xe7   : > { %v3915_v50 = vpop.f32.mrf.mxu1  ;;  %v828_v25 = vpack.c.bf16 %v746_v24, %v746_v24 }
  0xe8   : > { %2092 = vmatmul.bf16.gmra.mxu3 %v3680_v11  ;;  %v3918_v2 = vpop.f32.mrf.mxu0 }
  0xe9   : > { %v1130_v39 = vunpack.c.l.b16 %v828_v25 }
  0xea   : > { %1919 = vmatmul.bf16.gmra.mxu1 %v3847_v15  ;;  %v604_v15 = vsel %vm551_vm0, %v602_v36, %v603_v43 }
  0xeb   : > { %v3929_v30 = vpop.f32.mrf.mxu3  ;;  %v684_v38 = vpack.c.bf16 %v604_v15, %v604_v15  ;;  %v747_v15 = vrot.slane %v3578_v9, 2 }
  0xec   : > { %4419 = vst [vmem:[#allocation23_spill] sm:$0xff] %v3929_v30  ;;  %v744_v30 = vsel %vm696_vm1, %v742_v20, %v743_v42 }
  0xed   : > { %v3939_v33 = vpop.f32.mrf.mxu2  ;;  %v827_v28 = vpack.c.bf16 %v744_v30, %v744_v30  ;;  %v1035_v44 = vunpack.c.l.b16 %v684_v38  ;;  %v607_v38 = vrot.slane %v3669_v55, 1 }
  0xee   : > { %4420 = vst [vmem:[#allocation24_spill] sm:$0xff] %v3939_v33  ;;  %v685_v33 = vpack.c.bf16 %v606_v5, %v606_v5 }
  0xef   : > { %v3943_v54 = vpop.f32.mrf.mxu1  ;;  %v1129_v11 = vunpack.c.l.b16 %v827_v28  ;;  %v750_v28 = vrot.slane %v449_v8, 2 }
  0xf0   : > { %v3945_v17 = vpop.f32.mrf.mxu0 }
  0xf1   : > { %v3957_v42 = vpack.c.b16 %v1130_v39, %v1129_v11  ;;  %v748_v11 = vrot.slane %v3580_v10, 2 }
  0xf2   : > { %2008 = vmatmul.bf16.gmra.mxu2 %v3881_v56  ;;  %v1036_v56 = vunpack.c.l.b16 %v685_v33  ;;  %v608_v33 = vrot.slane %v3671_v58, 1 }
  0xf3   : > { %v3950_v16 = vpop.f32.mrf.mxu3  ;;  %2186 = vmatmul.bf16.gmra.mxu0 %v3888_v47  ;;  %4423 = vst [vmem:[#allocation27_spill] sm:$0xff] %v3957_v42  ;;  %v749_v5 = vsel %vm696_vm1, %v747_v15, %v748_v11 }
  0xf4   : > { %4421 = vst [vmem:[#allocation25_spill] sm:$0xff] %v3950_v16  ;;  %v3963_v36 = vpack.c.b16 %v1036_v56, %v1035_v44  ;;  %v452_v56 = vld [vmem:[#allocation2 + $0x118] sm:$0x3]  ;;  %v751_v44 = vsel %vm696_vm1, %v748_v11, %v750_v28  ;;  %v829_v9 = vpack.c.bf16 %v749_v5, %v749_v5 }
  0xf5   : > { %v3955_v20 = vpop.f32.mrf.mxu2  ;;  %v830_v10 = vpack.c.bf16 %v751_v44, %v751_v44 }
  0xf6   : > { %4422 = vst [vmem:[#allocation26_spill] sm:$0xff] %v3955_v20 }
  0xf7   : > { %v1885_v30 = vpop.f32.mrf.mxu1 }
  0xf8   : > { %2097 = vmatmul.bf16.gmra.mxu3 %v3505_v0  ;;  %v3960_v24 = vpop.f32.mrf.mxu0  ;;  %v1886_v16 = vadd.f32 %v1885_v30, %v3827_v32  ;;  %v610_v30 = vrot.slane %v452_v56, 1  ;;  %v1131_v0 = vunpack.c.l.b16 %v829_v9 }
  0xfa   : > { %1924 = vmatmul.bf16.gmra.mxu1 %v3888_v47  ;;  %v609_v47 = vsel %vm551_vm0, %v607_v38, %v608_v33  ;;  %v611_v8 = vsel %vm551_vm0, %v608_v33, %v610_v30  ;;  %v3167_v38 = vld [vmem:[%s4371_s2 + $0x190] sm:$0xff]  ;;  %v753_v30 = vrot.slane %v3671_v58, 2 }
  0xfb   : > { %v3966_v45 = vpop.f32.mrf.mxu3  ;;  %2326 = vmatpush.bf16.msra.mxu2 %v3167_v38 }
  0xfc   : > { %4424 = vst [vmem:[#allocation28_spill] sm:$0xff] %v3966_v45 }
  0xfd   : > { %v3970_v39 = vpop.f32.mrf.mxu2 }
  0xfe   : > { %4425 = vst [vmem:[#allocation29_spill] sm:$0xff] %v3970_v39  ;;  %v687_v39 = vpack.c.bf16 %v611_v8, %v611_v8 }
  0xff   : > { %v1887_v43 = vpop.f32.mrf.mxu1 }
 0x100   : > { %v2152_v25 = vpop.f32.mrf.mxu0  ;;  %v1888_v32 = vadd.f32 %v1887_v43, %v3842_v26  ;;  %v1132_v26 = vunpack.c.l.b16 %v830_v10  ;;  %v686_v43 = vpack.c.bf16 %v609_v47, %v609_v47  ;;  %v3175_v47 = vld [vmem:[%s4371_s2 + $0x1d0] sm:$0xff] }
 0x101   : > { %2415 = vmatpush.bf16.msra.mxu3 %v3175_v47 }
 0x102   : > { %2013 = vmatmul.bf16.gmra.mxu2 %v3913_v18  ;;  %v3983_v11 = vpack.c.b16 %v1132_v26, %v1131_v0  ;;  %v1037_v28 = vunpack.c.l.b16 %v686_v43  ;;  %v1038_v18 = vunpack.c.l.b16 %v687_v39  ;;  %v3183_v39 = vld [vmem:[%s4371_s2 + $0x210] sm:$0xff]  ;;  %v3224_v26 = vld [vmem:[#allocation2 + $0x120] sm:$0xff]  ;;  %v3225_v43 = vld [vmem:[#allocation2 + $0x128] sm:$0xff] }
 0x103   : > { %v3978_v45 = vpop.f32.mrf.mxu3  ;;  %2191 = vmatmul.bf16.gmra.mxu0 %v3923_v13 }
 0x104   : > { %4426 = vst [vmem:[#allocation30_spill] sm:$0xff] %v3978_v45  ;;  %v3990_v33 = vpack.c.b16 %v1038_v18, %v1037_v28  ;;  %v752_v18 = vrot.slane %v3669_v55, 2  ;;  %2504 = vmatpush.bf16.msra.mxu0 %v3183_v39 }
 0x105   : > { %v1974_v15 = vpop.f32.mrf.mxu2 }
 0x106   : > { %v1975_v20 = vadd.f32 %v1974_v15, %v1886_v16  ;;  %v613_v15 = vrot.slane %v3225_v43, 1  ;;  %v754_v55 = vsel %vm696_vm1, %v752_v18, %v753_v30 }
 0x107   : > { %v1890_v5 = vpop.f32.mrf.mxu1 }
 0x108   : > { %2102 = vmatmul.bf16.gmra.mxu3 %v3574_v63  ;;  %v2154_v44 = vpop.f32.mrf.mxu0  ;;  %v1891_v45 = vadd.f32 %v1890_v5, %v3869_v7  ;;  %v3159_v7 = vld [vmem:[%s4371_s2 + $0x150] sm:$0xff]  ;;  %v755_v5 = vrot.slane %v452_v56, 2 }
 0x109   : > { %2237 = vmatpush.bf16.msra.mxu1 %v3159_v7 }
 0x10a   : > { %1929 = vmatmul.bf16.gmra.mxu1 %v3923_v13  ;;  %v756_v58 = vsel %vm696_vm1, %v753_v30, %v755_v5 }
 0x10b   : > { %v2063_v0 = vpop.f32.mrf.mxu3 }
 0x10c   : > { %v2064_v16 = vadd.f32 %v2063_v0, %v1975_v20  ;;  %v612_v20 = vrot.slane %v3224_v26, 1  ;;  %v455_v0 = vld [vmem:[#allocation2 + $0x130] sm:$0x3] }
 0x10d   : > { %v1976_v9 = vpop.f32.mrf.mxu2  ;;  %v615_v13 = vrot.slane %v455_v0, 1 }
 0x10e   : > { %v1977_v10 = vadd.f32 %v1976_v9, %v1888_v32  ;;  %v4004_v8 = vadd.f32 %v2152_v25, %v2064_v16  ;;  %v831_v32 = vpack.c.bf16 %v754_v55, %v754_v55  ;;  %v832_v25 = vpack.c.bf16 %v756_v58, %v756_v58 }
 0x10f   : > { %v1892_v28 = vpop.f32.mrf.mxu1  ;;  %v614_v7 = vsel %vm551_vm0, %v612_v20, %v613_v15  ;;  %v616_v56 = vsel %vm551_vm0, %v613_v15, %v615_v13 }
 0x110   : > { %4427 = vst [vmem:[#allocation31_spill] sm:$0xff] %v4004_v8  ;;  %v2157_v38 = vpop.f32.mrf.mxu0  ;;  %v1893_v47 = vadd.f32 %v1892_v28, %v3886_v12  ;;  %v1133_v9 = vunpack.c.l.b16 %v831_v32  ;;  %v1134_v12 = vunpack.c.l.b16 %v832_v25  ;;  %v688_v28 = vpack.c.bf16 %v614_v7, %v614_v7 }
 0x111   : > { %v689_v18 = vpack.c.bf16 %v616_v56, %v616_v56  ;;  %v757_v32 = vrot.slane %v3224_v26, 2  ;;  %v3227_v56 = vld [vmem:[#allocation2 + $0x140] sm:$0xff] }
 0x112   : > { %2018 = vmatmul.bf16.gmra.mxu2 %v3957_v42  ;;  %v4013_v30 = vpack.c.b16 %v1134_v12, %v1133_v9  ;;  %v1039_v5 = vunpack.c.l.b16 %v688_v28  ;;  %v760_v12 = vrot.slane %v455_v0, 2 }
 0x113   : > { %v2065_v16 = vpop.f32.mrf.mxu3  ;;  %2196 = vmatmul.bf16.gmra.mxu0 %v3963_v36  ;;  %v1040_v58 = vunpack.c.l.b16 %v689_v18  ;;  %v458_v18 = vld [vmem:[#allocation2 + $0x148] sm:$0x3] }
 0x114   : > { %v2066_v39 = vadd.f32 %v2065_v16, %v1977_v10  ;;  %v620_v26 = vrot.slane %v458_v18, 1 }
 0x115   : > { %v1979_v8 = vpop.f32.mrf.mxu2  ;;  %v4019_v13 = vpack.c.b16 %v1040_v58, %v1039_v5 }
 0x116   : > { %v1980_v63 = vadd.f32 %v1979_v8, %v1891_v45  ;;  %v4015_v42 = vadd.f32 %v2154_v44, %v2066_v39  ;;  %v758_v45 = vrot.slane %v3225_v43, 2  ;;  %v3226_v44 = vld [vmem:[#allocation2 + $0x138] sm:$0xff]  ;;  %v618_v39 = vrot.slane %v3227_v56, 1 }
 0x117   : > { %v1895_v55 = vpop.f32.mrf.mxu1  ;;  %4429 = vst [vmem:[#allocation33_spill] sm:$0xff] %v4019_v13  ;;  %v617_v7 = vrot.slane %v3226_v44, 1 }
 0x118   : > { %4428 = vst [vmem:[#allocation32_spill] sm:$0xff] %v4015_v42  ;;  %2107 = vmatmul.bf16.gmra.mxu3 %v3650_v37  ;;  %v2159_v29 = vpop.f32.mrf.mxu0  ;;  %v1896_v20 = vadd.f32 %v1895_v55, %v3901_v1  ;;  %v759_v5 = vsel %vm696_vm1, %v757_v32, %v758_v45  ;;  %v621_v0 = vsel %vm551_vm0, %v618_v39, %v620_v26 }
 0x119   : > { %v833_v43 = vpack.c.bf16 %v759_v5, %v759_v5  ;;  %v619_v55 = vsel %vm551_vm0, %v617_v7, %v618_v39  ;;  %v691_v32 = vpack.c.bf16 %v621_v0, %v621_v0 }
 0x11a   : > { %1934 = vmatmul.bf16.gmra.mxu1 %v3963_v36 }
 0x11b   : > { %v2068_v10 = vpop.f32.mrf.mxu3 }
 0x11c   : > { %v2069_v15 = vadd.f32 %v2068_v10, %v1980_v63  ;;  %v761_v63 = vsel %vm696_vm1, %v758_v45, %v760_v12  ;;  %v1135_v10 = vunpack.c.l.b16 %v833_v43  ;;  %v3182_v43 = vld [vmem:[%s4371_s2 + $0x208] sm:$0xff] }
 0x11d   : > { %v1981_v8 = vpop.f32.mrf.mxu2  ;;  %2505 = vmatpush.bf16.msra.mxu0 %v3182_v43 }
 0x11e   : > { %v1982_v25 = vadd.f32 %v1981_v8, %v1893_v47  ;;  %v4022_v16 = vadd.f32 %v2157_v38, %v2069_v15  ;;  %v834_v38 = vpack.c.bf16 %v761_v63, %v761_v63  ;;  %v690_v15 = vpack.c.bf16 %v619_v55, %v619_v55 }
 0x11f   : > { %v1897_v9 = vpop.f32.mrf.mxu1  ;;  %v1042_v63 = vunpack.c.l.b16 %v691_v32 }
 0x120   : > { %4430 = vst [vmem:[#allocation34_spill] sm:$0xff] %v4022_v16  ;;  %v2162_v28 = vpop.f32.mrf.mxu0  ;;  %v1898_v1 = vadd.f32 %v1897_v9, %v3918_v2  ;;  %v1136_v2 = vunpack.c.l.b16 %v834_v38  ;;  %v1041_v12 = vunpack.c.l.b16 %v690_v15  ;;  %v762_v38 = vrot.slane %v3226_v44, 2  ;;  %v3229_v15 = vld [vmem:[#allocation2 + $0x158] sm:$0xff] }
 0x122   : > { %2023 = vmatmul.bf16.gmra.mxu2 %v3983_v11  ;;  %v4031_v45 = vpack.c.b16 %v1136_v2, %v1135_v10  ;;  %v4043_v39 = vpack.c.b16 %v1042_v63, %v1041_v12  ;;  %v3228_v10 = vld [vmem:[#allocation2 + $0x150] sm:$0xff]  ;;  %v461_v63 = vld [vmem:[#allocation2 + $0x160] sm:$0x3] }
 0x123   : > { %v2070_v47 = vpop.f32.mrf.mxu3  ;;  %2201 = vmatmul.bf16.gmra.mxu0 %v3990_v33  ;;  %v622_v2 = vrot.slane %v3228_v10, 1 }
 0x124   : > { %v2071_v58 = vadd.f32 %v2070_v47, %v1982_v25  ;;  %4431 = vst [vmem:[#allocation35_spill] sm:$0xff] %v4031_v45  ;;  %v3166_v25 = vld [vmem:[%s4371_s2 + $0x188] sm:$0xff]  ;;  %v763_v47 = vrot.slane %v3227_v56, 2  ;;  %v625_v56 = vrot.slane %v461_v63, 1 }
 0x125   : > { %v1984_v8 = vpop.f32.mrf.mxu2  ;;  %2327 = vmatpush.bf16.msra.mxu2 %v3166_v25 }
 0x126   : > { %v1985_v9 = vadd.f32 %v1984_v8, %v1896_v20  ;;  %v4033_v16 = vadd.f32 %v2159_v29, %v2071_v58  ;;  %v3174_v20 = vld [vmem:[%s4371_s2 + $0x1c8] sm:$0xff]  ;;  %v623_v8 = vrot.slane %v3229_v15, 1  ;;  %v764_v25 = vsel %vm696_vm1, %v762_v38, %v763_v47 }
 0x127   : > { %v1900_v5 = vpop.f32.mrf.mxu1  ;;  %2416 = vmatpush.bf16.msra.mxu3 %v3174_v20 }
 0x128   : > { %4432 = vst [vmem:[#allocation36_spill] sm:$0xff] %v4033_v16  ;;  %2112 = vmatmul.bf16.gmra.mxu3 %v3707_v53  ;;  %v2164_v42 = vpop.f32.mrf.mxu0  ;;  %v1901_v7 = vadd.f32 %v1900_v5, %v3945_v17  ;;  %v3158_v17 = vld [vmem:[%s4371_s2 + $0x148] sm:$0xff] }
 0x129   : > { %2238 = vmatpush.bf16.msra.mxu1 %v3158_v17 }
 0x12a   : > { %1939 = vmatmul.bf16.gmra.mxu1 %v3990_v33 }
 0x12b   : > { %v2073_v29 = vpop.f32.mrf.mxu3 }
 0x12c   : > { %v2074_v26 = vadd.f32 %v2073_v29, %v1985_v9  ;;  %v765_v9 = vrot.slane %v458_v18, 2  ;;  %v624_v29 = vsel %vm551_vm0, %v622_v2, %v623_v8  ;;  %v626_v18 = vsel %vm551_vm0, %v623_v8, %v625_v56 }
 0x12d   : > { %v1986_v55 = vpop.f32.mrf.mxu2  ;;  %v692_v43 = vpack.c.bf16 %v624_v29, %v624_v29  ;;  %v693_v38 = vpack.c.bf16 %v626_v18, %v626_v18  ;;  %v767_v56 = vrot.slane %v3228_v10, 2  ;;  %v4074_v18 = vld [vmem:[#allocation2 + $0x170] sm:$0xff] }
 0x12e   : > { %v1987_v0 = vadd.f32 %v1986_v55, %v1898_v1  ;;  %v4052_v58 = vadd.f32 %v2162_v28, %v2074_v26  ;;  %v766_v44 = vsel %vm696_vm1, %v763_v47, %v765_v9  ;;  %v835_v1 = vpack.c.bf16 %v764_v25, %v764_v25 }
 0x12f   : > { %v1902_v32 = vpop.f32.mrf.mxu1  ;;  %v836_v28 = vpack.c.bf16 %v766_v44, %v766_v44  ;;  %v1043_v9 = vunpack.c.l.b16 %v692_v43  ;;  %v1044_v44 = vunpack.c.l.b16 %v693_v38 }
 0x130   : > { %4433 = vst [vmem:[#allocation37_spill] sm:$0xff] %v4052_v58  ;;  %v2167_v12 = vpop.f32.mrf.mxu0  ;;  %v1903_v5 = vadd.f32 %v1902_v32, %v3960_v24  ;;  %v1137_v17 = vunpack.c.l.b16 %v835_v1  ;;  %v768_v1 = vrot.slane %v3229_v15, 2 }
 0x131   : > { %v1138_v24 = vunpack.c.l.b16 %v836_v28  ;;  %v4066_v2 = vpack.c.b16 %v1044_v44, %v1043_v9  ;;  %v282_v9 = vld [vmem:[%s3300_s26 + $0xf0] sm:$0xff]  ;;  %v283_v44 = vld [vmem:[%s3300_s26 + $0xf8] sm:$0xff] }
 0x132   : > { %2028 = vmatmul.bf16.gmra.mxu2 %v4013_v30  ;;  %v769_v10 = vsel %vm696_vm1, %v767_v56, %v768_v1  ;;  %v3232_v56 = vld [vmem:[%s4370_s1] ss:$0 sm:$0xff] }
 0x133   : > { %v2075_v20 = vpop.f32.mrf.mxu3  ;;  %2206 = vmatmul.bf16.gmra.mxu0 %v4019_v13  ;;  %v4061_v47 = vpack.c.b16 %v1138_v24, %v1137_v17  ;;  %v770_v24 = vrot.slane %v461_v63, 2  ;;  %v837_v38 = vpack.c.bf16 %v769_v10, %v769_v10 }
 0x134   : > { %v2076_v26 = vadd.f32 %v2075_v20, %v1987_v0 }
 0x135   : > { %v1989_v55 = vpop.f32.mrf.mxu2  ;;  %v771_v15 = vsel %vm696_vm1, %v768_v1, %v770_v24  ;;  %v316_v1 = vmul.f32 %v3232_v56, %v282_v9 }
 0x136   : > { %v1990_v32 = vadd.f32 %v1989_v55, %v1901_v7  ;;  %v4063_v58 = vadd.f32 %v2164_v42, %v2076_v26  ;;  %v4071_v42 = vld [vmem:[#allocation2 + $0x168] sm:$0xff]  ;;  %v628_v26 = vrot.slane %v4074_v18, 1  ;;  %v464_v55 = vld [vmem:[#allocation2 + $0x178] sm:$0x3] }
 0x137   : > { %v1905_v25 = vpop.f32.mrf.mxu1  ;;  %v627_v29 = vrot.slane %v4071_v42, 1 }
 0x138   : > { %4434 = vst [vmem:[#allocation38_spill] sm:$0xff] %v4063_v58  ;;  %2117 = vmatmul.bf16.gmra.mxu3 %v3524_v31  ;;  %v2169_v16 = vpop.f32.mrf.mxu0  ;;  %v3233_v58 = vld [vmem:[%s4370_s1 + $0x1] ss:$0 sm:$0xff] }
 0x139   : > { %v629_v63 = vsel %vm551_vm0, %v627_v29, %v628_v26 }
 0x13a   : > { %1944 = vmatmul.bf16.gmra.mxu1 %v4019_v13  ;;  %v694_v10 = vpack.c.bf16 %v629_v63, %v629_v63  ;;  %v350_v13 = vadd.f32 %v3233_v58, %v316_v1  ;;  %v3157_v63 = vld [vmem:[%s4371_s2 + $0x140] sm:$0xff]  ;;  %v773_v1 = vrot.slane %v4074_v18, 2 }
 0x13b   : > { %v2078_v0 = vpop.f32.mrf.mxu3  ;;  %2239 = vmatpush.bf16.msra.mxu1 %v3157_v63 }
 0x13c   : > { %v2079_v8 = vadd.f32 %v2078_v0, %v1990_v32  ;;  %v838_v32 = vpack.c.bf16 %v771_v15, %v771_v15 }
 0x13d   : > { %v1991_v28 = vpop.f32.mrf.mxu2 }
 0x13e   : > { %v1992_v7 = vadd.f32 %v1991_v28, %v1903_v5  ;;  %v4069_v20 = vadd.f32 %v2167_v12, %v2079_v8  ;;  %v630_v12 = vrot.slane %v464_v55, 1  ;;  %v1906_v5 = vadd.f32 %v1905_v25, %v3811_v19 }
 0x13f   : > { %v1907_v17 = vpop.f32.mrf.mxu1  ;;  %v317_v28 = vmul.f32 %v3232_v56, %v283_v44  ;;  %v1139_v25 = vunpack.c.l.b16 %v837_v38  ;;  %v1140_v24 = vunpack.c.l.b16 %v838_v32  ;;  %v772_v56 = vrot.slane %v4071_v42, 2 }
 0x140   : > { %4435 = vst [vmem:[#allocation39_spill] sm:$0xff] %v4069_v20  ;;  %v2172_v43 = vpop.f32.mrf.mxu0  ;;  %v631_v8 = vsel %vm551_vm0, %v628_v26, %v630_v12  ;;  %v1045_v12 = vunpack.c.l.b16 %v694_v10 }
 0x141   : > { %v695_v20 = vpack.c.bf16 %v631_v8, %v631_v8  ;;  %v351_v29 = vadd.f32 %v3233_v58, %v317_v28  ;;  %v4092_v26 = vpack.c.b16 %v1140_v24, %v1139_v25  ;;  %v3173_v58 = vld [vmem:[%s4371_s2 + $0x1c0] sm:$0xff]  ;;  %v774_v24 = vsel %vm696_vm1, %v772_v56, %v773_v1 }
 0x142   : > { %2033 = vmatmul.bf16.gmra.mxu2 %v4031_v45  ;;  %2417 = vmatpush.bf16.msra.mxu3 %v3173_v58  ;;  %v3181_v8 = vld [vmem:[%s4371_s2 + $0x200] sm:$0xff] }
 0x143   : > { %v2080_v0 = vpop.f32.mrf.mxu3  ;;  %2211 = vmatmul.bf16.gmra.mxu0 %v4043_v39  ;;  %v1046_v44 = vunpack.c.l.b16 %v695_v20  ;;  %v383_v38 = vmax.f32 %v351_v29, 0.0  ;;  %v1908_v20 = vadd.f32 %v1907_v17, %v3823_v23  ;;  %v775_v23 = vrot.slane %v464_v55, 2 }
 0x144   : > { %v2081_v19 = vadd.f32 %v2080_v0, %v1992_v7  ;;  %v382_v7 = vmax.f32 %v350_v13, 0.0  ;;  %v3165_v0 = vld [vmem:[%s4371_s2 + $0x180] sm:$0xff]  ;;  %2506 = vmatpush.bf16.msra.mxu0 %v3181_v8 }
 0x145   : > { %v1994_v15 = vpop.f32.mrf.mxu2  ;;  %2328 = vmatpush.bf16.msra.mxu2 %v3165_v0  ;;  %416 = vst [vmem:[#allocation2 + $0x189] sm:$0xff] %v383_v38  ;;  %v776_v10 = vsel %vm696_vm1, %v773_v1, %v775_v23 }
 0x146   : > { %v1995_v45 = vadd.f32 %v1994_v15, %v1906_v5  ;;  %v4094_v31 = vadd.f32 %v2169_v16, %v2081_v19  ;;  %v4103_v5 = vpack.c.b16 %v1046_v44, %v1045_v12  ;;  %415 = vst [vmem:[#allocation2 + $0x181] sm:$0xff] %v382_v7  ;;  %v839_v15 = vpack.c.bf16 %v774_v24, %v774_v24 }
 0x147   : > { %v1910_v9 = vpop.f32.mrf.mxu1  ;;  %v840_v29 = vpack.c.bf16 %v776_v10, %v776_v10 }
 0x148   : > { %2122 = vmatmul.bf16.gmra.mxu3 %v3592_v22  ;;  %v2174_v32 = vpop.f32.mrf.mxu0  ;;  %v1911_v12 = vadd.f32 %v1910_v9, %v3839_v34  ;;  %v1141_v44 = vunpack.c.l.b16 %v839_v15 }
 0x14a   : > { %1949 = vmatmul.bf16.gmra.mxu1 %v4043_v39 }
 0x14b   : > { %v2083_v13 = vpop.f32.mrf.mxu3 }
 0x14c   : > { %v2084_v16 = vadd.f32 %v2083_v13, %v1995_v45  ;;  %v4133_v56 = vld [vmem:[#allocation2 + $0x190] sm:$0x3] }
 0x14d   : > { %v1996_v28 = vpop.f32.mrf.mxu2  ;;  %v4129_v34 = vld [vmem:[#allocation2 + $0x180] sm:$0xff]  ;;  %v4131_v9 = vld [vmem:[#allocation2 + $0x188] sm:$0xff]  ;;  %v849_v10 = vrot.slane %v4133_v56, 1 }
 0x14e   : > { %v1997_v19 = vadd.f32 %v1996_v28, %v1908_v20  ;;  %v4115_v25 = vadd.f32 %v2172_v43, %v2084_v16  ;;  %v1142_v43 = vunpack.c.l.b16 %v840_v29  ;;  %v846_v23 = vrot.slane %v4129_v34, 1 }
 0x14f   : > { %v1912_v45 = vpop.f32.mrf.mxu1  ;;  %v847_v24 = vrot.slane %v4131_v9, 1 }
 0x150   : > { %v2177_v17 = vpop.f32.mrf.mxu0  ;;  %v4122_v55 = vpack.c.b16 %v1142_v43, %v1141_v44  ;;  %v1913_v63 = vadd.f32 %v1912_v45, %v3867_v6 }
 0x151   : > { %v848_v29 = vsel %vm551_vm0, %v846_v23, %v847_v24 }
 0x152   : > { %2038 = vmatmul.bf16.gmra.mxu2 %v4061_v47  ;;  %v853_v43 = vpack.c.bf16 %v848_v29, %v848_v29 }
 0x153   : > { %v2085_v42 = vpop.f32.mrf.mxu3  ;;  %2216 = vmatmul.bf16.gmra.mxu0 %v4066_v2 }
 0x154   : > { %v2086_v18 = vadd.f32 %v2085_v42, %v1997_v19 }
 0x155   : > { %v1999_v7 = vpop.f32.mrf.mxu2 }
 0x156   : > { %v2000_v38 = vadd.f32 %v1999_v7, %v1911_v12  ;;  %v4124_v58 = vadd.f32 %v2174_v32, %v2086_v18 }
 0x157   : > { %v1915_v0 = vpop.f32.mrf.mxu1 }
 0x158   : > { %2127 = vmatmul.bf16.gmra.mxu3 %v3665_v52  ;;  %v2179_v13 = vpop.f32.mrf.mxu0  ;;  %v1916_v15 = vadd.f32 %v1915_v0, %v3883_v51 }
 0x15a   : > { %1954 = vmatmul.bf16.gmra.mxu1 %v4066_v2 }
 0x15b   : > { %v2088_v16 = vpop.f32.mrf.mxu3 }
 0x15c   : > { %v2089_v20 = vadd.f32 %v2088_v16, %v2000_v38 }
 0x15d   : > { %v2001_v8 = vpop.f32.mrf.mxu2 }
 0x15e   : > { %v2002_v1 = vadd.f32 %v2001_v8, %v1913_v63  ;;  %v4135_v28 = vadd.f32 %v2177_v17, %v2089_v20  ;;  %v850_v17 = vsel %vm551_vm0, %v847_v24, %v849_v10  ;;  %v1183_v20 = vunpack.c.l.b16 %v853_v43 }
 0x15f   : > { %v1917_v32 = vpop.f32.mrf.mxu1  ;;  %v854_v7 = vpack.c.bf16 %v850_v17, %v850_v17  ;;  %v841_v8 = vpack.c.bf16 %v4129_v34, %v4129_v34 }
 0x160   : > { %v2182_v19 = vpop.f32.mrf.mxu0  ;;  %v1918_v0 = vadd.f32 %v1917_v32, %v3899_v40 }
 0x161   : > { %v1184_v63 = vunpack.c.l.b16 %v854_v7 }
 0x162   : > { %2043 = vmatmul.bf16.gmra.mxu2 %v4092_v26 }
 0x163   : > { %v2090_v6 = vpop.f32.mrf.mxu3  ;;  %2221 = vmatmul.bf16.gmra.mxu0 %v4103_v5  ;;  %v4156_v10 = vpack.c.b16 %v1184_v63, %v1183_v20 }
 0x164   : > { %v2091_v45 = vadd.f32 %v2090_v6, %v2002_v1 }
 0x165   : > { %v2004_v42 = vpop.f32.mrf.mxu2 }
 0x166   : > { %v2005_v18 = vadd.f32 %v2004_v42, %v1916_v15  ;;  %v4145_v12 = vadd.f32 %v2179_v13, %v2091_v45  ;;  %v842_v13 = vpack.c.bf16 %v4131_v9, %v4131_v9  ;;  %v1177_v15 = vunpack.c.l.b16 %v841_v8 }
 0x167   : > { %v1920_v44 = vpop.f32.mrf.mxu1 }
 0x168   : > { %2132 = vmatmul.bf16.gmra.mxu3 %v3717_v21  ;;  %v2184_v38 = vpop.f32.mrf.mxu0  ;;  %v1178_v29 = vunpack.c.l.b16 %v842_v13  ;;  %v1921_v32 = vadd.f32 %v1920_v44, %v3915_v50 }
 0x16a   : > { %1959 = vmatmul.bf16.gmra.mxu1 %v4103_v5  ;;  %v4161_v42 = vpack.c.b16 %v1178_v29, %v1177_v15 }
 0x16b   : > { %v2093_v16 = vpop.f32.mrf.mxu3 }
 0x16c   : > { %v2094_v51 = vadd.f32 %v2093_v16, %v2005_v18 }
 0x16d   : > { %v2006_v1 = vpop.f32.mrf.mxu2 }
 0x16e   : > { %v2007_v23 = vadd.f32 %v2006_v1, %v1918_v0  ;;  %v4154_v24 = vadd.f32 %v2182_v19, %v2094_v51 }
 0x16f   : > { %v1922_v6 = vpop.f32.mrf.mxu1 }
 0x170   : > { %v2187_v45 = vpop.f32.mrf.mxu0  ;;  %v1923_v51 = vadd.f32 %v1922_v6, %v3943_v54 }
 0x172   : > { %2048 = vmatmul.bf16.gmra.mxu2 %v4122_v55 }
 0x173   : > { %v2095_v17 = vpop.f32.mrf.mxu3  ;;  %2226 = vmatmul.bf16.gmra.mxu0 %v4156_v10 }
 0x174   : > { %v2096_v40 = vadd.f32 %v2095_v17, %v2007_v23 }
 0x175   : > { %v2009_v18 = vpop.f32.mrf.mxu2 }
 0x176   : > { %v2010_v43 = vadd.f32 %v2009_v18, %v1921_v32  ;;  %v4163_v19 = vadd.f32 %v2184_v38, %v2096_v40 }
 0x177   : > { %v1925_v7 = vpop.f32.mrf.mxu1 }
 0x178   : > { %2137 = vmatmul.bf16.gmra.mxu3 %v4161_v42  ;;  %v2189_v16 = vpop.f32.mrf.mxu0  ;;  %v1926_v23 = vadd.f32 %v1925_v7, %v3835_v14 }
 0x17a   : > { %2240 = vmatmul.bf16.vlgmr.msra.gmra.mxu1 %v3745_v4 }
 0x17b   : > { %v2098_v20 = vpop.f32.mrf.mxu3 }
 0x17c   : > { %v2099_v63 = vadd.f32 %v2098_v20, %v2010_v43 }
 0x17d   : > { %v2011_v0 = vpop.f32.mrf.mxu2 }
 0x17e   : > { %v2012_v8 = vadd.f32 %v2011_v0, %v1923_v51  ;;  %v4168_v13 = vadd.f32 %v2187_v45, %v2099_v63 }
 0x17f   : > { %v1927_v50 = vpop.f32.mrf.mxu1 }
 0x180   : > { %v2192_v44 = vpop.f32.mrf.mxu0 }
 0x182   : > { %2329 = vmatmul.bf16.vlgmr.msra.gmra.mxu2 %v3652_v41  ;;  %v1928_v41 = vadd.f32 %v1927_v50, %v3863_v35 }
 0x183   : > { %v2100_v38 = vpop.f32.mrf.mxu3  ;;  %2507 = vmatmul.bf16.vlgmr.msra.gmra.mxu0 %v3770_v59 }
 0x184   : > { %v2101_v1 = vadd.f32 %v2100_v38, %v2012_v8 }
 0x185   : > { %v2014_v15 = vpop.f32.mrf.mxu2 }
 0x186   : > { %v2015_v4 = vadd.f32 %v2014_v15, %v1926_v23  ;;  %v4173_v29 = vadd.f32 %v2189_v16, %v2101_v1 }
 0x187   : > { %v1930_v17 = vpop.f32.mrf.mxu1 }
 0x188   : > { %2418 = vmatmul.bf16.vlgmr.msra.gmra.mxu3 %v3749_v49  ;;  %v2194_v54 = vpop.f32.mrf.mxu0  ;;  %v1931_v49 = vadd.f32 %v1930_v17, %v3879_v3 }
 0x18a   : > { %2245 = vmatmul.bf16.gmra.mxu1 %v3770_v59 }
 0x18b   : > { %v2103_v6 = vpop.f32.mrf.mxu3 }
 0x18c   : > { %v2104_v45 = vadd.f32 %v2103_v6, %v2015_v4 }
 0x18d   : > { %v2016_v40 = vpop.f32.mrf.mxu2 }
 0x18e   : > { %v2017_v32 = vadd.f32 %v2016_v40, %v1928_v41  ;;  %v4178_v18 = vadd.f32 %v2192_v44, %v2104_v45  ;;  %v4437_v40 = vld [vmem:[#allocation24_spill] sm:$0xff] }
 0x18f   : > { %v1932_v43 = vpop.f32.mrf.mxu1 }
 0x190   : > { %v2197_v14 = vpop.f32.mrf.mxu0 }
 0x192   : > { %2334 = vmatmul.bf16.gmra.mxu2 %v3711_v62  ;;  %v1933_v62 = vadd.f32 %v1932_v43, %v3895_v48  ;;  %v4436_v48 = vld [vmem:[#allocation9_spill] sm:$0xff] }
 0x193   : > { %v2105_v7 = vpop.f32.mrf.mxu3  ;;  %2512 = vmatmul.bf16.gmra.mxu0 %v3803_v60 }
 0x194   : > { %v2106_v16 = vadd.f32 %v2105_v7, %v2017_v32 }
 0x195   : > { %v2019_v20 = vpop.f32.mrf.mxu2 }
 0x196   : > { %v2020_v59 = vadd.f32 %v2019_v20, %v1931_v49  ;;  %v4183_v63 = vadd.f32 %v2194_v54, %v2106_v16  ;;  %v4438_v16 = vld [vmem:[#allocation5_spill] sm:$0xff]  ;;  %v4439_v20 = vld [vmem:[#allocation11_spill] sm:$0xff] }
 0x197   : > { %v1935_v51 = vpop.f32.mrf.mxu1 }
 0x198   : > { %2423 = vmatmul.bf16.gmra.mxu3 %v3773_v61  ;;  %v2199_v35 = vpop.f32.mrf.mxu0  ;;  %v1936_v61 = vadd.f32 %v1935_v51, %v3911_v57  ;;  %v4440_v51 = vld [vmem:[#allocation26_spill] sm:$0xff] }
 0x19a   : > { %2250 = vmatmul.bf16.gmra.mxu1 %v3803_v60 }
 0x19b   : > { %v2108_v0 = vpop.f32.mrf.mxu3 }
 0x19c   : > { %v2109_v8 = vadd.f32 %v2108_v0, %v2020_v59 }
 0x19d   : > { %v2021_v50 = vpop.f32.mrf.mxu2 }
 0x19e   : > { %v2022_v44 = vadd.f32 %v2021_v50, %v1933_v62  ;;  %v4188_v38 = vadd.f32 %v2197_v14, %v2109_v8  ;;  %v4441_v50 = vld [vmem:[#allocation10_spill] sm:$0xff] }
 0x19f   : > { %v1937_v1 = vpop.f32.mrf.mxu1 }
 0x1a0   : > { %v2202_v3 = vpop.f32.mrf.mxu0 }
 0x1a2   : > { %2339 = vmatmul.bf16.gmra.mxu2 %v3362_v27  ;;  %v1938_v27 = vadd.f32 %v1937_v1, %v4437_v40 }
 0x1a3   : > { %v2110_v23 = vpop.f32.mrf.mxu3  ;;  %2517 = vmatmul.bf16.gmra.mxu0 %v3783_v46 }
 0x1a4   : > { %v2111_v15 = vadd.f32 %v2110_v23, %v2022_v44  ;;  %v4442_v23 = vld [vmem:[#allocation29_spill] sm:$0xff] }
 0x1a5   : > { %v2024_v4 = vpop.f32.mrf.mxu2 }
 0x1a6   : > { %v2025_v60 = vadd.f32 %v2024_v4, %v1936_v61  ;;  %v4193_v17 = vadd.f32 %v2199_v35, %v2111_v15 }
 0x1a7   : > { %v1940_v54 = vpop.f32.mrf.mxu1 }
 0x1a8   : > { %2428 = vmatmul.bf16.gmra.mxu3 %v4436_v48  ;;  %v2204_v6 = vpop.f32.mrf.mxu0  ;;  %v1941_v35 = vadd.f32 %v1940_v54, %v4440_v51 }
 0x1aa   : > { %2255 = vmatmul.bf16.gmra.mxu1 %v3783_v46 }
 0x1ab   : > { %v2113_v45 = vpop.f32.mrf.mxu3 }
 0x1ac   : > { %v2114_v41 = vadd.f32 %v2113_v45, %v2025_v60  ;;  %v4443_v45 = vld [vmem:[#allocation7_spill] sm:$0xff] }
 0x1ad   : > { %v2026_v32 = vpop.f32.mrf.mxu2 }
 0x1ae   : > { %v2027_v43 = vadd.f32 %v2026_v32, %v1938_v27  ;;  %v4198_v14 = vadd.f32 %v2202_v3, %v2114_v41  ;;  %v4444_v41 = vld [vmem:[#allocation13_spill] sm:$0xff]  ;;  %v4445_v27 = vld [vmem:[#allocation15_spill] sm:$0xff] }
 0x1af   : > { %v1942_v7 = vpop.f32.mrf.mxu1 }
 0x1b0   : > { %v2207_v57 = vpop.f32.mrf.mxu0  ;;  %v1943_v15 = vadd.f32 %v1942_v7, %v4442_v23  ;;  %v4446_v7 = vld [vmem:[#allocation12_spill] sm:$0xff] }
 0x1b1   : > { %v4448_v23 = vld [vmem:[#allocation8_spill] sm:$0xff] }
 0x1b2   : > { %2344 = vmatmul.bf16.gmra.mxu2 %v4438_v16 }
 0x1b3   : > { %v2115_v49 = vpop.f32.mrf.mxu3  ;;  %2522 = vmatmul.bf16.gmra.mxu0 %v4439_v20 }
 0x1b4   : > { %v2116_v59 = vadd.f32 %v2115_v49, %v2027_v43 }
 0x1b5   : > { %v2029_v0 = vpop.f32.mrf.mxu2 }
 0x1b6   : > { %v2030_v46 = vadd.f32 %v2029_v0, %v1941_v35  ;;  %v4203_v8 = vadd.f32 %v2204_v6, %v2116_v59  ;;  %v4447_v35 = vld [vmem:[#allocation16_spill] sm:$0xff] }
 0x1b7   : > { %v1945_v62 = vpop.f32.mrf.mxu1 }
 0x1b8   : > { %2433 = vmatmul.bf16.gmra.mxu3 %v4441_v50  ;;  %v2209_v44 = vpop.f32.mrf.mxu0  ;;  %v1946_v32 = vadd.f32 %v1945_v62, %v4445_v27 }
 0x1ba   : > { %2260 = vmatmul.bf16.gmra.mxu1 %v4439_v20 }
 0x1bb   : > { %v2118_v1 = vpop.f32.mrf.mxu3 }
 0x1bc   : > { %v2119_v3 = vadd.f32 %v2118_v1, %v2030_v46 }
 0x1bd   : > { %v2031_v61 = vpop.f32.mrf.mxu2 }
 0x1be   : > { %v2032_v4 = vadd.f32 %v2031_v61, %v1943_v15  ;;  %v4208_v60 = vadd.f32 %v2207_v57, %v2119_v3  ;;  %v4449_v15 = vld [vmem:[#allocation17_spill] sm:$0xff] }
 0x1bf   : > { %v1947_v48 = vpop.f32.mrf.mxu1 }
 0x1c0   : > { %v2212_v54 = vpop.f32.mrf.mxu0  ;;  %v1948_v0 = vadd.f32 %v1947_v48, %v4447_v35  ;;  %v4451_v48 = vld [vmem:[#allocation14_spill] sm:$0xff] }
 0x1c2   : > { %2349 = vmatmul.bf16.gmra.mxu2 %v4443_v45 }
 0x1c3   : > { %v2120_v6 = vpop.f32.mrf.mxu3  ;;  %2527 = vmatmul.bf16.gmra.mxu0 %v4444_v41 }
 0x1c4   : > { %v2121_v40 = vadd.f32 %v2120_v6, %v2032_v4  ;;  %v4450_v4 = vld [vmem:[#allocation19_spill] sm:$0xff] }
 0x1c5   : > { %v2034_v43 = vpop.f32.mrf.mxu2 }
 0x1c6   : > { %v2035_v16 = vadd.f32 %v2034_v43, %v1946_v32  ;;  %v4213_v49 = vadd.f32 %v2209_v44, %v2121_v40 }
 0x1c7   : > { %v1950_v20 = vpop.f32.mrf.mxu1 }
 0x1c8   : > { %2438 = vmatmul.bf16.gmra.mxu3 %v4446_v7  ;;  %v2214_v59 = vpop.f32.mrf.mxu0  ;;  %v1951_v45 = vadd.f32 %v1950_v20, %v4450_v4 }
 0x1ca   : > { %2265 = vmatmul.bf16.gmra.mxu1 %v4444_v41 }
 0x1cb   : > { %v2123_v57 = vpop.f32.mrf.mxu3 }
 0x1cc   : > { %v2124_v51 = vadd.f32 %v2123_v57, %v2035_v16  ;;  %v4452_v16 = vld [vmem:[#allocation20_spill] sm:$0xff] }
 0x1cd   : > { %v2036_v46 = vpop.f32.mrf.mxu2 }
 0x1ce   : > { %v2037_v50 = vadd.f32 %v2036_v46, %v1948_v0  ;;  %v4218_v1 = vadd.f32 %v2212_v54, %v2124_v51  ;;  %v4453_v46 = vld [vmem:[#allocation3_spill] sm:$0xff] }
 0x1cf   : > { %v1952_v3 = vpop.f32.mrf.mxu1 }
 0x1d0   : > { %v2217_v62 = vpop.f32.mrf.mxu0  ;;  %v1953_v7 = vadd.f32 %v1952_v3, %v4452_v16  ;;  %v4456_v3 = vld [vmem:[#allocation18_spill] sm:$0xff] }
 0x1d2   : > { %2354 = vmatmul.bf16.gmra.mxu2 %v4448_v23 }
 0x1d3   : > { %v2125_v44 = vpop.f32.mrf.mxu3  ;;  %2532 = vmatmul.bf16.gmra.mxu0 %v4449_v15 }
 0x1d4   : > { %v2126_v61 = vadd.f32 %v2125_v44, %v2037_v50  ;;  %v4454_v50 = vld [vmem:[#allocation21_spill] sm:$0xff]  ;;  %v4455_v44 = vld [vmem:[#allocation23_spill] sm:$0xff] }
 0x1d5   : > { %v2039_v6 = vpop.f32.mrf.mxu2 }
 0x1d6   : > { %v2040_v41 = vadd.f32 %v2039_v6, %v1951_v45  ;;  %v4223_v40 = vadd.f32 %v2214_v59, %v2126_v61 }
 0x1d7   : > { %v1955_v27 = vpop.f32.mrf.mxu1 }
 0x1d8   : > { %2443 = vmatmul.bf16.gmra.mxu3 %v4451_v48  ;;  %v2219_v32 = vpop.f32.mrf.mxu0  ;;  %v1956_v61 = vadd.f32 %v1955_v27, %v4455_v44  ;;  %v4461_v44 = vld [vmem:[#allocation28_spill] sm:$0xff] }
 0x1da   : > { %2270 = vmatmul.bf16.gmra.mxu1 %v4449_v15 }
 0x1db   : > { %v2128_v54 = vpop.f32.mrf.mxu3 }
 0x1dc   : > { %v2129_v43 = vadd.f32 %v2128_v54, %v2040_v41  ;;  %v4457_v54 = vld [vmem:[#allocation25_spill] sm:$0xff] }
 0x1dd   : > { %v2041_v57 = vpop.f32.mrf.mxu2 }
 0x1de   : > { %v2042_v51 = vadd.f32 %v2041_v57, %v1953_v7  ;;  %v4228_v35 = vadd.f32 %v2217_v62, %v2129_v43 }
 0x1df   : > { %v1957_v0 = vpop.f32.mrf.mxu1 }
 0x1e0   : > { %v2222_v20 = vpop.f32.mrf.mxu0  ;;  %v1958_v43 = vadd.f32 %v1957_v0, %v4457_v54  ;;  %v4462_v0 = vld [vmem:[#allocation22_spill] sm:$0xff] }
 0x1e1   : > { %v4463_v54 = vld [vmem:[#allocation30_spill] sm:$0xff] }
 0x1e2   : > { %2359 = vmatmul.bf16.gmra.mxu2 %v4453_v46  ;;  %v4459_v46 = vld [vmem:[#allocation6_spill] sm:$0xff] }
 0x1e3   : > { %v2130_v59 = vpop.f32.mrf.mxu3  ;;  %2537 = vmatmul.bf16.gmra.mxu0 %v4454_v50 }
 0x1e4   : > { %v2131_v23 = vadd.f32 %v2130_v59, %v2042_v51  ;;  %v4460_v59 = vld [vmem:[#allocation27_spill] sm:$0xff] }
 0x1e5   : > { %v2044_v4 = vpop.f32.mrf.mxu2 }
 0x1e6   : > { %v2045_v15 = vadd.f32 %v2044_v4, %v1956_v61  ;;  %v4233_v45 = vadd.f32 %v2219_v32, %v2131_v23 }
 0x1e7   : > { %v1960_v6 = vpop.f32.mrf.mxu1 }
 0x1e8   : > { %2448 = vmatmul.bf16.gmra.mxu3 %v4456_v3  ;;  %v2224_v41 = vpop.f32.mrf.mxu0  ;;  %v1961_v61 = vadd.f32 %v1960_v6, %v4461_v44  ;;  %v4464_v44 = vld [vmem:[#allocation31_spill] sm:$0xff] }
 0x1ea   : > { %2275 = vmatmul.bf16.gmra.mxu1 %v4454_v50 }
 0x1eb   : > { %v2133_v62 = vpop.f32.mrf.mxu3 }
 0x1ec   : > { %v2134_v48 = vadd.f32 %v2133_v62, %v2045_v15 }
 0x1ed   : > { %v2046_v16 = vpop.f32.mrf.mxu2 }
 0x1ee   : > { %v2047_v7 = vadd.f32 %v2046_v16, %v1958_v43  ;;  %v4238_v57 = vadd.f32 %v2222_v20, %v2134_v48 }
 0x1ef   : > { %v1962_v51 = vpop.f32.mrf.mxu1 }
 0x1f0   : > { %4458 = vst [vmem:[#allocation9_spill] sm:$0xff] %v4238_v57  ;;  %v2227_v27 = vpop.f32.mrf.mxu0  ;;  %v1963_v43 = vadd.f32 %v1962_v51, %v4463_v54 }
 0x1f2   : > { %2364 = vmatmul.bf16.gmra.mxu2 %v4459_v46 }
 0x1f3   : > { %v2135_v32 = vpop.f32.mrf.mxu3  ;;  %2542 = vmatmul.bf16.gmra.mxu0 %v4460_v59 }
 0x1f4   : > { %v2136_v23 = vadd.f32 %v2135_v32, %v2047_v7 }
 0x1f5   : > { %v2049_v4 = vpop.f32.mrf.mxu2 }
 0x1f6   : > { %v2050_v50 = vadd.f32 %v2049_v4, %v1961_v61  ;;  %v4243_v3 = vadd.f32 %v2224_v41, %v2136_v23 }
 0x1f7   : > { %v2241_v15 = vpop.f32.mrf.mxu1 }
 0x1f8   : > { %2453 = vmatmul.bf16.gmra.mxu3 %v4462_v0  ;;  %v2229_v62 = vpop.f32.mrf.mxu0 }
 0x1fa   : > { %2280 = vmatmul.bf16.gmra.mxu1 %v4460_v59  ;;  %v2242_v59 = vadd.f32 %v2241_v15, %v4464_v44 }
 0x1fb   : > { %v2138_v20 = vpop.f32.mrf.mxu3 }
 0x1fc   : > { %v2139_v48 = vadd.f32 %v2138_v20, %v2050_v50 }
 0x1fd   : > { %v2051_v16 = vpop.f32.mrf.mxu2 }
 0x1fe   : > { %v2052_v46 = vadd.f32 %v2051_v16, %v1963_v43  ;;  %v4248_v57 = vadd.f32 %v2227_v27, %v2139_v48 }
 0x1ff   : > { %v2243_v7 = vpop.f32.mrf.mxu1 }
 0x200   : > { %v2508_v6 = vpop.f32.mrf.mxu0 }
 0x202   : > { %2369 = vmatmul.bf16.gmra.mxu2 %v3650_v37 }
 0x203   : > { %v2140_v41 = vpop.f32.mrf.mxu3  ;;  %2547 = vmatmul.bf16.gmra.mxu0 %v3983_v11 }
 0x204   : > { %v2141_v32 = vadd.f32 %v2140_v41, %v2052_v46  ;;  %v4466_v41 = vld [vmem:[#allocation34_spill] sm:$0xff] }
 0x205   : > { %v2330_v23 = vpop.f32.mrf.mxu2 }
 0x206   : > { %v4253_v61 = vadd.f32 %v2229_v62, %v2141_v32  ;;  %v2331_v51 = vadd.f32 %v2330_v23, %v2242_v59  ;;  %v4465_v62 = vld [vmem:[#allocation32_spill] sm:$0xff] }
 0x207   : > { %v2246_v4 = vpop.f32.mrf.mxu1  ;;  %v2244_v20 = vadd.f32 %v2243_v7, %v4465_v62 }
 0x208   : > { %2458 = vmatmul.bf16.gmra.mxu3 %v3963_v36  ;;  %v2510_v27 = vpop.f32.mrf.mxu0  ;;  %v2247_v32 = vadd.f32 %v2246_v4, %v4466_v41  ;;  %v4469_v41 = vld [vmem:[#allocation35_spill] sm:$0xff] }
 0x20a   : > { %2285 = vmatmul.bf16.gmra.mxu1 %v3983_v11 }
 0x20b   : > { %v2419_v50 = vpop.f32.mrf.mxu3 }
 0x20c   : > { %v2420_v0 = vadd.f32 %v2419_v50, %v2331_v51 }
 0x20d   : > { %v2332_v37 = vpop.f32.mrf.mxu2 }
 0x20e   : > { %v2509_v15 = vadd.f32 %v2508_v6, %v2420_v0  ;;  %v2333_v36 = vadd.f32 %v2332_v37, %v2244_v20 }
 0x20f   : > { %v2248_v48 = vpop.f32.mrf.mxu1 }
 0x210   : > { %2588 = vst [vmem:[%s4262_s18] sm:$0xff] %v2509_v15  ;;  %v2513_v54 = vpop.f32.mrf.mxu0  ;;  %v2657_v23 = vmul.f32 %v2509_v15, %v2509_v15 }
 0x212   : > { %2374 = vmatmul.bf16.gmra.mxu2 %v3707_v53 }
 0x213   : > { %v2421_v11 = vpop.f32.mrf.mxu3  ;;  %2552 = vmatmul.bf16.gmra.mxu0 %v4013_v30 }
 0x214   : > { %v2422_v43 = vadd.f32 %v2421_v11, %v2333_v36 }
 0x215   : > { %v2335_v16 = vpop.f32.mrf.mxu2 }
 0x216   : > { %v2511_v46 = vadd.f32 %v2510_v27, %v2422_v43  ;;  %v2336_v59 = vadd.f32 %v2335_v16, %v2247_v32  ;;  %v4467_v27 = vld [vmem:[#allocation36_spill] sm:$0xff] }
 0x217   : > { %v2251_v44 = vpop.f32.mrf.mxu1  ;;  %v2249_v20 = vadd.f32 %v2248_v48, %v4467_v27 }
 0x218   : > { %2589 = vst [vmem:[%s4262_s18 + $0x8] sm:$0xff] %v2511_v46  ;;  %v2620_v6 = vadd.f32 %v2511_v46, %v2509_v15  ;;  %v2658_v7 = vmul.f32 %v2511_v46, %v2511_v46  ;;  %2463 = vmatmul.bf16.gmra.mxu3 %v3990_v33  ;;  %v2515_v51 = vpop.f32.mrf.mxu0  ;;  %v4468_v33 = vld [vmem:[#allocation4_spill] sm:$0xff] }
 0x21a   : > { %v2689_v50 = vadd.f32 %v2658_v7, %v2657_v23  ;;  %2290 = vmatmul.bf16.gmra.mxu1 %v4013_v30  ;;  %v4470_v7 = vld [vmem:[#allocation37_spill] sm:$0xff] }
 0x21b   : > { %v2424_v53 = vpop.f32.mrf.mxu3 }
 0x21c   : > { %v2425_v0 = vadd.f32 %v2424_v53, %v2336_v59 }
 0x21d   : > { %v2337_v37 = vpop.f32.mrf.mxu2 }
 0x21e   : > { %v2514_v62 = vadd.f32 %v2513_v54, %v2425_v0  ;;  %v2338_v15 = vadd.f32 %v2337_v37, %v2249_v20  ;;  %v2252_v54 = vadd.f32 %v2251_v44, %v4470_v7 }
 0x21f   : > { %v2253_v4 = vpop.f32.mrf.mxu1 }
 0x220   : > { %2590 = vst [vmem:[%s4262_s18 + $0x10] sm:$0xff] %v2514_v62  ;;  %v2621_v36 = vadd.f32 %v2620_v6, %v2514_v62  ;;  %v2659_v11 = vmul.f32 %v2514_v62, %v2514_v62  ;;  %v2518_v43 = vpop.f32.mrf.mxu0  ;;  %v4471_v6 = vld [vmem:[#allocation33_spill] sm:$0xff] }
 0x222   : > { %v2690_v46 = vadd.f32 %v2689_v50, %v2659_v11  ;;  %2379 = vmatmul.bf16.gmra.mxu2 %v4468_v33 }
 0x223   : > { %v2426_v16 = vpop.f32.mrf.mxu3  ;;  %2557 = vmatmul.bf16.gmra.mxu0 %v4469_v41 }
 0x224   : > { %v2427_v30 = vadd.f32 %v2426_v16, %v2338_v15  ;;  %v4472_v15 = vld [vmem:[#allocation38_spill] sm:$0xff] }
 0x225   : > { %v2340_v32 = vpop.f32.mrf.mxu2 }
 0x226   : > { %v2516_v23 = vadd.f32 %v2515_v51, %v2427_v30  ;;  %v2341_v0 = vadd.f32 %v2340_v32, %v2252_v54  ;;  %v2254_v51 = vadd.f32 %v2253_v4, %v4472_v15  ;;  %v4473_v54 = vld [vmem:[#allocation39_spill] sm:$0xff] }
 0x227   : > { %v2256_v48 = vpop.f32.mrf.mxu1 }
 0x228   : > { %2591 = vst [vmem:[%s4262_s18 + $0x18] sm:$0xff] %v2516_v23  ;;  %v2622_v59 = vadd.f32 %v2621_v36, %v2516_v23  ;;  %v2660_v53 = vmul.f32 %v2516_v23, %v2516_v23  ;;  %2468 = vmatmul.bf16.gmra.mxu3 %v4471_v6  ;;  %v2520_v37 = vpop.f32.mrf.mxu0 }
 0x22a   : > { %v2691_v50 = vadd.f32 %v2690_v46, %v2660_v53  ;;  %2295 = vmatmul.bf16.gmra.mxu1 %v4469_v41 }
 0x22b   : > { %v2429_v62 = vpop.f32.mrf.mxu3 }
 0x22c   : > { %v2430_v27 = vadd.f32 %v2429_v62, %v2341_v0 }
 0x22d   : > { %v2342_v20 = vpop.f32.mrf.mxu2 }
 0x22e   : > { %v2519_v11 = vadd.f32 %v2518_v43, %v2430_v27  ;;  %v2343_v36 = vadd.f32 %v2342_v20, %v2254_v51  ;;  %v2257_v43 = vadd.f32 %v2256_v48, %v4473_v54  ;;  %v855_v48 = vrot.slane %v4129_v34, 2 }
 0x22f   : > { %v2258_v44 = vpop.f32.mrf.mxu1 }
 0x230   : > { %2592 = vst [vmem:[%s4262_s18 + $0x20] sm:$0xff] %v2519_v11  ;;  %v2623_v33 = vadd.f32 %v2622_v59, %v2519_v11  ;;  %v2661_v16 = vmul.f32 %v2519_v11, %v2519_v11  ;;  %v2523_v30 = vpop.f32.mrf.mxu0  ;;  %v856_v11 = vrot.slane %v4131_v9, 2 }
 0x232   : > { %v2692_v23 = vadd.f32 %v2691_v50, %v2661_v16  ;;  %2384 = vmatmul.bf16.gmra.mxu2 %v3592_v22 }
 0x233   : > { %v2431_v32 = vpop.f32.mrf.mxu3  ;;  %2562 = vmatmul.bf16.gmra.mxu0 %v4061_v47 }
 0x234   : > { %v2432_v46 = vadd.f32 %v2431_v32, %v2343_v36  ;;  %v858_v36 = vrot.slane %v4133_v56, 2 }
 0x235   : > { %v2345_v41 = vpop.f32.mrf.mxu2 }
 0x236   : > { %v2521_v7 = vadd.f32 %v2520_v37, %v2432_v46  ;;  %v2346_v59 = vadd.f32 %v2345_v41, %v2257_v43  ;;  %v2259_v37 = vadd.f32 %v2258_v44, %v4094_v31  ;;  %v857_v31 = vsel %vm696_vm1, %v855_v48, %v856_v11 }
 0x237   : > { %v2261_v53 = vpop.f32.mrf.mxu1  ;;  %v859_v34 = vsel %vm696_vm1, %v856_v11, %v858_v36  ;;  %v862_v44 = vpack.c.bf16 %v857_v31, %v857_v31 }
 0x238   : > { %2593 = vst [vmem:[%s4262_s18 + $0x28] sm:$0xff] %v2521_v7  ;;  %v2624_v4 = vadd.f32 %v2623_v33, %v2521_v7  ;;  %v2662_v6 = vmul.f32 %v2521_v7, %v2521_v7  ;;  %2473 = vmatmul.bf16.gmra.mxu3 %v4043_v39  ;;  %v2525_v0 = vpop.f32.mrf.mxu0  ;;  %v2262_v41 = vadd.f32 %v2261_v53, %v4115_v25 }
 0x239   : > { %v1189_v7 = vunpack.c.l.b16 %v862_v44 }
 0x23a   : > { %v2693_v50 = vadd.f32 %v2692_v23, %v2662_v6  ;;  %2300 = vmatmul.bf16.gmra.mxu1 %v4061_v47 }
 0x23b   : > { %v2434_v22 = vpop.f32.mrf.mxu3 }
 0x23c   : > { %v2435_v62 = vadd.f32 %v2434_v22, %v2346_v59 }
 0x23d   : > { %v2347_v27 = vpop.f32.mrf.mxu2 }
 0x23e   : > { %v2524_v20 = vadd.f32 %v2523_v30, %v2435_v62  ;;  %v2348_v39 = vadd.f32 %v2347_v27, %v2259_v37  ;;  %v863_v30 = vpack.c.bf16 %v859_v34, %v859_v34 }
 0x23f   : > { %v2263_v15 = vpop.f32.mrf.mxu1 }
 0x240   : > { %2594 = vst [vmem:[%s4262_s18 + $0x30] sm:$0xff] %v2524_v20  ;;  %v2625_v51 = vadd.f32 %v2624_v4, %v2524_v20  ;;  %v2663_v33 = vmul.f32 %v2524_v20, %v2524_v20  ;;  %v2528_v16 = vpop.f32.mrf.mxu0  ;;  %v1190_v56 = vunpack.c.l.b16 %v863_v30  ;;  %v2264_v53 = vadd.f32 %v2263_v15, %v4124_v58 }
 0x242   : > { %v2694_v47 = vadd.f32 %v2693_v50, %v2663_v33  ;;  %2389 = vmatmul.bf16.gmra.mxu2 %v3665_v52  ;;  %v4300_v59 = vpack.c.b16 %v1190_v56, %v1189_v7  ;;  %v470_v56 = vld [vmem:[#allocation2 + $0x1a8] sm:$0x3] }
 0x243   : > { %v2436_v23 = vpop.f32.mrf.mxu3  ;;  %2567 = vmatmul.bf16.gmra.mxu0 %v4092_v26 }
 0x244   : > { %v2437_v9 = vadd.f32 %v2436_v23, %v2348_v39 }
 0x245   : > { %v2350_v32 = vpop.f32.mrf.mxu2 }
 0x246   : > { %v2526_v46 = vadd.f32 %v2525_v0, %v2437_v9  ;;  %v2351_v4 = vadd.f32 %v2350_v32, %v2262_v41  ;;  %v468_v32 = vld [vmem:[#allocation2 + $0x198] sm:$0xff]  ;;  %v3234_v41 = vld [vmem:[#allocation2 + $0x8] sm:$0xff] }
 0x247   : > { %v2266_v54 = vpop.f32.mrf.mxu1  ;;  %v879_v7 = vrot.slane %v3234_v41, 2 }
 0x248   : > { %2595 = vst [vmem:[%s4262_s18 + $0x38] sm:$0xff] %v2526_v46  ;;  %v2626_v52 = vadd.f32 %v2625_v51, %v2526_v46  ;;  %v2664_v43 = vmul.f32 %v2526_v46, %v2526_v46  ;;  %2478 = vmatmul.bf16.gmra.mxu3 %v4066_v2  ;;  %v2530_v6 = vpop.f32.mrf.mxu0  ;;  %v878_v46 = vrot.slane %v468_v32, 2 }
 0x24a   : > { %v2695_v50 = vadd.f32 %v2694_v47, %v2664_v43  ;;  %2305 = vmatmul.bf16.gmra.mxu1 %v4092_v26 }
 0x24b   : > { %v2439_v22 = vpop.f32.mrf.mxu3 }
 0x24c   : > { %v2440_v0 = vadd.f32 %v2439_v22, %v2351_v4  ;;  %v881_v4 = vrot.slane %v470_v56, 2 }
 0x24d   : > { %v2352_v62 = vpop.f32.mrf.mxu2 }
 0x24e   : > { %v2529_v25 = vadd.f32 %v2528_v16, %v2440_v0  ;;  %v2353_v48 = vadd.f32 %v2352_v62, %v2264_v53  ;;  %v2267_v16 = vadd.f32 %v2266_v54, %v4135_v28  ;;  %v880_v0 = vsel %vm696_vm1, %v878_v46, %v879_v7 }
 0x24f   : > { %v2268_v27 = vpop.f32.mrf.mxu1  ;;  %v882_v62 = vsel %vm696_vm1, %v879_v7, %v881_v4  ;;  %v872_v53 = vrot.slane %v470_v56, 1 }
 0x250   : > { %2596 = vst [vmem:[%s4262_s18 + $0x40] sm:$0xff] %v2529_v25  ;;  %v2627_v20 = vadd.f32 %v2626_v52, %v2529_v25  ;;  %v2665_v37 = vmul.f32 %v2529_v25, %v2529_v25  ;;  %v2533_v2 = vpop.f32.mrf.mxu0  ;;  %v2269_v30 = vadd.f32 %v2268_v27, %v4145_v12  ;;  %v869_v12 = vrot.slane %v468_v32, 1 }
 0x252   : > { %v2696_v11 = vadd.f32 %v2695_v50, %v2665_v37  ;;  %2394 = vmatmul.bf16.gmra.mxu2 %v3717_v21  ;;  %v870_v50 = vrot.slane %v3234_v41, 1  ;;  %v864_v37 = vpack.c.bf16 %v468_v32, %v468_v32 }
 0x253   : > { %v2441_v51 = vpop.f32.mrf.mxu3  ;;  %2572 = vmatmul.bf16.gmra.mxu0 %v4122_v55 }
 0x254   : > { %v2442_v26 = vadd.f32 %v2441_v51, %v2353_v48  ;;  %v865_v48 = vpack.c.bf16 %v3234_v41, %v3234_v41  ;;  %v886_v51 = vpack.c.bf16 %v882_v62, %v882_v62 }
 0x255   : > { %v2355_v33 = vpop.f32.mrf.mxu2 }
 0x256   : > { %v2531_v39 = vadd.f32 %v2530_v6, %v2442_v26  ;;  %v2356_v47 = vadd.f32 %v2355_v33, %v2267_v16 }
 0x257   : > { %v2271_v36 = vpop.f32.mrf.mxu1 }
 0x258   : > { %2597 = vst [vmem:[%s4262_s18 + $0x48] sm:$0xff] %v2531_v39  ;;  %v2628_v58 = vadd.f32 %v2627_v20, %v2531_v39  ;;  %v2666_v15 = vmul.f32 %v2531_v39, %v2531_v39  ;;  %2483 = vmatmul.bf16.gmra.mxu3 %v4103_v5  ;;  %v2535_v23 = vpop.f32.mrf.mxu0  ;;  %v2272_v20 = vadd.f32 %v2271_v36, %v4154_v24  ;;  %v1195_v24 = vunpack.c.l.b16 %v864_v37 }
 0x259   : > { %v1196_v36 = vunpack.c.l.b16 %v865_v48 }
 0x25a   : > { %v2697_v31 = vadd.f32 %v2696_v11, %v2666_v15  ;;  %2310 = vmatmul.bf16.gmra.mxu1 %v4122_v55  ;;  %v885_v11 = vpack.c.bf16 %v880_v0, %v880_v0 }
 0x25b   : > { %v2444_v21 = vpop.f32.mrf.mxu3  ;;  %v1197_v32 = vpack.c.b16 %v1196_v36, %v1195_v24 }
 0x25c   : > { %v2445_v34 = vadd.f32 %v2444_v21, %v2356_v47  ;;  %v1208_v21 = vunpack.c.l.b16 %v886_v51 }
 0x25d   : > { %v2357_v9 = vpop.f32.mrf.mxu2 }
 0x25e   : > { %v2534_v44 = vadd.f32 %v2533_v2, %v2445_v34  ;;  %v2358_v52 = vadd.f32 %v2357_v9, %v2269_v30 }
 0x25f   : > { %v2273_v28 = vpop.f32.mrf.mxu1 }
 0x260   : > { %2598 = vst [vmem:[%s4262_s18 + $0x50] sm:$0xff] %v2534_v44  ;;  %v2629_v5 = vadd.f32 %v2628_v58, %v2534_v44  ;;  %v2667_v54 = vmul.f32 %v2534_v44, %v2534_v44  ;;  %v2538_v43 = vpop.f32.mrf.mxu0  ;;  %v873_v58 = vsel %vm551_vm0, %v870_v50, %v872_v53 }
 0x261   : > { %v877_v9 = vpack.c.bf16 %v873_v58, %v873_v58 }
 0x262   : > { %v2698_v6 = vadd.f32 %v2697_v31, %v2667_v54  ;;  %2399 = vmatmul.bf16.gmra.mxu2 %v4161_v42  ;;  %v871_v42 = vsel %vm551_vm0, %v869_v12, %v870_v50  ;;  %v1207_v31 = vunpack.c.l.b16 %v885_v11 }
 0x263   : > { %v2446_v55 = vpop.f32.mrf.mxu3  ;;  %2577 = vmatmul.bf16.gmra.mxu0 %v4300_v59 }
 0x264   : > { %v2447_v22 = vadd.f32 %v2446_v55, %v2358_v52  ;;  %v1209_v41 = vpack.c.b16 %v1208_v21, %v1207_v31  ;;  %v1202_v52 = vunpack.c.l.b16 %v877_v9 }
 0x265   : > { %v2360_v25 = vpop.f32.mrf.mxu2 }
 0x266   : > { %v2536_v27 = vadd.f32 %v2535_v23, %v2447_v22  ;;  %v2361_v39 = vadd.f32 %v2360_v25, %v2272_v20  ;;  %v876_v23 = vpack.c.bf16 %v871_v42, %v871_v42 }
 0x267   : > { %v2276_v2 = vpop.f32.mrf.mxu1 }
 0x268   : > { %2599 = vst [vmem:[%s4262_s18 + $0x58] sm:$0xff] %v2536_v27  ;;  %v2630_v26 = vadd.f32 %v2629_v5, %v2536_v27  ;;  %v2668_v33 = vmul.f32 %v2536_v27, %v2536_v27  ;;  %2488 = vmatmul.bf16.gmra.mxu3 %v4156_v10  ;;  %v2540_v16 = vpop.f32.mrf.mxu0  ;;  %v2274_v10 = vadd.f32 %v2273_v28, %v4163_v19  ;;  %v1201_v46 = vunpack.c.l.b16 %v876_v23 }
 0x269   : > { %v2277_v19 = vadd.f32 %v2276_v2, %v4168_v13 }
 0x26a   : > { %v2699_v15 = vadd.f32 %v2698_v6, %v2668_v33  ;;  %2315 = vmatmul.bf16.gmra.mxu1 %v4300_v59  ;;  %v1203_v12 = vpack.c.b16 %v1202_v52, %v1201_v46 }
 0x26b   : > { %v2449_v47 = vpop.f32.mrf.mxu3 }
 0x26c   : > { %v2450_v34 = vadd.f32 %v2449_v47, %v2361_v39 }
 0x26d   : > { %v2362_v44 = vpop.f32.mrf.mxu2 }
 0x26e   : > { %v2539_v30 = vadd.f32 %v2538_v43, %v2450_v34  ;;  %v2363_v5 = vadd.f32 %v2362_v44, %v2274_v10 }
 0x26f   : > { %v2278_v7 = vpop.f32.mrf.mxu1 }
 0x270   : > { %2600 = vst [vmem:[%s4262_s18 + $0x60] sm:$0xff] %v2539_v30  ;;  %v2631_v59 = vadd.f32 %v2630_v26, %v2539_v30  ;;  %v2669_v56 = vmul.f32 %v2539_v30, %v2539_v30  ;;  %v2543_v54 = vpop.f32.mrf.mxu0  ;;  %v2279_v42 = vadd.f32 %v2278_v7, %v4173_v29 }
 0x272   : > { %v2700_v4 = vadd.f32 %v2699_v15, %v2669_v56  ;;  %2404 = vmatmul.bf16.gmra.mxu2 %v1197_v32 }
 0x273   : > { %v2451_v6 = vpop.f32.mrf.mxu3  ;;  %2582 = vmatmul.bf16.gmra.mxu0 %v1209_v41 }
 0x274   : > { %v2452_v55 = vadd.f32 %v2451_v6, %v2363_v5 }
 0x275   : > { %v2365_v43 = vpop.f32.mrf.mxu2 }
 0x276   : > { %v2541_v50 = vadd.f32 %v2540_v16, %v2452_v55  ;;  %v2366_v62 = vadd.f32 %v2365_v43, %v2277_v19 }
 0x277   : > { %v2281_v28 = vpop.f32.mrf.mxu1 }
 0x278   : > { %2601 = vst [vmem:[%s4262_s18 + $0x68] sm:$0xff] %v2541_v50  ;;  %v2632_v22 = vadd.f32 %v2631_v59, %v2541_v50  ;;  %v2670_v0 = vmul.f32 %v2541_v50, %v2541_v50  ;;  %2493 = vmatmul.bf16.gmra.mxu3 %v1203_v12  ;;  %v2545_v25 = vpop.f32.mrf.mxu0  ;;  %v2282_v24 = vadd.f32 %v2281_v28, %v4178_v18 }
 0x27a   : > { %v2701_v53 = vadd.f32 %v2700_v4, %v2670_v0 }
 0x27b   : > { %v2454_v27 = vpop.f32.mrf.mxu3 }
 0x27c   : > { %v2455_v20 = vadd.f32 %v2454_v27, %v2366_v62 }
 0x27d   : > { %v2367_v37 = vpop.f32.mrf.mxu2 }
 0x27e   : > { %v2544_v48 = vadd.f32 %v2543_v54, %v2455_v20  ;;  %v2368_v13 = vadd.f32 %v2367_v37, %v2279_v42 }
 0x27f   : > { %v2283_v11 = vpop.f32.mrf.mxu1 }
 0x280   : > { %2602 = vst [vmem:[%s4262_s18 + $0x70] sm:$0xff] %v2544_v48  ;;  %v2633_v51 = vadd.f32 %v2632_v22, %v2544_v48  ;;  %v2671_v26 = vmul.f32 %v2544_v48, %v2544_v48  ;;  %v2548_v2 = vpop.f32.mrf.mxu0  ;;  %v2284_v10 = vadd.f32 %v2283_v11, %v4183_v63 }
 0x282   : > { %v2702_v33 = vadd.f32 %v2701_v53, %v2671_v26 }
 0x283   : > { %v2456_v39 = vpop.f32.mrf.mxu3 }
 0x284   : > { %v2457_v16 = vadd.f32 %v2456_v39, %v2368_v13 }
 0x285   : > { %v2370_v58 = vpop.f32.mrf.mxu2 }
 0x286   : > { %v2546_v15 = vadd.f32 %v2545_v25, %v2457_v16  ;;  %v2371_v31 = vadd.f32 %v2370_v58, %v2282_v24 }
 0x287   : > { %v2286_v36 = vpop.f32.mrf.mxu1 }
 0x288   : > { %2603 = vst [vmem:[%s4262_s18 + $0x78] sm:$0xff] %v2546_v15  ;;  %v2634_v47 = vadd.f32 %v2633_v51, %v2546_v15  ;;  %v2672_v23 = vmul.f32 %v2546_v15, %v2546_v15  ;;  %v2550_v29 = vpop.f32.mrf.mxu0  ;;  %v2287_v4 = vadd.f32 %v2286_v36, %v4188_v38 }
 0x28a   : > { %v2703_v21 = vadd.f32 %v2702_v33, %v2672_v23 }
 0x28b   : > { %v2459_v34 = vpop.f32.mrf.mxu3 }
 0x28c   : > { %v2460_v9 = vadd.f32 %v2459_v34, %v2371_v31 }
 0x28d   : > { %v2372_v44 = vpop.f32.mrf.mxu2 }
 0x28e   : > { %v2549_v30 = vadd.f32 %v2548_v2, %v2460_v9  ;;  %v2373_v7 = vadd.f32 %v2372_v44, %v2284_v10 }
 0x28f   : > { %v2288_v32 = vpop.f32.mrf.mxu1 }
 0x290   : > { %2604 = vst [vmem:[%s4262_s18 + $0x80] sm:$0xff] %v2549_v30  ;;  %v2635_v46 = vadd.f32 %v2634_v47, %v2549_v30  ;;  %v2673_v41 = vmul.f32 %v2549_v30, %v2549_v30  ;;  %v2553_v18 = vpop.f32.mrf.mxu0  ;;  %v2289_v62 = vadd.f32 %v2288_v32, %v4193_v17 }
 0x292   : > { %v2704_v59 = vadd.f32 %v2703_v21, %v2673_v41 }
 0x293   : > { %v2461_v56 = vpop.f32.mrf.mxu3 }
 0x294   : > { %v2462_v5 = vadd.f32 %v2461_v56, %v2373_v7 }
 0x295   : > { %v2375_v54 = vpop.f32.mrf.mxu2 }
 0x296   : > { %v2551_v52 = vadd.f32 %v2550_v29, %v2462_v5  ;;  %v2376_v43 = vadd.f32 %v2375_v54, %v2287_v4 }
 0x297   : > { %v2291_v6 = vpop.f32.mrf.mxu1 }
 0x298   : > { %2605 = vst [vmem:[%s4262_s18 + $0x88] sm:$0xff] %v2551_v52  ;;  %v2636_v55 = vadd.f32 %v2635_v46, %v2551_v52  ;;  %v2674_v12 = vmul.f32 %v2551_v52, %v2551_v52  ;;  %v2555_v63 = vpop.f32.mrf.mxu0  ;;  %v2292_v26 = vadd.f32 %v2291_v6, %v4198_v14 }
 0x29a   : > { %v2705_v50 = vadd.f32 %v2704_v59, %v2674_v12 }
 0x29b   : > { %v2464_v19 = vpop.f32.mrf.mxu3 }
 0x29c   : > { %v2465_v28 = vadd.f32 %v2464_v19, %v2376_v43 }
 0x29d   : > { %v2377_v22 = vpop.f32.mrf.mxu2 }
 0x29e   : > { %v2554_v0 = vadd.f32 %v2553_v18, %v2465_v28  ;;  %v2378_v20 = vadd.f32 %v2377_v22, %v2289_v62 }
 0x29f   : > { %v2293_v25 = vpop.f32.mrf.mxu1 }
 0x2a0   : > { %2606 = vst [vmem:[%s4262_s18 + $0x90] sm:$0xff] %v2554_v0  ;;  %v2637_v53 = vadd.f32 %v2636_v55, %v2554_v0  ;;  %v2675_v27 = vmul.f32 %v2554_v0, %v2554_v0  ;;  %v2558_v38 = vpop.f32.mrf.mxu0  ;;  %v2294_v47 = vadd.f32 %v2293_v25, %v4203_v8 }
 0x2a2   : > { %v2706_v37 = vadd.f32 %v2705_v50, %v2675_v27 }
 0x2a3   : > { %v2466_v48 = vpop.f32.mrf.mxu3 }
 0x2a4   : > { %v2467_v42 = vadd.f32 %v2466_v48, %v2378_v20 }
 0x2a5   : > { %v2380_v11 = vpop.f32.mrf.mxu2 }
 0x2a6   : > { %v2556_v51 = vadd.f32 %v2555_v63, %v2467_v42  ;;  %v2381_v39 = vadd.f32 %v2380_v11, %v2292_v26 }
 0x2a7   : > { %v2296_v13 = vpop.f32.mrf.mxu1 }
 0x2a8   : > { %2607 = vst [vmem:[%s4262_s18 + $0x98] sm:$0xff] %v2556_v51  ;;  %v2638_v2 = vadd.f32 %v2637_v53, %v2556_v51  ;;  %v2676_v33 = vmul.f32 %v2556_v51, %v2556_v51  ;;  %v2560_v17 = vpop.f32.mrf.mxu0  ;;  %v2297_v32 = vadd.f32 %v2296_v13, %v4208_v60 }
 0x2aa   : > { %v2707_v16 = vadd.f32 %v2706_v37, %v2676_v33 }
 0x2ab   : > { %v2469_v58 = vpop.f32.mrf.mxu3 }
 0x2ac   : > { %v2470_v15 = vadd.f32 %v2469_v58, %v2381_v39 }
 0x2ad   : > { %v2382_v24 = vpop.f32.mrf.mxu2 }
 0x2ae   : > { %v2559_v36 = vadd.f32 %v2558_v38, %v2470_v15  ;;  %v2383_v21 = vadd.f32 %v2382_v24, %v2294_v47 }
 0x2af   : > { %v2298_v23 = vpop.f32.mrf.mxu1 }
 0x2b0   : > { %2608 = vst [vmem:[%s4262_s18 + $0xa0] sm:$0xff] %v2559_v36  ;;  %v2639_v31 = vadd.f32 %v2638_v2, %v2559_v36  ;;  %v2677_v29 = vmul.f32 %v2559_v36, %v2559_v36  ;;  %v2563_v14 = vpop.f32.mrf.mxu0  ;;  %v2299_v4 = vadd.f32 %v2298_v23, %v4213_v49 }
 0x2b2   : > { %v2708_v34 = vadd.f32 %v2707_v16, %v2677_v29 }
 0x2b3   : > { %v2471_v9 = vpop.f32.mrf.mxu3 }
 0x2b4   : > { %v2472_v44 = vadd.f32 %v2471_v9, %v2383_v21 }
 0x2b5   : > { %v2385_v30 = vpop.f32.mrf.mxu2 }
 0x2b6   : > { %v2561_v10 = vadd.f32 %v2560_v17, %v2472_v44  ;;  %v2386_v18 = vadd.f32 %v2385_v30, %v2297_v32 }
 0x2b7   : > { %v2301_v46 = vpop.f32.mrf.mxu1 }
 0x2b8   : > { %2609 = vst [vmem:[%s4262_s18 + $0xa8] sm:$0xff] %v2561_v10  ;;  %v2640_v41 = vadd.f32 %v2639_v31, %v2561_v10  ;;  %v2678_v7 = vmul.f32 %v2561_v10, %v2561_v10  ;;  %v2565_v8 = vpop.f32.mrf.mxu0  ;;  %v2302_v0 = vadd.f32 %v2301_v46, %v4218_v1 }
 0x2ba   : > { %v2709_v59 = vadd.f32 %v2708_v34, %v2678_v7 }
 0x2bb   : > { %v2474_v56 = vpop.f32.mrf.mxu3 }
 0x2bc   : > { %v2475_v5 = vadd.f32 %v2474_v56, %v2386_v18  ;;  %v4474_v18 = vld [vmem:[#allocation9_spill] sm:$0xff] }
 0x2bd   : > { %v2387_v54 = vpop.f32.mrf.mxu2 }
 0x2be   : > { %v2564_v52 = vadd.f32 %v2563_v14, %v2475_v5  ;;  %v2388_v43 = vadd.f32 %v2387_v54, %v2299_v4 }
 0x2bf   : > { %v2303_v6 = vpop.f32.mrf.mxu1 }
 0x2c0   : > { %2610 = vst [vmem:[%s4262_s18 + $0xb0] sm:$0xff] %v2564_v52  ;;  %v2641_v55 = vadd.f32 %v2640_v41, %v2564_v52  ;;  %v2679_v12 = vmul.f32 %v2564_v52, %v2564_v52  ;;  %v2568_v60 = vpop.f32.mrf.mxu0  ;;  %v2304_v11 = vadd.f32 %v2303_v6, %v4223_v40 }
 0x2c2   : > { %v2710_v63 = vadd.f32 %v2709_v59, %v2679_v12 }
 0x2c3   : > { %v2476_v50 = vpop.f32.mrf.mxu3 }
 0x2c4   : > { %v2477_v19 = vadd.f32 %v2476_v50, %v2388_v43 }
 0x2c5   : > { %v2390_v28 = vpop.f32.mrf.mxu2 }
 0x2c6   : > { %v2566_v22 = vadd.f32 %v2565_v8, %v2477_v19  ;;  %v2391_v53 = vadd.f32 %v2390_v28, %v2302_v0 }
 0x2c7   : > { %v2306_v27 = vpop.f32.mrf.mxu1 }
 0x2c8   : > { %2611 = vst [vmem:[%s4262_s18 + $0xb8] sm:$0xff] %v2566_v22  ;;  %v2642_v62 = vadd.f32 %v2641_v55, %v2566_v22  ;;  %v2680_v25 = vmul.f32 %v2566_v22, %v2566_v22  ;;  %v2570_v49 = vpop.f32.mrf.mxu0  ;;  %v2307_v15 = vadd.f32 %v2306_v27, %v4228_v35 }
 0x2ca   : > { %v2711_v20 = vadd.f32 %v2710_v63, %v2680_v25 }
 0x2cb   : > { %v2479_v38 = vpop.f32.mrf.mxu3 }
 0x2cc   : > { %v2480_v37 = vadd.f32 %v2479_v38, %v2391_v53 }
 0x2cd   : > { %v2392_v48 = vpop.f32.mrf.mxu2 }
 0x2ce   : > { %v2569_v42 = vadd.f32 %v2568_v60, %v2480_v37  ;;  %v2393_v13 = vadd.f32 %v2392_v48, %v2304_v11 }
 0x2cf   : > { %v2308_v1 = vpop.f32.mrf.mxu1 }
 0x2d0   : > { %2612 = vst [vmem:[%s4262_s18 + $0xc0] sm:$0xff] %v2569_v42  ;;  %v2643_v51 = vadd.f32 %v2642_v62, %v2569_v42  ;;  %v2681_v26 = vmul.f32 %v2569_v42, %v2569_v42  ;;  %v2573_v39 = vpop.f32.mrf.mxu0  ;;  %v2309_v9 = vadd.f32 %v2308_v1, %v4233_v45 }
 0x2d2   : > { %v2712_v2 = vadd.f32 %v2711_v20, %v2681_v26 }
 0x2d3   : > { %v2481_v33 = vpop.f32.mrf.mxu3 }
 0x2d4   : > { %v2482_v17 = vadd.f32 %v2481_v33, %v2393_v13 }
 0x2d5   : > { %v2395_v16 = vpop.f32.mrf.mxu2 }
 0x2d6   : > { %v2571_v58 = vadd.f32 %v2570_v49, %v2482_v17  ;;  %v2396_v47 = vadd.f32 %v2395_v16, %v2307_v15 }
 0x2d7   : > { %v2311_v29 = vpop.f32.mrf.mxu1 }
 0x2d8   : > { %2613 = vst [vmem:[%s4262_s18 + $0xc8] sm:$0xff] %v2571_v58  ;;  %v2644_v24 = vadd.f32 %v2643_v51, %v2571_v58  ;;  %v2682_v36 = vmul.f32 %v2571_v58, %v2571_v58  ;;  %v2575_v21 = vpop.f32.mrf.mxu0  ;;  %v2312_v8 = vadd.f32 %v2311_v29, %v4474_v18 }
 0x2da   : > { %v2713_v23 = vadd.f32 %v2712_v2, %v2682_v36 }
 0x2db   : > { %v2484_v40 = vpop.f32.mrf.mxu3 }
 0x2dc   : > { %v2485_v31 = vadd.f32 %v2484_v40, %v2396_v47 }
 0x2dd   : > { %v2397_v14 = vpop.f32.mrf.mxu2 }
 0x2de   : > { %v2574_v34 = vadd.f32 %v2573_v39, %v2485_v31  ;;  %v2398_v10 = vadd.f32 %v2397_v14, %v2309_v9 }
 0x2df   : > { %v2313_v59 = vpop.f32.mrf.mxu1 }
 0x2e0   : > { %2614 = vst [vmem:[%s4262_s18 + $0xd0] sm:$0xff] %v2574_v34  ;;  %v2645_v44 = vadd.f32 %v2644_v24, %v2574_v34  ;;  %v2683_v30 = vmul.f32 %v2574_v34, %v2574_v34  ;;  %v2578_v56 = vpop.f32.mrf.mxu0  ;;  %v2314_v43 = vadd.f32 %v2313_v59, %v4243_v3 }
 0x2e2   : > { %v2714_v32 = vadd.f32 %v2713_v23, %v2683_v30 }
 0x2e3   : > { %v2486_v35 = vpop.f32.mrf.mxu3 }
 0x2e4   : > { %v2487_v46 = vadd.f32 %v2486_v35, %v2398_v10 }
 0x2e5   : > { %v2400_v41 = vpop.f32.mrf.mxu2 }
 0x2e6   : > { %v2576_v7 = vadd.f32 %v2575_v21, %v2487_v46  ;;  %v2401_v52 = vadd.f32 %v2400_v41, %v2312_v8 }
 0x2e7   : > { %v2316_v19 = vpop.f32.mrf.mxu1 }
 0x2e8   : > { %2615 = vst [vmem:[%s4262_s18 + $0xd8] sm:$0xff] %v2576_v7  ;;  %v2646_v5 = vadd.f32 %v2645_v44, %v2576_v7  ;;  %v2684_v54 = vmul.f32 %v2576_v7, %v2576_v7  ;;  %v2580_v28 = vpop.f32.mrf.mxu0  ;;  %v2317_v27 = vadd.f32 %v2316_v19, %v4248_v57 }
 0x2ea   : > { %v2715_v4 = vadd.f32 %v2714_v32, %v2684_v54 }
 0x2eb   : > { %v2489_v45 = vpop.f32.mrf.mxu3 }
 0x2ec   : > { %v2490_v6 = vadd.f32 %v2489_v45, %v2401_v52 }
 0x2ed   : > { %v2402_v55 = vpop.f32.mrf.mxu2 }
 0x2ee   : > { %v2579_v12 = vadd.f32 %v2578_v56, %v2490_v6  ;;  %v2403_v50 = vadd.f32 %v2402_v55, %v2314_v43 }
 0x2ef   : > { %v2318_v3 = vpop.f32.mrf.mxu1 }
 0x2f0   : > { %2616 = vst [vmem:[%s4262_s18 + $0xe0] sm:$0xff] %v2579_v12  ;;  %v2647_v60 = vadd.f32 %v2646_v5, %v2579_v12  ;;  %v2685_v63 = vmul.f32 %v2579_v12, %v2579_v12  ;;  %v2583_v48 = vpop.f32.mrf.mxu0  ;;  %v2319_v13 = vadd.f32 %v2318_v3, %v4253_v61 }
 0x2f2   : > { %v2716_v22 = vadd.f32 %v2715_v4, %v2685_v63 }
 0x2f3   : > { %v2491_v0 = vpop.f32.mrf.mxu3 }
 0x2f4   : > { %v2492_v62 = vadd.f32 %v2491_v0, %v2403_v50 }
 0x2f5   : > { %v2405_v25 = vpop.f32.mrf.mxu2 }
 0x2f6   : > { %v2581_v53 = vadd.f32 %v2580_v28, %v2492_v62  ;;  %v2406_v38 = vadd.f32 %v2405_v25, %v2317_v27 }
 0x2f8   : > { %2617 = vst [vmem:[%s4262_s18 + $0xe8] sm:$0xff] %v2581_v53  ;;  %v2648_v49 = vadd.f32 %v2647_v60, %v2581_v53  ;;  %v2686_v20 = vmul.f32 %v2581_v53, %v2581_v53  ;;  %v2585_v16 = vpop.f32.mrf.mxu0 }
 0x2fa   : > { %v2717_v37 = vadd.f32 %v2716_v22, %v2686_v20 }
 0x2fb   : > { %v2494_v42 = vpop.f32.mrf.mxu3 }
 0x2fc   : > { %v2495_v11 = vadd.f32 %v2494_v42, %v2406_v38 }
 0x2fd   : > { %v2407_v51 = vpop.f32.mrf.mxu2 }
 0x2fe   : > { %v2584_v26 = vadd.f32 %v2583_v48, %v2495_v11  ;;  %v2408_v33 = vadd.f32 %v2407_v51, %v2319_v13 }
 0x300   : > { %2618 = vst [vmem:[%s4262_s18 + $0xf0] sm:$0xff] %v2584_v26  ;;  %v2649_v2 = vadd.f32 %v2648_v49, %v2584_v26  ;;  %v2687_v1 = vmul.f32 %v2584_v26, %v2584_v26 }
 0x302   : > { %v2718_v39 = vadd.f32 %v2717_v37, %v2687_v1 }
 0x303   : > { %v2496_v57 = vpop.f32.mrf.mxu3 }
 0x304   : > { %v2497_v17 = vadd.f32 %v2496_v57, %v2408_v33 }
 0x306   : > { %v2586_v58 = vadd.f32 %v2585_v16, %v2497_v17 }
 0x308   : > { %2619 = vst [vmem:[%s4262_s18 + $0xf8] sm:$0xff] %v2586_v58  ;;  %v2650_v15 = vadd.f32 %v2649_v2, %v2586_v58  ;;  %v2688_v24 = vmul.f32 %v2586_v58, %v2586_v58 }
 0x30a   : > { %v2651_v36 = vrot.slane %v2650_v15, 4  ;;  %v2719_v47 = vadd.f32 %v2718_v39, %v2688_v24 }
 0x30c   : > { %v2652_v23 = vadd.f32 %v2651_v36, %v2650_v15  ;;  %v2720_v40 = vrot.slane %v2719_v47, 4 }
 0x30e   : > { %v2653_v31 = vrot.slane %v2652_v23, 2  ;;  %v2721_v29 = vadd.f32 %v2720_v40, %v2719_v47 }
 0x310   : > { %v2654_v61 = vadd.f32 %v2653_v31, %v2652_v23  ;;  %v2722_v21 = vrot.slane %v2721_v29, 2 }
 0x312   : > { %v2655_v14 = vrot.slane %v2654_v61, 1  ;;  %v2723_v34 = vadd.f32 %v2722_v21, %v2721_v29 }
 0x314   : > { %v2724_v9 = vrot.slane %v2723_v34, 1  ;;  %v2656_v44 = vadd.f32 %v2655_v14, %v2654_v61 }
 0x316   : > { %v2725_v30 = vadd.f32 %v2724_v9, %v2723_v34 }
 0x318   : > { %v2727_v10 = vsel %vm2726_vm2, %v2656_v44, %v2725_v30 }
 0x319   : > { %2728 = vst [vmem:[%s208_s21] sm:$0x3] %v2727_v10 }
 0x31a PF: > { %s15_s15 = sadd.s32 1, %s3241_s15  }
 0x31b   : > { %p12_p4 = scmp.ge.s32.totalorder %s15_s15, 4  }
 0x31d   :  { %14 = sbr.rel (!%p12_p4) target bundleno = 1 (0x1), region = 76 }

</bundles_post_ra>
